<compile_context>
chip_gen: v7x
topology: tpu7x:2x2x1
jax: 0.10.0
libtpu: 0.0.40
codegen_flags: <defaults>
</compile_context>

<pallas_src>
import jax
import jax.numpy as jnp
from jax.experimental import pallas as pl
from jax.experimental.pallas import tpu as pltpu

RRELU_SLOPE = (1.0 / 8.0 + 1.0 / 3.0) / 2.0  # eval-mode RReLU negative slope
BN_EPS = 1e-5


def residual_block_kernel(xs_ref, s1_ref, t1_ref, w3_ref, s2_ref, t2_ref,
                          w1_ref, b1_ref, out_ref):
    # xs_ref: (1, 1, SH+2, W, Cp) -- one row strip of one batch element, with
    # one halo row above and below already included in the block.
    _, _, SHP2, W, Cp = xs_ref.shape
    SH = SHP2 - 2
    RW = SHP2 * W          # flattened rows incl. halos
    MR = SH * W            # output rows (matmul M)
    s_idx = pl.program_id(1)
    last = pl.num_programs(1) - 1

    # BN1 (folded scale/shift) + eval-mode RReLU, in f32.
    h = xs_ref[0, 0].reshape(RW, Cp) * s1_ref[0] + t1_ref[0]
    h = jnp.where(h >= 0, h, RRELU_SLOPE * h)

    # A single cheap (RW, 1) row iota drives all edge masking.
    row = jax.lax.broadcasted_iota(jnp.int32, (RW, 1), 0)
    wpos = row % W
    # Halo rows that fall outside the image act as the conv's zero padding.
    outside = jnp.logical_or(jnp.logical_and(row < W, s_idx == 0),
                             jnp.logical_and(row >= RW - W, s_idx == last))
    h = jnp.where(outside, 0.0, h)

    # x-1 / x+1 column taps via XLU sublane rotates; wrapped rows are masked by
    # the image-column edge masks (non-negative shifts: +1 and RW-1 == -1).
    h_m1 = jnp.where(wpos == 0, 0.0, pltpu.roll(h, 1, axis=0))
    h_p1 = jnp.where(wpos == W - 1, 0.0, pltpu.roll(h, RW - 1, axis=0))

    # One lane-dense bf16 slab (RW, 3*Cp); 3 MXU matmuls (kh = 0/1/2) at
    # sublane-aligned row offsets 0 / W / 2W, accumulated in f32.
    bf = jnp.bfloat16
    slab = jnp.concatenate(
        [h_m1.astype(bf), h.astype(bf), h_p1.astype(bf)], axis=-1)
    conv3 = (jnp.dot(slab[0:MR], w3_ref[0],
                     preferred_element_type=jnp.float32)
             + jnp.dot(slab[W:W + MR], w3_ref[1],
                       preferred_element_type=jnp.float32)
             + jnp.dot(slab[2 * W:2 * W + MR], w3_ref[2],
                       preferred_element_type=jnp.float32))

    # BN2 (conv bias b3 already folded into t2) + eval-mode RReLU, in f32.
    h2 = conv3 * s2_ref[0] + t2_ref[0]
    h2 = jnp.where(h2 >= 0, h2, RRELU_SLOPE * h2)

    # 1x1 conv on the MXU (bf16 operands, f32 accumulate) + bias.
    y = jnp.dot(h2.astype(bf), w1_ref[...],
                preferred_element_type=jnp.float32) + b1_ref[0]

    # Residual add; interior rows re-read here so x has a short live range.
    x_mid = xs_ref[0, 0, 1:1 + SH, :, :].reshape(MR, Cp)
    out_ref[0] = (x_mid + y).reshape(SH, W, Cp).astype(out_ref.dtype)


def _pick_strip_height(H, W):
    """Largest divisor of H that keeps the matmul M = strip_h*W <= 1024."""
    # TODO(synk): masked last strip for awkward (e.g. prime) H instead of
    #             degrading to a small divisor.
    divisors = [d for d in range(1, H + 1) if H % d == 0]
    good = [d for d in divisors if d * W <= 1024]
    return max(good) if good else 1


@jax.jit
def residual_block_nhwc(x, scale1, shift1, w3, b3, scale2, shift2, w1, b1):
    """x: (B,H,W,C) f32. w3: (3,3,C,C) HWIO. w1: (C,C). Other params: (C,)."""
    B, H, W, C = x.shape
    assert W % 8 == 0, "W must be a multiple of 8 (sublane alignment)"

    # Lane-dense channel padding; for C > 128 round to a multiple of 256 so the
    # matmul N fills the full 256-wide MXU on v6e/v7x.
    # TODO(synk): for C << 128 pack W / rows into the lane dim instead of
    #             padding channels (padding inflates work by Cp/C), and keep
    #             consumers in the padded layout to avoid the trailing slice.
    quantum = 128 if C <= 128 else 256
    Cp = ((C + quantum - 1) // quantum) * quantum
    cpad = Cp - C

    strip_h = _pick_strip_height(H, W)
    n_strips = H // strip_h
    # v7x has 2 TensorCores: keep the number of parallel grid steps even.
    if (B * n_strips) % 2 == 1 and strip_h % 2 == 0 and strip_h * W >= 512:
        strip_h //= 2
        n_strips *= 2

    xp = jnp.pad(x, ((0, 0), (0, 0), (0, 0), (0, cpad)))
    s1 = jnp.pad(scale1, (0, cpad)).reshape(1, Cp)
    t1 = jnp.pad(shift1, (0, cpad)).reshape(1, Cp)
    s2 = jnp.pad(scale2, (0, cpad)).reshape(1, Cp)
    t2 = jnp.pad(shift2 + scale2 * b3, (0, cpad)).reshape(1, Cp)  # fold conv3 bias
    # Conv weights cast to bf16 for the MXU; w3 flattened to (kh, kw*Cin, Cout).
    w3p = jnp.pad(w3, ((0, 0), (0, 0), (0, cpad), (0, cpad))) \
             .reshape(3, 3 * Cp, Cp).astype(jnp.bfloat16)
    w1p = jnp.pad(w1, ((0, cpad), (0, cpad))).astype(jnp.bfloat16)
    b1p = jnp.pad(b1, (0, cpad)).reshape(1, Cp)

    # Overlapping (strip_h+2)-row windows of the H-padded image: one input block
    # per grid step, no separate halo side inputs or in-kernel row concatenate.
    # TODO(synk): pl.Element on the H dim could read the overlapping windows
    #             straight from one H-padded array (no duplicated halo rows in HBM).
    xpad_h = jnp.pad(xp, ((0, 0), (1, 1), (0, 0), (0, 0)))
    xs = jnp.stack([xpad_h[:, s * strip_h: s * strip_h + strip_h + 2]
                    for s in range(n_strips)], axis=1)  # (B, n_strips, strip_h+2, W, Cp)

    const2 = lambda b, s: (0, 0)
    out = pl.pallas_call(
        residual_block_kernel,
        out_shape=jax.ShapeDtypeStruct((B, H, W, Cp), x.dtype),
        grid_spec=pltpu.PrefetchScalarGridSpec(
            num_scalar_prefetch=0,
            grid=(B, n_strips),
            in_specs=[
                pl.BlockSpec((1, 1, strip_h + 2, W, Cp),
                             lambda b, s: (b, s, 0, 0, 0)),             # x strip + halos
                pl.BlockSpec((1, Cp), const2),                          # scale1
                pl.BlockSpec((1, Cp), const2),                          # shift1
                pl.BlockSpec((3, 3 * Cp, Cp), lambda b, s: (0, 0, 0)),  # w3 (bf16)
                pl.BlockSpec((1, Cp), const2),                          # scale2
                pl.BlockSpec((1, Cp), const2),                          # shift2 (+b3)
                pl.BlockSpec((Cp, Cp), const2),                         # w1 (bf16)
                pl.BlockSpec((1, Cp), const2),                          # b1
            ],
            out_specs=pl.BlockSpec((1, strip_h, W, Cp),
                                   lambda b, s: (b, s, 0, 0)),
        ),
        compiler_params=pltpu.CompilerParams(
            dimension_semantics=("parallel", "parallel"),
            # 48 MiB fits v7x's 64 MiB physical VMEM with headroom; v5e/v6e
            # (128 MiB) could go higher for bigger strips.
            vmem_limit_bytes=48 * 1024 * 1024),
        # TODO(synk): pipeline_mode=pl.Buffered(1) on the constant weight/param
        #             specs would drop their second VMEM buffer at large Cp.
    )(xs, s1, t1, w3p, s2, t2, w1p, b1p)
    return out[..., :C]


def reference_nhwc(x, scale1, shift1, w3, b3, scale2, shift2, w1, b1):
    """Pure-JAX f32 reference (NHWC) mirroring the eval-mode PyTorch module."""
    h = x * scale1 + shift1
    h = jnp.where(h >= 0, h, RRELU_SLOPE * h)
    h = jax.lax.conv_general_dilated(
        h, w3, window_strides=(1, 1), padding=((1, 1), (1, 1)),
        dimension_numbers=("NHWC", "HWIO", "NHWC")) + b3
    h = h * scale2 + shift2
    h = jnp.where(h >= 0, h, RRELU_SLOPE * h)
    h = jnp.einsum("nhwc,cd->nhwd", h, w1) + b1
    return x + h


def make_params(key, dim):
    """Deterministic synthetic parameters (shapes from ResidualBlock.__init__)."""
    ks = jax.random.split(key, 12)
    u = lambda k, s, lo, hi: jax.random.uniform(k, s, jnp.float32, lo, hi)
    n = lambda k, s, sc: sc * jax.random.normal(k, s, jnp.float32)

    # BatchNorm2d #1: gamma, beta, running_mean, running_var
    g1, b1_, m1, v1 = u(ks[0], (dim,), 0.5, 1.5), n(ks[1], (dim,), 0.1), \
                      n(ks[2], (dim,), 0.1), u(ks[3], (dim,), 0.5, 1.5)
    # Conv2d(dim, dim, 3): weight as HWIO directly
    w3 = n(ks[4], (3, 3, dim, dim), 0.15)
    b3 = n(ks[5], (dim,), 0.1)
    # BatchNorm2d #2
    g2, b2_, m2, v2 = u(ks[6], (dim,), 0.5, 1.5), n(ks[7], (dim,), 0.1), \
                      n(ks[8], (dim,), 0.1), u(ks[9], (dim,), 0.5, 1.5)
    # Conv2d(dim, dim, 1): weight folded to (C_in, C_out)
    w1 = n(ks[10], (dim, dim), 0.15)
    b1c = n(ks[11], (dim,), 0.1)

    # Fold BN (inference mode) into per-channel scale/shift.
    scale1 = g1 / jnp.sqrt(v1 + BN_EPS)
    shift1 = b1_ - m1 * scale1
    scale2 = g2 / jnp.sqrt(v2 + BN_EPS)
    shift2 = b2_ - m2 * scale2
    return dict(scale1=scale1, shift1=shift1, w3=w3, b3=b3,
                scale2=scale2, shift2=shift2, w1=w1, b1=b1c)


if __name__ == "__main__":
    B, C, H, W = 2, 4, 16, 16
    key = jax.random.PRNGKey(0)
    kx, kp = jax.random.split(key)

    # PyTorch-style NCHW input
    x_nchw = jax.random.normal(kx, (B, C, H, W), jnp.float32)
    params = make_params(kp, C)

    # layout: NCHW -> NHWC for the kernel
    x_nhwc = jnp.transpose(x_nchw, (0, 2, 3, 1))

    out_nhwc = residual_block_nhwc(
        x_nhwc,
        params["scale1"], params["shift1"], params["w3"], params["b3"],
        params["scale2"], params["shift2"], params["w1"], params["b1"])
    out_nhwc = jax.block_until_ready(out_nhwc)

    # correctness check against the pure-JAX f32 reference (tolerance loosened
    # for bf16 MXU operands; accumulation is f32)
    ref = reference_nhwc(
        x_nhwc, params["scale1"], params["shift1"], params["w3"], params["b3"],
        params["scale2"], params["shift2"], params["w1"], params["b1"])
    err = jnp.max(jnp.abs(out_nhwc - ref))
    assert jnp.allclose(out_nhwc, ref, atol=2e-2, rtol=2e-2), f"max abs err {err}"

    # back to NCHW like the PyTorch module output
    out_nchw = jnp.transpose(out_nhwc, (0, 3, 1, 2))
    jax.block_until_ready(out_nchw)
    print("KERNEL_OK")
</pallas_src>

<mosaic_0001>
module attributes {stable_mosaic.version = 11 : i64} {
  func.func @residual_block_kernel(%arg0: i32, %arg1: i32, %arg2: memref<1x1x18x16x128xf32, #tpu.memory_space<vmem>>, %arg3: memref<1x128xf32, #tpu.memory_space<vmem>>, %arg4: memref<1x128xf32, #tpu.memory_space<vmem>>, %arg5: memref<3x384x128xbf16, #tpu.memory_space<vmem>>, %arg6: memref<1x128xf32, #tpu.memory_space<vmem>>, %arg7: memref<1x128xf32, #tpu.memory_space<vmem>>, %arg8: memref<128x128xbf16, #tpu.memory_space<vmem>>, %arg9: memref<1x128xf32, #tpu.memory_space<vmem>>, %arg10: memref<1x16x16x128xf32, #tpu.memory_space<vmem>>) attributes {dimension_semantics = [#tpu.dimension_semantics<parallel>, #tpu.dimension_semantics<parallel>], iteration_bounds = array<i64: 2, 1>, scalar_prefetch = 0 : i64, scratch_operands = 0 : i64, tpu.core_type = #tpu.core_type<tc>, window_params = [{transform_indices = @transform_0, window_bounds = array<i64: 1, 1, 18, 16, 128>}, {pipeline_mode = #tpu.pipeline_mode<synchronous>, transform_indices = @transform_1, window_bounds = array<i64: 1, 128>}, {pipeline_mode = #tpu.pipeline_mode<synchronous>, transform_indices = @transform_2, window_bounds = array<i64: 1, 128>}, {pipeline_mode = #tpu.pipeline_mode<synchronous>, transform_indices = @transform_3, window_bounds = array<i64: 3, 384, 128>}, {pipeline_mode = #tpu.pipeline_mode<synchronous>, transform_indices = @transform_4, window_bounds = array<i64: 1, 128>}, {pipeline_mode = #tpu.pipeline_mode<synchronous>, transform_indices = @transform_5, window_bounds = array<i64: 1, 128>}, {pipeline_mode = #tpu.pipeline_mode<synchronous>, transform_indices = @transform_6, window_bounds = array<i64: 128, 128>}, {pipeline_mode = #tpu.pipeline_mode<synchronous>, transform_indices = @transform_7, window_bounds = array<i64: 1, 128>}, {transform_indices = @transform_8, window_bounds = array<i64: 1, 16, 16, 128>}]} {
    %c0 = arith.constant 0 : index
    %c0_0 = arith.constant 0 : index
    %c0_1 = arith.constant 0 : index
    %c0_2 = arith.constant 0 : index
    %c0_3 = arith.constant 0 : index
    %0 = vector.load %arg2[%c0, %c0_0, %c0_1, %c0_2, %c0_3] : memref<1x1x18x16x128xf32, #tpu.memory_space<vmem>>, vector<1x1x18x16x128xf32>
    %1 = vector.shape_cast %0 : vector<1x1x18x16x128xf32> to vector<18x16x128xf32>
    %2 = vector.shape_cast %1 : vector<18x16x128xf32> to vector<288x128xf32>
    %c0_4 = arith.constant 0 : index
    %c0_5 = arith.constant 0 : index
    %3 = vector.load %arg3[%c0_4, %c0_5] : memref<1x128xf32, #tpu.memory_space<vmem>>, vector<1x128xf32>
    %4 = vector.shape_cast %3 : vector<1x128xf32> to vector<128xf32>
    %5 = vector.shape_cast %4 : vector<128xf32> to vector<1x128xf32>
    %6 = vector.broadcast %5 : vector<1x128xf32> to vector<288x128xf32>
    %7 = arith.mulf %2, %6 : vector<288x128xf32>
    %c0_6 = arith.constant 0 : index
    %c0_7 = arith.constant 0 : index
    %8 = vector.load %arg4[%c0_6, %c0_7] : memref<1x128xf32, #tpu.memory_space<vmem>>, vector<1x128xf32>
    %9 = vector.shape_cast %8 : vector<1x128xf32> to vector<128xf32>
    %10 = vector.shape_cast %9 : vector<128xf32> to vector<1x128xf32>
    %11 = vector.broadcast %10 : vector<1x128xf32> to vector<288x128xf32>
    %12 = arith.addf %7, %11 : vector<288x128xf32>
    %cst = arith.constant 0.000000e+00 : f32
    %13 = vector.broadcast %cst : f32 to vector<288x128xf32>
    %14 = arith.cmpf oge, %12, %13 : vector<288x128xf32>
    %cst_8 = arith.constant 0.229166672 : f32
    %15 = vector.broadcast %cst_8 : f32 to vector<288x128xf32>
    %16 = arith.mulf %15, %12 : vector<288x128xf32>
    %17 = arith.select %14, %12, %16 : vector<288x128xi1>, vector<288x128xf32>
    %18 = tpu.iota {dimensions = array<i32: 0>} : vector<288x1xi32>
    %c16_i32 = arith.constant 16 : i32
    %c0_i32 = arith.constant 0 : i32
    %19 = arith.cmpi eq, %c16_i32, %c0_i32 : i32
    %c1_i32 = arith.constant 1 : i32
    %20 = arith.select %19, %c1_i32, %c16_i32 : i32
    %21 = vector.broadcast %20 : i32 to vector<288x1xi32>
    %22 = arith.remsi %18, %21 : vector<288x1xi32>
    %c0_i32_9 = arith.constant 0 : i32
    %23 = vector.broadcast %c0_i32_9 : i32 to vector<288x1xi32>
    %24 = arith.cmpi ne, %22, %23 : vector<288x1xi32>
    %c0_i32_10 = arith.constant 0 : i32
    %25 = vector.broadcast %c0_i32_10 : i32 to vector<288x1xi32>
    %26 = arith.cmpi slt, %22, %25 : vector<288x1xi32>
    %c0_i32_11 = arith.constant 0 : i32
    %27 = arith.cmpi slt, %20, %c0_i32_11 : i32
    %28 = vector.broadcast %27 : i1 to vector<288x1xi1>
    %29 = vector.broadcast %28 : vector<288x1xi1> to vector<288x1xi1>
    %30 = arith.xori %26, %29 : vector<288x1xi1>
    %31 = arith.andi %30, %24 : vector<288x1xi1>
    %32 = vector.broadcast %20 : i32 to vector<288x1xi32>
    %33 = arith.addi %22, %32 : vector<288x1xi32>
    %34 = arith.select %31, %33, %22 : vector<288x1xi1>, vector<288x1xi32>
    %c16_i32_12 = arith.constant 16 : i32
    %35 = vector.broadcast %c16_i32_12 : i32 to vector<288x1xi32>
    %36 = arith.cmpi slt, %18, %35 : vector<288x1xi32>
    %c0_i32_13 = arith.constant 0 : i32
    %37 = arith.cmpi eq, %arg1, %c0_i32_13 : i32
    %38 = vector.broadcast %37 : i1 to vector<288x1xi1>
    %39 = arith.andi %36, %38 : vector<288x1xi1>
    %c272_i32 = arith.constant 272 : i32
    %40 = vector.broadcast %c272_i32 : i32 to vector<288x1xi32>
    %41 = arith.cmpi sge, %18, %40 : vector<288x1xi32>
    %c0_i32_14 = arith.constant 0 : i32
    %42 = arith.cmpi eq, %arg1, %c0_i32_14 : i32
    %43 = vector.broadcast %42 : i1 to vector<288x1xi1>
    %44 = arith.andi %41, %43 : vector<288x1xi1>
    %45 = arith.ori %39, %44 : vector<288x1xi1>
    %cst_15 = arith.constant 0.000000e+00 : f32
    %46 = vector.shape_cast %45 : vector<288x1xi1> to vector<288x1xi1>
    %47 = vector.broadcast %46 : vector<288x1xi1> to vector<288x128xi1>
    %48 = vector.broadcast %cst_15 : f32 to vector<288x128xf32>
    %49 = arith.select %47, %48, %17 : vector<288x128xi1>, vector<288x128xf32>
    %c0_i32_16 = arith.constant 0 : i32
    %50 = vector.broadcast %c0_i32_16 : i32 to vector<288x1xi32>
    %51 = arith.cmpi eq, %34, %50 : vector<288x1xi32>
    %c1_i32_17 = arith.constant 1 : i32
    %52 = tpu.dynamic_rotate %49 by %c1_i32_17 dim 0 : vector<288x128xf32>, i32 -> vector<288x128xf32>
    %cst_18 = arith.constant 0.000000e+00 : f32
    %53 = vector.shape_cast %51 : vector<288x1xi1> to vector<288x1xi1>
    %54 = vector.broadcast %53 : vector<288x1xi1> to vector<288x128xi1>
    %55 = vector.broadcast %cst_18 : f32 to vector<288x128xf32>
    %56 = arith.select %54, %55, %52 : vector<288x128xi1>, vector<288x128xf32>
    %c15_i32 = arith.constant 15 : i32
    %57 = vector.broadcast %c15_i32 : i32 to vector<288x1xi32>
    %58 = arith.cmpi eq, %34, %57 : vector<288x1xi32>
    %c287_i32 = arith.constant 287 : i32
    %59 = tpu.dynamic_rotate %49 by %c287_i32 dim 0 : vector<288x128xf32>, i32 -> vector<288x128xf32>
    %cst_19 = arith.constant 0.000000e+00 : f32
    %60 = vector.shape_cast %58 : vector<288x1xi1> to vector<288x1xi1>
    %61 = vector.broadcast %60 : vector<288x1xi1> to vector<288x128xi1>
    %62 = vector.broadcast %cst_19 : f32 to vector<288x128xf32>
    %63 = arith.select %61, %62, %59 : vector<288x128xi1>, vector<288x128xf32>
    %64 = arith.truncf %56 : vector<288x128xf32> to vector<288x128xbf16>
    %65 = arith.truncf %49 : vector<288x128xf32> to vector<288x128xbf16>
    %66 = arith.truncf %63 : vector<288x128xf32> to vector<288x128xbf16>
    %67 = tpu.concatenate %64, %65, %66 in 1 : vector<288x128xbf16>, vector<288x128xbf16>, vector<288x128xbf16> -> vector<288x384xbf16>
    %68 = vector.extract_strided_slice %67 {offsets = [0, 0], sizes = [256, 384], strides = [1, 1]} : vector<288x384xbf16> to vector<256x384xbf16>
    %c0_20 = arith.constant 0 : index
    %c0_21 = arith.constant 0 : index
    %c0_22 = arith.constant 0 : index
    %69 = vector.load %arg5[%c0_20, %c0_21, %c0_22] : memref<3x384x128xbf16, #tpu.memory_space<vmem>>, vector<1x384x128xbf16>
    %70 = vector.shape_cast %69 : vector<1x384x128xbf16> to vector<384x128xbf16>
    %cst_23 = arith.constant dense<0.000000e+00> : vector<256x128xf32>
    %71 = tpu.matmul %68, %70, %cst_23 {dimension_numbers = #tpu.dot_dimension_numbers<[1], [0], [0], [1], [0, 0, 1, 1], [], []>} : vector<256x384xbf16>, vector<384x128xbf16>, vector<256x128xf32> -> vector<256x128xf32>
    %72 = vector.extract_strided_slice %67 {offsets = [16, 0], sizes = [256, 384], strides = [1, 1]} : vector<288x384xbf16> to vector<256x384xbf16>
    %c1 = arith.constant 1 : index
    %c0_24 = arith.constant 0 : index
    %c0_25 = arith.constant 0 : index
    %73 = vector.load %arg5[%c1, %c0_24, %c0_25] : memref<3x384x128xbf16, #tpu.memory_space<vmem>>, vector<1x384x128xbf16>
    %74 = vector.shape_cast %73 : vector<1x384x128xbf16> to vector<384x128xbf16>
    %cst_26 = arith.constant dense<0.000000e+00> : vector<256x128xf32>
    %75 = tpu.matmul %72, %74, %cst_26 {dimension_numbers = #tpu.dot_dimension_numbers<[1], [0], [0], [1], [0, 0, 1, 1], [], []>} : vector<256x384xbf16>, vector<384x128xbf16>, vector<256x128xf32> -> vector<256x128xf32>
    %76 = arith.addf %71, %75 : vector<256x128xf32>
    %77 = vector.extract_strided_slice %67 {offsets = [32, 0], sizes = [256, 384], strides = [1, 1]} : vector<288x384xbf16> to vector<256x384xbf16>
    %c2 = arith.constant 2 : index
    %c0_27 = arith.constant 0 : index
    %c0_28 = arith.constant 0 : index
    %78 = vector.load %arg5[%c2, %c0_27, %c0_28] : memref<3x384x128xbf16, #tpu.memory_space<vmem>>, vector<1x384x128xbf16>
    %79 = vector.shape_cast %78 : vector<1x384x128xbf16> to vector<384x128xbf16>
    %cst_29 = arith.constant dense<0.000000e+00> : vector<256x128xf32>
    %80 = tpu.matmul %77, %79, %cst_29 {dimension_numbers = #tpu.dot_dimension_numbers<[1], [0], [0], [1], [0, 0, 1, 1], [], []>} : vector<256x384xbf16>, vector<384x128xbf16>, vector<256x128xf32> -> vector<256x128xf32>
    %81 = arith.addf %76, %80 : vector<256x128xf32>
    %c0_30 = arith.constant 0 : index
    %c0_31 = arith.constant 0 : index
    %82 = vector.load %arg6[%c0_30, %c0_31] : memref<1x128xf32, #tpu.memory_space<vmem>>, vector<1x128xf32>
    %83 = vector.shape_cast %82 : vector<1x128xf32> to vector<128xf32>
    %84 = vector.shape_cast %83 : vector<128xf32> to vector<1x128xf32>
    %85 = vector.broadcast %84 : vector<1x128xf32> to vector<256x128xf32>
    %86 = arith.mulf %81, %85 : vector<256x128xf32>
    %c0_32 = arith.constant 0 : index
    %c0_33 = arith.constant 0 : index
    %87 = vector.load %arg7[%c0_32, %c0_33] : memref<1x128xf32, #tpu.memory_space<vmem>>, vector<1x128xf32>
    %88 = vector.shape_cast %87 : vector<1x128xf32> to vector<128xf32>
    %89 = vector.shape_cast %88 : vector<128xf32> to vector<1x128xf32>
    %90 = vector.broadcast %89 : vector<1x128xf32> to vector<256x128xf32>
    %91 = arith.addf %86, %90 : vector<256x128xf32>
    %cst_34 = arith.constant 0.000000e+00 : f32
    %92 = vector.broadcast %cst_34 : f32 to vector<256x128xf32>
    %93 = arith.cmpf oge, %91, %92 : vector<256x128xf32>
    %cst_35 = arith.constant 0.229166672 : f32
    %94 = vector.broadcast %cst_35 : f32 to vector<256x128xf32>
    %95 = arith.mulf %94, %91 : vector<256x128xf32>
    %96 = arith.select %93, %91, %95 : vector<256x128xi1>, vector<256x128xf32>
    %97 = arith.truncf %96 : vector<256x128xf32> to vector<256x128xbf16>
    %c0_36 = arith.constant 0 : index
    %c0_37 = arith.constant 0 : index
    %98 = vector.load %arg8[%c0_36, %c0_37] : memref<128x128xbf16, #tpu.memory_space<vmem>>, vector<128x128xbf16>
    %cst_38 = arith.constant dense<0.000000e+00> : vector<256x128xf32>
    %99 = tpu.matmul %97, %98, %cst_38 {dimension_numbers = #tpu.dot_dimension_numbers<[1], [0], [0], [1], [0, 0, 1, 1], [], []>} : vector<256x128xbf16>, vector<128x128xbf16>, vector<256x128xf32> -> vector<256x128xf32>
    %c0_39 = arith.constant 0 : index
    %c0_40 = arith.constant 0 : index
    %100 = vector.load %arg9[%c0_39, %c0_40] : memref<1x128xf32, #tpu.memory_space<vmem>>, vector<1x128xf32>
    %101 = vector.shape_cast %100 : vector<1x128xf32> to vector<128xf32>
    %102 = vector.shape_cast %101 : vector<128xf32> to vector<1x128xf32>
    %103 = vector.broadcast %102 : vector<1x128xf32> to vector<256x128xf32>
    %104 = arith.addf %99, %103 : vector<256x128xf32>
    %c0_41 = arith.constant 0 : index
    %c0_42 = arith.constant 0 : index
    %c1_43 = arith.constant 1 : index
    %c0_44 = arith.constant 0 : index
    %c0_45 = arith.constant 0 : index
    %105 = vector.load %arg2[%c0_41, %c0_42, %c1_43, %c0_44, %c0_45] : memref<1x1x18x16x128xf32, #tpu.memory_space<vmem>>, vector<1x1x16x16x128xf32>
    %106 = vector.shape_cast %105 : vector<1x1x16x16x128xf32> to vector<16x16x128xf32>
    %107 = vector.shape_cast %106 : vector<16x16x128xf32> to vector<256x128xf32>
    %108 = arith.addf %107, %104 : vector<256x128xf32>
    %109 = vector.shape_cast %108 : vector<256x128xf32> to vector<16x16x128xf32>
    %c0_46 = arith.constant 0 : index
    %c0_47 = arith.constant 0 : index
    %c0_48 = arith.constant 0 : index
    %c0_49 = arith.constant 0 : index
    %110 = vector.load %arg10[%c0_46, %c0_47, %c0_48, %c0_49] : memref<1x16x16x128xf32, #tpu.memory_space<vmem>>, vector<1x16x16x128xf32>
    %111 = vector.shape_cast %110 : vector<1x16x16x128xf32> to vector<16x16x128xf32>
    %112 = vector.shape_cast %109 : vector<16x16x128xf32> to vector<1x16x16x128xf32>
    tpu.vector_store %arg10[%c0_46, %c0_47, %c0_48, %c0_49], %112 {strides = array<i32>} : memref<1x16x16x128xf32, #tpu.memory_space<vmem>>, vector<1x16x16x128xf32>,
    return
  }
  func.func @transform_0(%arg0: i32, %arg1: i32) -> (i32, i32, i32, i32, i32) {
    %c0_i32 = arith.constant 0 : i32
    %c0_i32_0 = arith.constant 0 : i32
    %c0_i32_1 = arith.constant 0 : i32
    %c0_i32_2 = arith.constant 0 : i32
    return %arg0, %arg1, %c0_i32, %c0_i32_0, %c0_i32_1 : i32, i32, i32, i32, i32
  }
  func.func @transform_1(%arg0: i32, %arg1: i32) -> (i32, i32) {
    %c0_i32 = arith.constant 0 : i32
    %c0_i32_0 = arith.constant 0 : i32
    %c0_i32_1 = arith.constant 0 : i32
    return %c0_i32, %c0_i32_0 : i32, i32
  }
  func.func @transform_2(%arg0: i32, %arg1: i32) -> (i32, i32) {
    %c0_i32 = arith.constant 0 : i32
    %c0_i32_0 = arith.constant 0 : i32
    %c0_i32_1 = arith.constant 0 : i32
    return %c0_i32, %c0_i32_0 : i32, i32
  }
  func.func @transform_3(%arg0: i32, %arg1: i32) -> (i32, i32, i32) {
    %c0_i32 = arith.constant 0 : i32
    %c0_i32_0 = arith.constant 0 : i32
    %c0_i32_1 = arith.constant 0 : i32
    %c0_i32_2 = arith.constant 0 : i32
    return %c0_i32, %c0_i32_0, %c0_i32_1 : i32, i32, i32
  }
  func.func @transform_4(%arg0: i32, %arg1: i32) -> (i32, i32) {
    %c0_i32 = arith.constant 0 : i32
    %c0_i32_0 = arith.constant 0 : i32
    %c0_i32_1 = arith.constant 0 : i32
    return %c0_i32, %c0_i32_0 : i32, i32
  }
  func.func @transform_5(%arg0: i32, %arg1: i32) -> (i32, i32) {
    %c0_i32 = arith.constant 0 : i32
    %c0_i32_0 = arith.constant 0 : i32
    %c0_i32_1 = arith.constant 0 : i32
    return %c0_i32, %c0_i32_0 : i32, i32
  }
  func.func @transform_6(%arg0: i32, %arg1: i32) -> (i32, i32) {
    %c0_i32 = arith.constant 0 : i32
    %c0_i32_0 = arith.constant 0 : i32
    %c0_i32_1 = arith.constant 0 : i32
    return %c0_i32, %c0_i32_0 : i32, i32
  }
  func.func @transform_7(%arg0: i32, %arg1: i32) -> (i32, i32) {
    %c0_i32 = arith.constant 0 : i32
    %c0_i32_0 = arith.constant 0 : i32
    %c0_i32_1 = arith.constant 0 : i32
    return %c0_i32, %c0_i32_0 : i32, i32
  }
  func.func @transform_8(%arg0: i32, %arg1: i32) -> (i32, i32, i32, i32) {
    %c0_i32 = arith.constant 0 : i32
    %c0_i32_0 = arith.constant 0 : i32
    %c0_i32_1 = arith.constant 0 : i32
    return %arg0, %arg1, %c0_i32, %c0_i32_0 : i32, i32, i32, i32
  }
}

</mosaic_0001>

<bundles_post_ra>
// kernel: residual_block_nhwc.1
= control target key start
LH: loop header
LB: loop body
LE: loop exit
PB: predicated region body
PF: predicated region fallthrough
CT: control target
= control target key end

     0   :  { %s5626_s27 = smov 0   ;;  %s5628_s28 = smov 0   ;;  %s7554_s0 = inlined_call_operand.vmem [shape: f32[2,1,18,16,128], index: 0, kind: input, shape index: {}]   ;;  %s7555_s1 = inlined_call_operand.vmem [shape: f32[1,128], index: 1, kind: input, shape index: {}]   ;;  %s7556_s2 = inlined_call_operand.vmem [shape: f32[1,128], index: 2, kind: input, shape index: {}]   ;;  %s7557_s3 = inlined_call_operand.vmem [shape: bf16[3,384,128], index: 3, kind: input, shape index: {}]   ;;  %s7558_s4 = inlined_call_operand.vmem [shape: f32[1,128], index: 4, kind: input, shape index: {}]   ;;  %s7559_s5 = inlined_call_operand.vmem [shape: f32[1,128], index: 5, kind: input, shape index: {}]   ;;  %s7560_s6 = inlined_call_operand.vmem [shape: bf16[128,128], index: 6, kind: input, shape index: {}]   ;;  %s7561_s7 = inlined_call_operand.vmem [shape: f32[1,128], index: 7, kind: input, shape index: {}]   ;;  %s7562_s8 = inlined_call_operand.vmem [shape: f32[2,16,16,128], index: 8, kind: output, shape index: {}]  }
   0x1   :  { %s5630_s29 = smov 0  }
   0x2 LB: > { %s30_s30 = sadd.s32 1, %s5572_s28  ;;  %p4020_p0 = scmp.ge.s32.totalorder %s5576_s29, 1  ;;  %s5576_s29 = sphi %s5630_s29, %s18_s29   ;;  %s5572_s28 = sphi %s5628_s28, %s7877_s28   ;;  %s5568_s27 = sphi %s5626_s27, %s7876_s27  }
   0x3   : > { %p32_p1 = scmp.ge.s32.totalorder %s30_s30, 2  ;;  %p282_p2 = scmp.lt.s32.totalorder %s5576_s29, 3 }
   0x5   : > { %s7879_s30 = smov (%p32_p1, %s30_s30), 0  ;;  %p283_p3 = pnand %p4020_p0, %p282_p2 }
   0x7   : > { %286 = sbr.rel (%p283_p3) target bundleno = 835 (0x343), region = 52 }
   0xe   : > { %v5472_v0 = vld [vmem:[%s7557_s3 + $0x100] sm:$0xff]   ;;  %v5475_v3 = vld [vmem:[%s7557_s3 + $0x108] sm:$0xff]   ;;  %v576_v6 = vlaneseq  ;;  %v5478_v7 = vld [vmem:[%s7557_s3 + $0x110] sm:$0xff]   ;;  %p325_p4 = scmp.lt.s32.totalorder %s5568_s27, 1  ;;  %v7568_v23 = vmov 0.0   ;;  %vm7564_vm12 = vmmov 1  }
   0xf   : > { %v5473_v1 = vld [vmem:[%s7557_s3 + $0x140] sm:$0xff]   ;;  %4660 = vmatprep.subr.bf16.mxu0 %v5472_v0  ;;  %v5476_v4 = vld [vmem:[%s7557_s3 + $0x148] sm:$0xff]   ;;  %v5479_v8 = vld [vmem:[%s7557_s3 + $0x150] sm:$0xff]   ;;  %v5707_v24 = vrot.slane %v7568_v23, 7 }
  0x10   : > { %v5474_v2 = vld [vmem:[%s7557_s3 + $0xc0] sm:$0xff]   ;;  %5092 = vmatprep.subr.bf16.mxu1 %v5473_v1  ;;  %v5477_v5 = vld [vmem:[%s7557_s3 + $0xc8] sm:$0xff]   ;;  %v5480_v9 = vld [vmem:[%s7557_s3 + $0xd0] sm:$0xff]   ;;  %v5677_v11 = vshrl.u32 %v576_v6, 7  ;;  %s7881_s27 = smov (!%p325_p4, %s5568_s27), 1 }
  0x11   : > { %4661 = vmatpush3.bf16.msra.mxu0 %v5474_v2  ;;  %5093 = vmatpush3.bf16.msra.mxu1 %v5473_v1  ;;  %v5481_v10 = vld [vmem:[%s7557_s3 + $0x118] sm:$0xff]   ;;  %v5484_v14 = vld [vmem:[%s7557_s3 + $0x120] sm:$0xff]   ;;  %v5487_v19 = vld [vmem:[%s7557_s3 + $0x128] sm:$0xff]   ;;  %s5444_s23 = smul.u32 288, %s7881_s27  ;;  %s4623_s14 = sshll.u32 %s7881_s27, 8 }
  0x12   : > { %4662 = vmatprep.subr.bf16.mxu0 %v5475_v3  ;;  %5094 = vmatprep.subr.bf16.mxu1 %v5476_v4  ;;  %v5482_v12 = vld [vmem:[%s7557_s3 + $0x158] sm:$0xff]   ;;  %v5485_v15 = vld [vmem:[%s7557_s3 + $0x160] sm:$0xff]   ;;  %v580_v16 = vadd.s32 24, %v5677_v11  ;;  %v579_v17 = vadd.s32 16, %v5677_v11  ;;  %v5488_v20 = vld [vmem:[%s7557_s3 + $0x168] sm:$0xff]   ;;  %v582_v26 = vadd.s32 40, %v5677_v11  ;;  %s7450_s18 = scalar_lea.vmem %s7562_s8, %s4623_s14 }
  0x13   : > { %v5483_v13 = vld [vmem:[%s7557_s3 + $0xd8] sm:$0xff]   ;;  %v5486_v18 = vld [vmem:[%s7557_s3 + $0xe0] sm:$0xff]   ;;  %v5489_v25 = vld [vmem:[%s7557_s3 + $0xe8] sm:$0xff]   ;;  %v5717_v28 = vadd.s32 56, %v5677_v11  ;;  %s5725_s16 = scalar_lea.vmem %s7554_s0, %s5444_s23  ;;  %v5728_v30 = vadd.s32 32, %v5677_v11  ;;  %v5734_v32 = vadd.s32 72, %v5677_v11 }
  0x14   : > { %v638_v21 = vand.u32 15, %v580_v16  ;;  %v631_v22 = vand.u32 15, %v579_v17  ;;  %v5490_v27 = vld [vmem:[%s7557_s3 + $0x130] sm:$0xff]   ;;  %v5493_v33 = vld [vmem:[%s7557_s3 + $0x138] sm:$0xff]   ;;  %vm7566_vm0 = vcmp.lt.s32.totalorder %v5677_v11, 7  ;;  %vm7563_vm2 = vcmp.lt.s32.totalorder %v5677_v11, 1 }
  0x15   : > { %4663 = vmatpush3.bf16.msra.mxu0 %v5477_v5  ;;  %5095 = vmatpush3.bf16.msra.mxu1 %v5476_v4  ;;  %v5491_v29 = vld [vmem:[%s7557_s3 + $0x170] sm:$0xff]   ;;  %v349_v36 = vld [vmem:[%s5725_s16 + $0x18] sm:$0xff]  ;;  %v5750_v37 = vld [vmem:[%s7555_s1] ss:$0 sm:$0xff]  ;;  %v652_v39 = vand.u32 15, %v582_v26  ;;  %v5757_v40 = vadd.s32 88, %v5677_v11 }
  0x16   : > { %4664 = vmatprep.subr.bf16.mxu0 %v5478_v7  ;;  %5096 = vmatprep.subr.bf16.mxu1 %v5479_v8  ;;  %v5492_v31 = vld [vmem:[%s7557_s3 + $0xf0] sm:$0xff]   ;;  %vm5740_vm1 = vcmp.ne.s32.totalorder %v638_v21, 15  ;;  %vm5752_vm3 = vcmp.ne.s32.totalorder %v631_v22, 0  ;;  %v5494_v41 = vld [vmem:[%s7557_s3 + $0x178] sm:$0xff]   ;;  %v392_v43 = vmul.f32 %v5750_v37, %v349_v36  ;;  %v5767_v44 = vld [vmem:[%s7556_s2] ss:$0 sm:$0xff] }
  0x17   : > { %v348_v35 = vld [vmem:[%s5725_s16 + $0x10] sm:$0xff]  ;;  %v350_v45 = vld [vmem:[%s5725_s16 + $0x20] sm:$0xff]  ;;  %v666_v46 = vand.u32 15, %v5717_v28  ;;  %v645_v47 = vand.u32 15, %v5728_v30  ;;  %v351_v49 = vld [vmem:[%s5725_s16 + $0x28] sm:$0xff]  ;;  %v680_v51 = vand.u32 15, %v5734_v32 }
  0x18   : > { %v391_v42 = vmul.f32 %v5750_v37, %v348_v35  ;;  %v393_v48 = vmul.f32 %v5750_v37, %v350_v45  ;;  %v352_v50 = vld [vmem:[%s5725_s16 + $0x30] sm:$0xff]  ;;  %v694_v52 = vand.u32 15, %v5757_v40  ;;  %v5778_v53 = vadd.s32 48, %v5677_v11  ;;  %v5495_v54 = vld [vmem:[%s7557_s3 + $0xf8] sm:$0xff]   ;;  %v5496_v60 = vld [vmem:[%s7557_s3 + $0x40] sm:$0xff]  }
  0x19   : > { %4665 = vmatpush3.bf16.msra.mxu0 %v5480_v9  ;;  %5097 = vmatpush3.bf16.msra.mxu1 %v5479_v8  ;;  %v435_v56 = vadd.f32 %v5767_v44, %v392_v43  ;;  %v394_v57 = vmul.f32 %v5750_v37, %v351_v49  ;;  %v395_v58 = vmul.f32 %v5750_v37, %v352_v50  ;;  %v5792_v61 = vadd.s32 104, %v5677_v11  ;;  %v353_v4 = vld [vmem:[%s5725_s16 + $0x38] sm:$0xff]  ;;  %v354_v5 = vld [vmem:[%s5725_s16 + $0x40] sm:$0xff]  ;;  %vm5827_vm13 = vmpackc.low %vm5740_vm1, %vm7564_vm12 }
  0x1a   : > { %4666 = vmatprep.subr.bf16.mxu0 %v5481_v10  ;;  %5098 = vmatprep.subr.bf16.mxu1 %v5482_v12  ;;  %v434_v55 = vadd.f32 %v5767_v44, %v391_v42  ;;  %v436_v59 = vadd.f32 %v5767_v44, %v393_v48  ;;  %vm5794_vm6 = vcmp.ne.s32.totalorder %v652_v39, 15  ;;  %v396_v8 = vmul.f32 %v5750_v37, %v353_v4  ;;  %vm5840_vm14 = vmpackc.low %vm7564_vm12, %vm5752_vm3  ;;  %v355_v36 = vld [vmem:[%s5725_s16 + $0x48] sm:$0xff]  ;;  %v356_v38 = vld [vmem:[%s5725_s16 + $0x50] sm:$0xff] }
  0x1b   : > { %vm471_vm5 = vcmp.ge.f32.partialorder %v435_v56, 0.0  ;;  %v507_v63 = vmul.f32 0.22916667, %v435_v56  ;;  %v437_v2 = vadd.f32 %v5767_v44, %v394_v57  ;;  %v438_v3 = vadd.f32 %v5767_v44, %v395_v58  ;;  %v357_v45 = vld [vmem:[%s5725_s16 + $0x58] sm:$0xff]  ;;  %v5497_v57 = vld [vmem:[%s7557_s3] sm:$0xff]  }
  0x1c   : > { %vm470_vm4 = vcmp.ge.f32.partialorder %v434_v55, 0.0  ;;  %v506_v62 = vmul.f32 0.22916667, %v434_v55  ;;  %vm472_vm7 = vcmp.ge.f32.partialorder %v436_v59, 0.0  ;;  %v508_v1 = vmul.f32 0.22916667, %v436_v59 }
  0x1d   : > { %4667 = vmatpush3.bf16.msra.mxu0 %v5483_v13  ;;  %5099 = vmatpush3.bf16.msra.mxu1 %v5482_v12  ;;  %v543_v7 = vsel %vm471_vm5, %v435_v56, %v507_v63  ;;  %v397_v9 = vmul.f32 %v5750_v37, %v354_v5  ;;  %vm5808_vm8 = vcmp.ne.s32.totalorder %v645_v47, 0  ;;  %vm473_vm9 = vcmp.ge.f32.partialorder %v437_v2, 0.0 }
  0x1e   : > { %4668 = vmatprep.subr.bf16.mxu0 %v5484_v14  ;;  %5100 = vmatprep.subr.bf16.mxu1 %v5485_v15  ;;  %v5802_v6 = vsel %vm470_vm4, %v434_v55, %v506_v62  ;;  %v1376_v12 = vrot.slane %v543_v7, 7  ;;  %v1593_v14 = vrot.slane %v543_v7, 1  ;;  %v544_v17 = vsel %vm472_vm7, %v436_v59, %v508_v1  ;;  %vm5889_vm4 = vmpackc.low %vm5794_vm6, %vm7564_vm12  ;;  %v358_v59 = vld [vmem:[%s5725_s16 + $0x60] sm:$0xff] }
  0x1f   : > { %v1375_v10 = vrot.slane %v5802_v6, 7  ;;  %v7567_v13 = vrot.slane %v5802_v6, 1  ;;  %v5813_v16 = vpack.c.bf16 %v543_v7, %v5802_v6  ;;  %vm474_vm10 = vcmp.ge.f32.partialorder %v438_v3, 0.0  ;;  %vm5932_vm6 = vmpackc.low %vm7564_vm12, %vm5808_vm8 }
  0x20   : > { %vm5816_vm11 = vcmp.ne.s32.totalorder %v666_v46, 15  ;;  %v7671_v22 = vmov 0  ;;  %v509_v28 = vmul.f32 0.22916667, %v437_v2  ;;  %v439_v30 = vadd.f32 %v5767_v44, %v396_v8 }
  0x21   : > { %4669 = vmatpush3.bf16.msra.mxu0 %v5486_v18  ;;  %5101 = vmatpush3.bf16.msra.mxu1 %v5485_v15  ;;  %v1659_v21 = vsel %vm7566_vm0, %v7567_v13, %v1593_v14  ;;  %v7672_v22 = vsel %vm5827_vm13, 4294967295, %v7671_v22  ;;  %v1443_v26 = vsel %vm7563_vm2, %v5707_v24, %v1375_v10  ;;  %v440_v34 = vadd.f32 %v5767_v44, %v397_v9  ;;  %vm5950_vm7 = vmpackc.low %vm5816_vm11, %vm7564_vm12  ;;  %v5500_v18 = vld [vmem:[%s7557_s3 + $0x50] sm:$0xff]  }
  0x22   : > { %4670 = vmatprep.subr.bf16.mxu0 %v5487_v19  ;;  %5102 = vmatprep.subr.bf16.mxu1 %v5488_v20  ;;  %v1377_v19 = vrot.slane %v544_v17, 7  ;;  %7673 = vst [vmem:[#allocation2_spill] sm:$0xff] %v7672_v22  ;;  %vm475_vm15 = vcmp.ge.f32.partialorder %v439_v30, 0.0  ;;  %vm5864_vm1 = vcmp.ne.s32.totalorder %v680_v51, 15  ;;  %v511_v32 = vmul.f32 0.22916667, %v439_v30 }
  0x23   : > { %2098 = vmatprep.mubr.bf16.mxu0 %v5813_v16  ;;  %vm476_vm3 = vcmp.ge.f32.partialorder %v440_v34, 0.0  ;;  %v512_v49 = vmul.f32 0.22916667, %v440_v34  ;;  %v398_v51 = vmul.f32 %v5750_v37, %v355_v36  ;;  %v7679_v56 = vmov 0 }
  0x24   : > { %v1441_v35 = vsel %vm7563_vm2, %v1376_v12, %v1377_v19  ;;  %v7680_v56 = vsel %vm5889_vm4, 4294967295, %v7679_v56  ;;  %v399_v58 = vmul.f32 %v5750_v37, %v356_v38  ;;  %v5903_v63 = vsel %vm475_vm15, %v439_v30, %v511_v32  ;;  %vm5981_vm15 = vmpackc.low %vm5864_vm1, %vm7564_vm12  ;;  %v5501_v32 = vld [vmem:[%s7557_s3 + $0x10] sm:$0xff]  }
  0x25   : > { %4671 = vmatpush3.bf16.msra.mxu0 %v5489_v25  ;;  %5103 = vmatpush3.bf16.msra.mxu1 %v5488_v20  ;;  %v1594_v20 = vrot.slane %v544_v17, 1  ;;  %v1442_v25 = vsel %vm7563_vm2, %v1375_v10, %v1376_v12  ;;  %7681 = vst [vmem:[#allocation4_spill] sm:$0xff] %v7680_v56  ;;  %v5906_v0 = vsel %vm476_vm3, %v440_v34, %v512_v49  ;;  %vm5917_vm5 = vcmp.ne.s32.totalorder %v694_v52, 15 }
  0x26   : > { %4672 = vmatprep.subr.bf16.mxu0 %v5490_v27  ;;  %5104 = vmatprep.subr.bf16.mxu1 %v5491_v29  ;;  %v1597_v4 = vrot.slane %v5903_v63, 1  ;;  %v1598_v5 = vrot.slane %v5906_v0, 1  ;;  %v441_v8 = vadd.f32 %v5767_v44, %v398_v51  ;;  %v442_v52 = vadd.f32 %v5767_v44, %v399_v58 }
  0x27   : > { %v401_v10 = vmul.f32 %v5750_v37, %v358_v59  ;;  %v659_v30 = vand.u32 15, %v5778_v53  ;;  %v7691_v53 = vmov 0  ;;  %v7829_v40 = vrot.slane %v5802_v6, 1 }
  0x28   : > { %vm477_vm8 = vcmp.ge.f32.partialorder %v441_v8, 0.0  ;;  %v7692_v53 = vsel %vm5981_vm15, 4294967295, %v7691_v53 }
  0x29   : > { %4673 = vmatpush3.bf16.msra.mxu0 %v5492_v31  ;;  %5105 = vmatpush3.bf16.msra.mxu1 %v5491_v29  ;;  %v510_v29 = vmul.f32 0.22916667, %v438_v3  ;;  %v1658_v31 = vsel %vm7566_vm0, %v1593_v14, %v1594_v20  ;;  %v1654_v14 = vsel %vm7566_vm0, %v1597_v4, %v1598_v5  ;;  %7693 = vst [vmem:[#allocation8_spill] sm:$0xff] %v7692_v53  ;;  %vm4630_vm1 = vcmp.ne.s32.totalorder %v659_v30, 0 }
  0x2a   : > { %4674 = vmatprep.subr.bf16.mxu0 %v5493_v33  ;;  %5106 = vmatprep.subr.bf16.mxu1 %v5494_v41  ;;  %v5847_v33 = vpack.c.bf16 %v1442_v25, %v1443_v26  ;;  %v5854_v39 = vpack.c.bf16 %v1658_v31, %v1659_v21  ;;  %v514_v25 = vmul.f32 0.22916667, %v442_v52  ;;  %v444_v26 = vadd.f32 %v5767_v44, %v401_v10  ;;  %v359_v31 = vld [vmem:[%s5725_s16 + $0x68] sm:$0xff]  ;;  %vm6019_vm3 = vmpackc.low %vm7564_vm12, %vm4630_vm1 }
  0x2b   : > { %v5860_v42 = vsel %vm474_vm10, %v438_v3, %v510_v29  ;;  %v585_v30 = vadd.s32 64, %v5677_v11 }
  0x2c   : > { %7676 = vst [vmem:[#allocation3_spill] sm:$0xff] %v5854_v39  ;;  %v1596_v47 = vrot.slane %v5860_v42, 1  ;;  %5108 = vmatprep.mubr.msk.bf16.mxu1 %vm5827_vm13, %v5854_v39  ;;  %v5939_v9 = vpack.c.bf16 %v5903_v63, %v5860_v42  ;;  %vm480_vm11 = vcmp.ge.f32.partialorder %v444_v26, 0.0  ;;  %v516_v36 = vmul.f32 0.22916667, %v444_v26  ;;  %v379_v39 = vld [vmem:[%s5725_s16 + $0x108] sm:$0xff] }
  0x2d   : > { %4675 = vmatpush3.bf16.msra.mxu0 %v5495_v54  ;;  %5107 = vmatpush3.bf16.msra.mxu1 %v5494_v41  ;;  %v5857_v41 = vsel %vm473_vm9, %v437_v2, %v509_v28  ;;  %v5498_v2 = vld [vmem:[%s7557_s3 + $0x48] sm:$0xff]   ;;  %vm478_vm9 = vcmp.ge.f32.partialorder %v442_v52, 0.0 }
  0x2e   : > { %4796 = vmatprep.subr.bf16.mxu1 %v5496_v60  ;;  %v1595_v46 = vrot.slane %v5857_v41, 1  ;;  %v5875_v48 = vpack.c.bf16 %v5857_v41, %v544_v17  ;;  %v1378_v50 = vrot.slane %v5857_v41, 7  ;;  %v400_v60 = vmul.f32 %v5750_v37, %v357_v45 }
  0x2f   : > { %v1655_v15 = vsel %vm7566_vm0, %v1596_v47, %v1597_v4  ;;  %v7687_v17 = vmov 0  ;;  %v5973_v34 = vsel %vm478_vm9, %v442_v52, %v514_v25  ;;  %v5994_v51 = vsel %vm480_vm11, %v444_v26, %v516_v36  ;;  %v5504_v25 = vld [vmem:[%s7557_s3 + $0x60] sm:$0xff]  }
  0x30   : > { %4101 = vmatmul.mubr.msk.bf16.vlgmr.msra.gmra.mrb[0].mxu0 %vm5840_vm14, %v5847_v33  ;;  %v1656_v54 = vsel %vm7566_vm0, %v1595_v46, %v1596_v47  ;;  %v1657_v55 = vsel %vm7566_vm0, %v1594_v20, %v1595_v46  ;;  %v1440_v1 = vsel %vm7563_vm2, %v1377_v19, %v1378_v50  ;;  %v443_v12 = vadd.f32 %v5767_v44, %v400_v60  ;;  %v5499_v20 = vld [vmem:[%s7557_s3 + $0x8] sm:$0xff]  }
  0x31   : > { %2106 = vmatprep.mubr.bf16.mxu0 %v5875_v48  ;;  %v5900_v62 = vpack.c.bf16 %v1656_v54, %v1657_v55  ;;  %v5923_v7 = vpack.c.bf16 %v1440_v1, %v1441_v35  ;;  %v7688_v17 = vsel %vm5950_vm7, 4294967295, %v7687_v17  ;;  %v513_v19 = vmul.f32 0.22916667, %v441_v8  ;;  %v360_v54 = vld [vmem:[%s5725_s16 + $0x70] sm:$0xff]  ;;  %v361_v55 = vld [vmem:[%s5725_s16 + $0x78] sm:$0xff] }
  0x32   : > { %7689 = vst [vmem:[#allocation6_spill] sm:$0xff] %v7688_v17  ;;  %v5957_v21 = vpack.c.bf16 %v1654_v14, %v1655_v15  ;;  %vm479_vm10 = vcmp.ge.f32.partialorder %v443_v12, 0.0  ;;  %v515_v29 = vmul.f32 0.22916667, %v443_v12  ;;  %v1600_v38 = vrot.slane %v5973_v34, 1  ;;  %v5502_v1 = vld [vmem:[%s7557_s3 + $0x58] sm:$0xff]  }
  0x33   : > { %7682 = vst [vmem:[#allocation5_spill] sm:$0xff] %v5900_v62  ;;  %5109 = vmatmul.mubr.msk.bf16.vlgmr.msra.gmra.mrb[0].mxu1 %vm5889_vm4, %v5900_v62  ;;  %v5966_v28 = vsel %vm477_vm8, %v441_v8, %v513_v19  ;;  %v1379_v46 = vrot.slane %v5860_v42, 7  ;;  %v1380_v47 = vrot.slane %v5903_v63, 7  ;;  %v1602_v58 = vrot.slane %v5994_v51, 1  ;;  %vm6031_vm8 = vmpackc.low %vm5917_vm5, %vm7564_vm12  ;;  %v5503_v15 = vld [vmem:[%s7557_s3 + $0x18] sm:$0xff]   ;;  %v376_v17 = vld [vmem:[%s5725_s16 + $0xf0] sm:$0xff] }
  0x34   : > { %4797 = vmatpush3.bf16.msra.mxu1 %v5497_v57  ;;  %7690 = vst [vmem:[#allocation7_spill] sm:$0xff] %v5957_v21  ;;  %5112 = vmatprep.mubr.msk.bf16.mxu1 %vm5950_vm7, %v5957_v21  ;;  %v1599_v35 = vrot.slane %v5966_v28, 1  ;;  %v5985_v45 = vsel %vm479_vm10, %v443_v12, %v515_v29  ;;  %v362_v57 = vld [vmem:[%s5725_s16 + $0x80] sm:$0xff]  ;;  %v402_v41 = vmul.f32 %v5750_v37, %v359_v31  ;;  %v7697_v52 = vmov 0 }
  0x35   : > { %4798 = vmatprep.subr.bf16.mxu1 %v5498_v2  ;;  %v1601_v43 = vrot.slane %v5985_v45, 1  ;;  %v1438_v59 = vsel %vm7563_vm2, %v1379_v46, %v1380_v47  ;;  %v1439_v60 = vsel %vm7563_vm2, %v1378_v50, %v1379_v46  ;;  %v7698_v52 = vsel %vm6031_vm8, 4294967295, %v7697_v52 }
  0x36   : > { %v1653_v49 = vsel %vm7566_vm0, %v1598_v5, %v1599_v35  ;;  %v1652_v42 = vsel %vm7566_vm0, %v1599_v35, %v1600_v38  ;;  %v6023_v8 = vpack.c.bf16 %v1438_v59, %v1439_v60  ;;  %7699 = vst [vmem:[#allocation10_spill] sm:$0xff] %v7698_v52  ;;  %v403_v10 = vmul.f32 %v5750_v37, %v360_v54 }
  0x37   : > { %v6014_v2 = vpack.c.bf16 %v1652_v42, %v1653_v49  ;;  %v1651_v4 = vsel %vm7566_vm0, %v1600_v38, %v1601_v43  ;;  %v1650_v50 = vsel %vm7566_vm0, %v1601_v43, %v1602_v58  ;;  %v708_v12 = vand.u32 15, %v5792_v61  ;;  %v5505_v38 = vld [vmem:[%s7557_s3 + $0x20] sm:$0xff]   ;;  %v5506_v43 = vld [vmem:[%s7557_s3 + $0x68] sm:$0xff]  }
  0x38   : > { %4105 = vmatmul.mubr.msk.bf16.gmra.mrb[4].mxu0 %vm5932_vm6, %v5923_v7  ;;  %4799 = vmatpush3.bf16.msra.mxu1 %v5499_v20  ;;  %v6039_v14 = vpack.c.bf16 %v5966_v28, %v5906_v0  ;;  %v6047_v3 = vpack.c.bf16 %v1650_v50, %v1651_v4  ;;  %v445_v19 = vadd.f32 %v5767_v44, %v402_v41  ;;  %v592_v29 = vadd.s32 120, %v5677_v11  ;;  %v364_v4 = vld [vmem:[%s5725_s16 + $0x90] sm:$0xff] }
  0x39   : > { %2114 = vmatprep.mubr.bf16.mxu0 %v5939_v9  ;;  %4800 = vmatprep.subr.bf16.mxu1 %v5500_v18  ;;  %7694 = vst [vmem:[#allocation9_spill] sm:$0xff] %v6014_v2  ;;  %v404_v20 = vmul.f32 %v5750_v37, %v361_v55  ;;  %v405_v61 = vmul.f32 %v5750_v37, %v362_v57  ;;  %vm6059_vm5 = vcmp.ne.s32.totalorder %v708_v12, 15  ;;  %v673_v49 = vand.u32 15, %v585_v30 }
  0x3a   : > { %7700 = vst [vmem:[#allocation11_spill] sm:$0xff] %v6047_v3  ;;  %v446_v26 = vadd.f32 %v5767_v44, %v403_v10  ;;  %vm481_vm9 = vcmp.ge.f32.partialorder %v445_v19, 0.0  ;;  %v517_v31 = vmul.f32 0.22916667, %v445_v19  ;;  %v1381_v10 = vrot.slane %v5906_v0, 7 }
  0x3b   : > { %5113 = vmatmul.mubr.msk.bf16.gmra.mrb[4].mxu1 %vm5981_vm15, %v6014_v2  ;;  %v447_v35 = vadd.f32 %v5767_v44, %v404_v20  ;;  %v448_v36 = vadd.f32 %v5767_v44, %v405_v61  ;;  %v7571_v12 = vrot.slane %v5966_v28, 7  ;;  %v7705_v61 = vmov 0 }
  0x3c   : > { %4801 = vmatpush3.bf16.msra.mxu1 %v5501_v32  ;;  %5116 = vmatprep.mubr.msk.bf16.mxu1 %vm6031_vm8, %v6047_v3  ;;  %vm482_vm10 = vcmp.ge.f32.partialorder %v446_v26, 0.0  ;;  %v518_v46 = vmul.f32 0.22916667, %v446_v26  ;;  %v722_v32 = vand.u32 15, %v592_v29  ;;  %v6077_v54 = vsel %vm481_vm9, %v445_v19, %v517_v31  ;;  %v5507_v19 = vld [vmem:[%s7557_s3 + $0x28] sm:$0xff]   ;;  %vm6102_vm9 = vmpackc.low %vm6059_vm5, %vm7564_vm12 }
  0x3d   : > { %4802 = vmatprep.subr.bf16.mxu1 %v5502_v1  ;;  %vm483_vm11 = vcmp.ge.f32.partialorder %v447_v35, 0.0  ;;  %vm484_vm1 = vcmp.ge.f32.partialorder %v448_v36, 0.0  ;;  %v519_v55 = vmul.f32 0.22916667, %v447_v35  ;;  %v1603_v42 = vrot.slane %v6077_v54, 1  ;;  %v363_v1 = vld [vmem:[%s5725_s16 + $0x88] sm:$0xff] }
  0x3e   : > { %v6079_v57 = vsel %vm482_vm10, %v446_v26, %v518_v46  ;;  %v520_v59 = vmul.f32 0.22916667, %v448_v36  ;;  %vm6082_vm2 = vcmp.ne.s32.totalorder %v722_v32, 15  ;;  %v7706_v61 = vsel %vm6102_vm9, 4294967295, %v7705_v61  ;;  %v366_v26 = vld [vmem:[%s5725_s16 + $0xa0] sm:$0xff] }
  0x3f   : > { %v1604_v41 = vrot.slane %v6079_v57, 1  ;;  %v6089_v50 = vsel %vm483_vm11, %v447_v35, %v519_v55  ;;  %v1649_v20 = vsel %vm7566_vm0, %v1602_v58, %v1603_v42  ;;  %7707 = vst [vmem:[#allocation12_spill] sm:$0xff] %v7706_v61  ;;  %vm4631_vm10 = vcmp.ne.s32.totalorder %v673_v49, 0  ;;  %v5508_v35 = vld [vmem:[%s7557_s3 + $0x70] sm:$0xff]  }
  0x40   : > { %4109 = vmatmul.mubr.msk.bf16.gmra.mrb[8].mxu0 %vm6019_vm3, %v6023_v8  ;;  %4803 = vmatpush3.bf16.msra.mxu1 %v5503_v15  ;;  %v365_v15 = vld [vmem:[%s5725_s16 + $0x98] sm:$0xff]  ;;  %v1605_v0 = vrot.slane %v6089_v50, 1  ;;  %vm7708_vm5 = vcmp.lt.s32.totalorder %v5677_v11, 1  ;;  %v7713_v63 = vmov 0  ;;  %v406_v46 = vmul.f32 %v5750_v37, %v363_v1 }
  0x41   : > { %2122 = vmatprep.mubr.bf16.mxu0 %v6039_v14  ;;  %4804 = vmatprep.subr.bf16.mxu1 %v5504_v25  ;;  %v6107_v25 = vsel %vm484_vm1, %v448_v36, %v520_v59  ;;  %v1648_v29 = vsel %vm7566_vm0, %v1603_v42, %v1604_v41  ;;  %v1436_v18 = vsel %vm7708_vm5, %v1381_v10, %v7571_v12  ;;  %vm7709_vm11 = vmmov %vm7708_vm5  ;;  %v5509_v42 = vld [vmem:[%s7557_s3 + $0x30] sm:$0xff]   ;;  %v5512_v59 = vld [vmem:[%s7557_s3 + $0x1c0] sm:$0xff]   ;;  %v7764_v21 = vmov 0 }
  0x42   : > { %v7572_v58 = vrot.slane %v6107_v25, 1  ;;  %v1437_v30 = vsel %vm7709_vm11, %v1380_v47, %v1381_v10  ;;  %vm6123_vm1 = vmpackc.low %vm7564_vm12, %vm4631_vm10  ;;  %v6130_v36 = vpack.c.bf16 %v1648_v29, %v1649_v20  ;;  %v407_v49 = vmul.f32 %v5750_v37, %v364_v4  ;;  %v5510_v10 = vld [vmem:[%s7557_s3 + $0x78] sm:$0xff]   ;;  %v5513_v20 = vld [vmem:[%s7557_s3 + $0x180] sm:$0xff]   ;;  %4932 = vmatprep.subr.bf16.mxu0 %v5512_v59 }
  0x43   : > { %vm6137_vm5 = vmpackc.low %vm6082_vm2, %vm7564_vm12  ;;  %v6141_v47 = vpack.c.bf16 %v1436_v18, %v1437_v30  ;;  %v6152_v55 = vpack.c.bf16 %v5985_v45, %v5973_v34  ;;  %v449_v1 = vadd.f32 %v5767_v44, %v406_v46  ;;  %v408_v4 = vmul.f32 %v5750_v37, %v365_v15  ;;  %4933 = vmatpush3.bf16.msra.mxu0 %v5513_v20  ;;  %v6218_v20 = vld [vmem:[%s7557_s3 + $0x80] sm:$0xff]  }
  0x44   : > { %4805 = vmatpush3.bf16.msra.mxu1 %v5505_v38  ;;  %7712 = vst [vmem:[#allocation13_spill] sm:$0xff] %v6130_v36  ;;  %v1647_v38 = vsel %vm7566_vm0, %v1604_v41, %v1605_v0  ;;  %v7714_v63 = vsel %vm6137_vm5, 4294967295, %v7713_v63  ;;  %v1646_v32 = vsel %vm7566_vm0, %v1605_v0, %v7572_v58  ;;  %v596_v41 = vadd.s32 152, %v5677_v11  ;;  %v368_v58 = vld [vmem:[%s5725_s16 + $0xb0] sm:$0xff] }
  0x45   : > { %4806 = vmatprep.subr.bf16.mxu1 %v5506_v43  ;;  %7715 = vst [vmem:[#allocation14_spill] sm:$0xff] %v7714_v63  ;;  %v594_v43 = vadd.s32 136, %v5677_v11  ;;  %5117 = vmatmul.mubr.msk.bf16.gmra.mrb[8].mxu1 %vm6102_vm9, %v6130_v36  ;;  %v6163_v60 = vpack.c.bf16 %v1646_v32, %v1647_v38  ;;  %v450_v0 = vadd.f32 %v5767_v44, %v407_v49  ;;  %v587_v30 = vadd.s32 80, %v5677_v11  ;;  %v5515_v32 = vld [vmem:[%s7557_s3 + $0x1c8] sm:$0xff]   ;;  %v369_v63 = vld [vmem:[%s5725_s16 + $0xb8] sm:$0xff]  ;;  %v372_v36 = vld [vmem:[%s5725_s16 + $0xd0] sm:$0xff] }
  0x46   : > { %v409_v18 = vmul.f32 %v5750_v37, %v366_v26  ;;  %vm485_vm2 = vcmp.ge.f32.partialorder %v449_v1, 0.0  ;;  %v521_v15 = vmul.f32 0.22916667, %v449_v1  ;;  %v451_v38 = vadd.f32 %v5767_v44, %v408_v4  ;;  %v5516_v26 = vld [vmem:[%s7557_s3 + $0x188] sm:$0xff]   ;;  %4934 = vmatprep.subr.bf16.mxu0 %v5515_v32  ;;  %v370_v32 = vld [vmem:[%s5725_s16 + $0xc0] sm:$0xff] }
  0x47   : > { %7716 = vst [vmem:[#allocation15_spill] sm:$0xff] %v6163_v60  ;;  %v736_v29 = vand.u32 15, %v594_v43  ;;  %5120 = vmatprep.mubr.msk.bf16.mxu1 %vm6137_vm5, %v6163_v60  ;;  %v750_v46 = vand.u32 15, %v596_v41  ;;  %vm486_vm10 = vcmp.ge.f32.partialorder %v450_v0, 0.0  ;;  %v7728_v49 = vmov 0  ;;  %4935 = vmatpush3.bf16.msra.mxu0 %v5516_v26 }
  0x48   : > { %4113 = vmatmul.mubr.msk.bf16.gmra.mrb[12].mxu0 %vm6123_vm1, %v6141_v47  ;;  %4807 = vmatpush3.bf16.msra.mxu1 %v5507_v19  ;;  %v522_v19 = vmul.f32 0.22916667, %v450_v0  ;;  %v452_v43 = vadd.f32 %v5767_v44, %v409_v18  ;;  %v6199_v4 = vsel %vm485_vm2, %v449_v1, %v521_v15  ;;  %vm487_vm12 = vcmp.ge.f32.partialorder %v451_v38, 0.0 }
  0x49   : > { %2130 = vmatprep.mubr.bf16.mxu0 %v6152_v55  ;;  %4808 = vmatprep.subr.bf16.mxu1 %v5508_v35  ;;  %vm6191_vm11 = vcmp.ne.s32.totalorder %v736_v29, 15  ;;  %v5511_v35 = vld [vmem:[%s7557_s3 + $0x38] sm:$0xff]   ;;  %v523_v41 = vmul.f32 0.22916667, %v451_v38  ;;  %vm6201_vm0 = vcmp.ne.s32.totalorder %v750_v46, 15  ;;  %v367_v29 = vld [vmem:[%s5725_s16 + $0xa8] sm:$0xff] }
  0x4a   : > { %v6206_v23 = vsel %vm486_vm10, %v450_v0, %v522_v19  ;;  %v1607_v18 = vrot.slane %v6199_v4, 1  ;;  %vm488_vm5 = vcmp.ge.f32.partialorder %v452_v43, 0.0  ;;  %v524_v12 = vmul.f32 0.22916667, %v452_v43 }
  0x4b   : > { %v1608_v59 = vrot.slane %v6206_v23, 1  ;;  %v6211_v1 = vsel %vm487_vm12, %v451_v38, %v523_v41  ;;  %v687_v15 = vand.u32 15, %v587_v30  ;;  %v1383_v46 = vrot.slane %v5973_v34, 7 }
  0x4c   : > { %4809 = vmatpush3.bf16.msra.mxu1 %v5509_v42  ;;  %v7721_v0 = vrot.slane %v6107_v25, 1  ;;  %vm7722_vm2 = vcmp.lt.s32.totalorder %v5677_v11, 7  ;;  %vm7723_vm10 = vmmov 1   ;;  %v7724_v38 = vmov 0 }
  0x4d   : > { %4810 = vmatprep.subr.bf16.mxu1 %v5510_v10  ;;  %vm6227_vm12 = vmpackc.low %vm6191_vm11, %vm7723_vm10  ;;  %v6231_v34 = vsel %vm488_vm5, %v452_v43, %v524_v12  ;;  %v1609_v10 = vrot.slane %v6211_v1, 1  ;;  %v7581_v30 = vrot.slane %v5985_v45, 7  ;;  %v7731_v12 = vrot.slane %v5966_v28, 7 }
  0x4e   : > { %v1645_v42 = vsel %vm7722_vm2, %v7721_v0, %v1607_v18  ;;  %v7725_v38 = vsel %vm6227_vm12, 4294967295, %v7724_v38  ;;  %vm7727_vm9 = vmmov %vm7722_vm2  ;;  %v1610_v41 = vrot.slane %v6231_v34, 1  ;;  %vm7732_vm5 = vcmp.lt.s32.totalorder %v5677_v11, 1 }
  0x4f   : > { %7726 = vst [vmem:[#allocation16_spill] sm:$0xff] %v7725_v38  ;;  %v1644_v19 = vsel %vm7727_vm9, %v1607_v18, %v1608_v59  ;;  %vm6242_vm2 = vmpackc.low %vm6201_vm0, %vm7723_vm10  ;;  %v1435_v43 = vsel %vm7732_vm5, %v7731_v12, %v1383_v46  ;;  %vm4632_vm11 = vcmp.ne.s32.totalorder %v687_v15, 0  ;;  %v5518_v18 = vld [vmem:[%s7557_s3 + $0x1d0] sm:$0xff]   ;;  %v1643_v13 = vsel %vm7727_vm9, %v1608_v59, %v1609_v10 }
  0x50   : > { %v7729_v49 = vsel %vm6242_vm2, 4294967295, %v7728_v49  ;;  %v6253_v0 = vpack.c.bf16 %v1644_v19, %v1645_v42  ;;  %vm7734_vm0 = vmmov %vm7732_vm5  ;;  %v410_v26 = vmul.f32 %v5750_v37, %v367_v29  ;;  %4811 = vmatpush3.bf16.msra.mxu1 %v5511_v35  ;;  %v411_v59 = vmul.f32 %v5750_v37, %v368_v58  ;;  %4936 = vmatprep.subr.bf16.mxu0 %v5518_v18 }
  0x51   : > { %7730 = vst [vmem:[#allocation17_spill] sm:$0xff] %v7729_v49  ;;  %v1434_v60 = vsel %vm7734_vm0, %v1383_v46, %v7581_v30  ;;  %vm6262_vm8 = vmpackc.low %vm7723_vm10, %vm4632_vm11  ;;  %v598_v19 = vadd.s32 168, %v5677_v11  ;;  %5140 = vmatprep.subr.bf16.mxu1 %v6218_v20  ;;  %v5519_v46 = vld [vmem:[%s7557_s3 + $0x190] sm:$0xff]   ;;  %v6285_v58 = vpack.c.bf16 %v6077_v54, %v5994_v51  ;;  %v412_v29 = vmul.f32 %v5750_v37, %v369_v63 }
  0x52   : > { %7733 = vst [vmem:[#allocation18_spill] sm:$0xff] %v6253_v0  ;;  %vm7737_vm5 = vmmov %vm7727_vm9  ;;  %v6269_v42 = vpack.c.bf16 %v1434_v60, %v1435_v43  ;;  %5121 = vmatmul.mubr.msk.bf16.gmra.mrb[12].mxu1 %vm6227_vm12, %v6253_v0  ;;  %v453_v60 = vadd.f32 %v5767_v44, %v410_v26  ;;  %v454_v12 = vadd.f32 %v5767_v44, %v411_v59  ;;  %v5522_v26 = vld [vmem:[%s7557_s3 + $0x198] sm:$0xff]   ;;  %v589_v59 = vadd.s32 96, %v5677_v11  ;;  %v371_v0 = vld [vmem:[%s5725_s16 + $0xc8] sm:$0xff] }
  0x53   : > { %v1642_v15 = vsel %vm7737_vm5, %v1609_v10, %v1610_v41  ;;  %v5521_v10 = vld [vmem:[%s7557_s3 + $0x1d8] sm:$0xff]   ;;  %v764_v43 = vand.u32 15, %v598_v19  ;;  %v413_v18 = vmul.f32 %v5750_v37, %v370_v32  ;;  %4937 = vmatpush3.bf16.msra.mxu0 %v5519_v46  ;;  %vm7741_vm12 = vcmp.lt.s32.totalorder %v5677_v11, 7 }
  0x54   : > { %v6280_v35 = vpack.c.bf16 %v1642_v15, %v1643_v13  ;;  %4117 = vmatmul.mubr.msk.bf16.gmra.mrb[16].mxu0 %vm6262_vm8, %v6269_v42  ;;  %v600_v13 = vadd.s32 184, %v5677_v11  ;;  %vm489_vm11 = vcmp.ge.f32.partialorder %v453_v60, 0.0  ;;  %v525_v63 = vmul.f32 0.22916667, %v453_v60  ;;  %4938 = vmatprep.subr.bf16.mxu0 %v5521_v10 }
  0x55   : > { %2138 = vmatprep.mubr.bf16.mxu0 %v6285_v58  ;;  %v455_v15 = vadd.f32 %v5767_v44, %v412_v29  ;;  %vm490_vm9 = vcmp.ge.f32.partialorder %v454_v12, 0.0  ;;  %v526_v32 = vmul.f32 0.22916667, %v454_v12  ;;  %vm6306_vm0 = vcmp.ne.s32.totalorder %v764_v43, 15 }
  0x56   : > { %7738 = vst [vmem:[#allocation19_spill] sm:$0xff] %v6280_v35  ;;  %5124 = vmatprep.mubr.msk.bf16.mxu1 %vm6242_vm2, %v6280_v35  ;;  %v456_v30 = vadd.f32 %v5767_v44, %v413_v18  ;;  %v6311_v49 = vsel %vm489_vm11, %v453_v60, %v525_v63  ;;  %v778_v38 = vand.u32 15, %v600_v13  ;;  %v701_v46 = vand.u32 15, %v589_v59  ;;  %v5524_v60 = vld [vmem:[%s7557_s3 + $0x1e0] sm:$0xff]   ;;  %v373_v63 = vld [vmem:[%s5725_s16 + $0xd8] sm:$0xff] }
  0x57   : > { %vm491_vm5 = vcmp.ge.f32.partialorder %v455_v15, 0.0  ;;  %v527_v35 = vmul.f32 0.22916667, %v455_v15  ;;  %v6314_v29 = vsel %vm490_vm9, %v454_v12, %v526_v32  ;;  %v1611_v61 = vrot.slane %v6311_v49, 1  ;;  %vm6329_vm9 = vmpackc.low %vm6306_vm0, %vm7723_vm10  ;;  %4939 = vmatpush3.bf16.msra.mxu0 %v5522_v26 }
  0x58   : > { %vm492_vm2 = vcmp.ge.f32.partialorder %v456_v30, 0.0  ;;  %v528_v43 = vmul.f32 0.22916667, %v456_v30  ;;  %v1612_v52 = vrot.slane %v6314_v29, 1  ;;  %vm4654_vm11 = vcmp.ne.s32.totalorder %v778_v38, 15  ;;  %4940 = vmatprep.subr.bf16.mxu0 %v5524_v60 }
  0x59   : > { %v6319_v18 = vsel %vm491_vm5, %v455_v15, %v527_v35  ;;  %v1641_v10 = vsel %vm7741_vm12, %v1610_v41, %v1611_v61  ;;  %v7742_v12 = vmov 0  ;;  %v1385_v38 = vrot.slane %v5994_v51, 7  ;;  %v374_v15 = vld [vmem:[%s5725_s16 + $0xe0] sm:$0xff]  ;;  %vm7745_vm5 = vmmov %vm7741_vm12 }
  0x5a   : > { %v7743_v12 = vsel %vm6329_vm9, 4294967295, %v7742_v12  ;;  %v6333_v13 = vsel %vm492_vm2, %v456_v30, %v528_v43  ;;  %v1613_v35 = vrot.slane %v6319_v18, 1  ;;  %v1640_v59 = vsel %vm7745_vm5, %v1611_v61, %v1612_v52  ;;  %vm6343_vm12 = vmpackc.low %vm4654_vm11, %vm7723_vm10  ;;  %v5525_v51 = vld [vmem:[%s7557_s3 + $0x1a0] sm:$0xff]  }
  0x5b   : > { %7744 = vst [vmem:[#allocation20_spill] sm:$0xff] %v7743_v12  ;;  %v1614_v41 = vrot.slane %v6333_v13, 1  ;;  %v7746_v32 = vmov 0  ;;  %v7604_v30 = vrot.slane %v6077_v54, 7  ;;  %vm4633_vm2 = vcmp.ne.s32.totalorder %v701_v46, 0  ;;  %vm7750_vm0 = vmmov %vm7745_vm5  ;;  %v5526_v46 = vld [vmem:[%s7557_s3 + $0x1e8] sm:$0xff]   ;;  %4941 = vmatpush3.bf16.msra.mxu0 %v5525_v51 }
  0x5c   : > { %v7747_v32 = vsel %vm6343_vm12, 4294967295, %v7746_v32  ;;  %v6351_v19 = vpack.c.bf16 %v1640_v59, %v1641_v10  ;;  %v1639_v61 = vsel %vm7750_vm0, %v1612_v52, %v1613_v35  ;;  %v7751_v26 = vrot.slane %v5985_v45, 7  ;;  %vm7753_vm5 = vmmov %vm7750_vm0  ;;  %4942 = vmatprep.subr.bf16.mxu0 %v5526_v46  ;;  %v5529_v46 = vld [vmem:[%s7557_s3 + $0x1b0] sm:$0xff]   ;;  %v7835_v45 = vld [vmem:[#allocation5_spill] sm:$0xff] }
  0x5d   : > { %7748 = vst [vmem:[#allocation21_spill] sm:$0xff] %v7747_v32  ;;  %vm7752_vm11 = vcmp.lt.s32.totalorder %v5677_v11, 1  ;;  %v414_v3 = vmul.f32 %v5750_v37, %v371_v0  ;;  %v1638_v60 = vsel %vm7753_vm5, %v1613_v35, %v1614_v41  ;;  %vm6370_vm0 = vmpackc.low %vm7723_vm10, %vm4633_vm2  ;;  %v415_v52 = vmul.f32 %v5750_v37, %v372_v36 }
  0x5e   : > { %7749 = vst [vmem:[#allocation22_spill] sm:$0xff] %v6351_v19  ;;  %v1433_v43 = vsel %vm7752_vm11, %v7751_v26, %v1385_v38  ;;  %vm7754_vm15 = vmmov %vm7752_vm11  ;;  %v602_v0 = vadd.s32 200, %v5677_v11  ;;  %5125 = vmatmul.mubr.msk.bf16.gmra.mrb[16].mxu1 %vm6329_vm9, %v6351_v19  ;;  %v6379_v59 = vpack.c.bf16 %v1638_v60, %v1639_v61  ;;  %v416_v36 = vmul.f32 %v5750_v37, %v373_v63  ;;  %v5527_v61 = vld [vmem:[%s7557_s3 + $0x1a8] sm:$0xff]  }
  0x5f   : > { %v1432_v10 = vsel %vm7754_vm15, %v1385_v38, %v7604_v30  ;;  %v457_v26 = vadd.f32 %v5767_v44, %v414_v3  ;;  %v6386_v38 = vpack.c.bf16 %v6089_v50, %v6079_v57  ;;  %v458_v30 = vadd.f32 %v5767_v44, %v415_v52  ;;  %v375_v19 = vld [vmem:[%s5725_s16 + $0xe8] sm:$0xff]  ;;  %4943 = vmatpush3.bf16.msra.mxu0 %v5527_v61 }
  0x60   : > { %7757 = vst [vmem:[#allocation23_spill] sm:$0xff] %v6379_v59  ;;  %v6381_v35 = vpack.c.bf16 %v1432_v10, %v1433_v43  ;;  %v792_v53 = vand.u32 15, %v602_v0  ;;  %v417_v2 = vmul.f32 %v5750_v37, %v374_v15  ;;  %5128 = vmatprep.mubr.msk.bf16.mxu1 %vm6343_vm12, %v6379_v59  ;;  %v604_v43 = vadd.s32 216, %v5677_v11  ;;  %v5528_v37 = vld [vmem:[%s7557_s3 + $0x1f0] sm:$0xff]  }
  0x61   : > { %vm493_vm15 = vcmp.ge.f32.partialorder %v457_v26, 0.0  ;;  %v529_v3 = vmul.f32 0.22916667, %v457_v26  ;;  %v591_v63 = vadd.s32 112, %v5677_v11  ;;  %vm494_vm2 = vcmp.ge.f32.partialorder %v458_v30, 0.0  ;;  %4944 = vmatprep.subr.bf16.mxu0 %v5528_v37 }
  0x62   : > { %4121 = vmatmul.mubr.msk.bf16.gmra.mrb[20].mxu0 %vm6370_vm0, %v6381_v35  ;;  %v530_v15 = vmul.f32 0.22916667, %v458_v30  ;;  %vm6405_vm11 = vcmp.ne.s32.totalorder %v792_v53, 15  ;;  %v459_v60 = vadd.f32 %v5767_v44, %v416_v36  ;;  %v460_v52 = vadd.f32 %v5767_v44, %v417_v2  ;;  %v5530_v36 = vld [vmem:[%s7557_s3 + $0x1f8] sm:$0xff]   ;;  %v5553_v2 = vld [vmem:[%s7556_s2] ss:$0 sm:$0xff] }
  0x63   : > { %2146 = vmatprep.mubr.bf16.mxu0 %v6386_v38  ;;  %v6411_v10 = vsel %vm493_vm15, %v457_v26, %v529_v3  ;;  %v806_v0 = vand.u32 15, %v604_v43  ;;  %v715_v32 = vand.u32 15, %v591_v63  ;;  %v1387_v43 = vrot.slane %v6079_v57, 7  ;;  %vm6446_vm7 = vmpackc.low %vm6405_vm11, %vm7723_vm10  ;;  %4945 = vmatpush3.bf16.msra.mxu0 %v5529_v46 }
  0x64   : > { %v6414_v59 = vsel %vm494_vm2, %v458_v30, %v530_v15  ;;  %v1615_v12 = vrot.slane %v6411_v10, 1  ;;  %vm495_vm5 = vcmp.ge.f32.partialorder %v459_v60, 0.0  ;;  %v531_v53 = vmul.f32 0.22916667, %v459_v60  ;;  %v377_v30 = vld [vmem:[%s5725_s16 + $0xf8] sm:$0xff]  ;;  %v378_v15 = vld [vmem:[%s5725_s16 + $0x100] sm:$0xff]  ;;  %4946 = vmatprep.subr.bf16.mxu0 %v5530_v36 }
  0x65   : > { %v1616_v26 = vrot.slane %v6414_v59, 1  ;;  %vm496_vm15 = vcmp.ge.f32.partialorder %v460_v52, 0.0  ;;  %v532_v44 = vmul.f32 0.22916667, %v460_v52  ;;  %vm6423_vm12 = vcmp.ne.s32.totalorder %v806_v0, 15  ;;  %v5531_v0 = vld [vmem:[%s7557_s3 + $0x1b8] sm:$0xff]  }
  0x66   : > { %vm7762_vm2 = vcmp.lt.s32.totalorder %v5677_v11, 7  ;;  %v6433_v3 = vsel %vm495_vm5, %v459_v60, %v531_v53  ;;  %v7629_v63 = vrot.slane %v6089_v50, 7  ;;  %v7765_v21 = vsel %vm6446_vm7, 4294967295, %v7764_v21 }
  0x67   : > { %v1637_v61 = vsel %vm7762_vm2, %v1614_v41, %v1615_v12  ;;  %vm7763_vm9 = vmmov %vm7762_vm2  ;;  %7766 = vst [vmem:[#allocation24_spill] sm:$0xff] %v7765_v21  ;;  %v6450_v41 = vsel %vm496_vm15, %v460_v52, %v532_v44  ;;  %v1617_v57 = vrot.slane %v6433_v3, 1  ;;  %vm4634_vm5 = vcmp.ne.s32.totalorder %v715_v32, 0  ;;  %4947 = vmatpush3.bf16.msra.mxu0 %v5531_v0 }
  0x68   : > { %v1636_v37 = vsel %vm7763_vm9, %v1615_v12, %v1616_v26  ;;  %v1618_v53 = vrot.slane %v6450_v41, 1  ;;  %vm7768_vm9 = vcmp.lt.s32.totalorder %v5677_v11, 1  ;;  %v7769_v51 = vrot.slane %v6077_v54, 7  ;;  %vm6465_vm15 = vmpackc.low %vm7723_vm10, %vm4634_vm5 }
  0x69   : > { %v6453_v60 = vpack.c.bf16 %v1636_v37, %v1637_v61  ;;  %v1430_v12 = vsel %vm7768_vm9, %v1387_v43, %v7629_v63  ;;  %vm7770_vm11 = vmmov %vm7768_vm9  ;;  %v1635_v32 = vsel %vm7762_vm2, %v1616_v26, %v1617_v57  ;;  %v5552_v61 = vld [vmem:[%s7555_s1] ss:$0 sm:$0xff]  ;;  %v606_v46 = vadd.s32 232, %v5677_v11 }
  0x6a   : > { %v1431_v56 = vsel %vm7770_vm11, %v7769_v51, %v1387_v43  ;;  %v418_v37 = vmul.f32 %v5552_v61, %v375_v19  ;;  %v419_v54 = vmul.f32 %v5552_v61, %v376_v17  ;;  %vm7773_vm5 = vmmov %vm7762_vm2  ;;  %v6491_v17 = vpack.c.bf16 %v6199_v4, %v6107_v25 }
  0x6b   : > { %7767 = vst [vmem:[#allocation25_spill] sm:$0xff] %v6453_v60  ;;  %v6471_v44 = vpack.c.bf16 %v1430_v12, %v1431_v56  ;;  %5129 = vmatmul.mubr.msk.bf16.gmra.mrb[20].mxu1 %vm6446_vm7, %v6453_v60  ;;  %v1634_v43 = vsel %vm7773_vm5, %v1617_v57, %v1618_v53  ;;  %vm6484_vm9 = vmpackc.low %vm6423_vm12, %vm7723_vm10  ;;  %v7774_v56 = vmov 0  ;;  %v420_v19 = vmul.f32 %v5552_v61, %v377_v30 }
  0x6c   : > { %v7775_v56 = vsel %vm6484_vm9, 4294967295, %v7774_v56  ;;  %v6493_v26 = vpack.c.bf16 %v1634_v43, %v1635_v32  ;;  %v461_v36 = vadd.f32 %v5553_v2, %v418_v37  ;;  %v462_v57 = vadd.f32 %v5553_v2, %v419_v54 }
  0x6d   : > { %7776 = vst [vmem:[#allocation26_spill] sm:$0xff] %v7775_v56  ;;  %4125 = vmatmul.mubr.msk.bf16.gmra.mrb[24].mxu0 %vm6465_vm15, %v6471_v44  ;;  %v421_v12 = vmul.f32 %v5552_v61, %v378_v15  ;;  %v820_v51 = vand.u32 15, %v606_v46  ;;  %v463_v63 = vadd.f32 %v5553_v2, %v420_v19  ;;  %v608_v21 = vadd.s32 248, %v5677_v11 }
  0x6e   : > { %7777 = vst [vmem:[#allocation27_spill] sm:$0xff] %v6493_v26  ;;  %2154 = vmatprep.mubr.bf16.mxu0 %v6491_v17  ;;  %v593_v30 = vadd.s32 128, %v5677_v11  ;;  %5132 = vmatprep.mubr.msk.bf16.mxu1 %vm6484_vm9, %v6493_v26  ;;  %vm497_vm12 = vcmp.ge.f32.partialorder %v461_v36, 0.0  ;;  %vm498_vm11 = vcmp.ge.f32.partialorder %v462_v57, 0.0  ;;  %v533_v32 = vmul.f32 0.22916667, %v461_v36 }
  0x6f   : > { %v534_v43 = vmul.f32 0.22916667, %v462_v57  ;;  %vm6507_vm2 = vcmp.ne.s32.totalorder %v820_v51, 15  ;;  %v464_v15 = vadd.f32 %v5553_v2, %v421_v12  ;;  %vm499_vm5 = vcmp.ge.f32.partialorder %v463_v63, 0.0 }
  0x70   : > { %v535_v54 = vmul.f32 0.22916667, %v463_v63  ;;  %v6511_v46 = vsel %vm497_vm12, %v461_v36, %v533_v32  ;;  %v834_v0 = vand.u32 15, %v608_v21  ;;  %v729_v60 = vand.u32 15, %v593_v30  ;;  %vm6529_vm4 = vmpackc.low %vm6507_vm2, %vm7723_vm10 }
  0x71   : > { %v6513_v19 = vsel %vm498_vm11, %v462_v57, %v534_v43  ;;  %v1619_v56 = vrot.slane %v6511_v46, 1  ;;  %vm500_vm9 = vcmp.ge.f32.partialorder %v464_v15, 0.0  ;;  %v536_v62 = vmul.f32 0.22916667, %v464_v15 }
  0x72   : > { %v1620_v26 = vrot.slane %v6513_v19, 1  ;;  %v6517_v51 = vsel %vm499_vm5, %v463_v63, %v535_v54  ;;  %vm4658_vm7 = vcmp.ne.s32.totalorder %v834_v0, 15  ;;  %v1389_v22 = vrot.slane %v6107_v25, 7 }
  0x73   : > { %v1390_v12 = vrot.slane %v6199_v4, 7  ;;  %vm7780_vm12 = vcmp.lt.s32.totalorder %v5677_v11, 7  ;;  %v7782_v57 = vmov 0  ;;  %v6533_v63 = vsel %vm500_vm9, %v464_v15, %v536_v62  ;;  %vm6548_vm9 = vmpackc.low %vm4658_vm7, %vm7723_vm10 }
  0x74   : > { %v1632_v36 = vsel %vm7780_vm12, %v1619_v56, %v1620_v26  ;;  %vm7781_vm11 = vmmov %vm7780_vm12  ;;  %v7783_v57 = vsel %vm6529_vm4, 4294967295, %v7782_v57  ;;  %v1621_v25 = vrot.slane %v6517_v51, 1  ;;  %v1622_v4 = vrot.slane %v6533_v63, 1 }
  0x75   : > { %v1633_v21 = vsel %vm7781_vm11, %v1618_v53, %v1619_v56  ;;  %vm7784_vm5 = vcmp.lt.s32.totalorder %v5677_v11, 1  ;;  %v7785_v53 = vrot.slane %v6089_v50, 7  ;;  %vm7787_vm2 = vmmov %vm7781_vm11  ;;  %v7788_v62 = vmov 0 }
  0x76   : > { %v6536_v30 = vpack.c.bf16 %v1632_v36, %v1633_v21  ;;  %v1428_v32 = vsel %vm7784_vm5, %v1389_v22, %v1390_v12  ;;  %vm7786_vm12 = vmmov %vm7784_vm5  ;;  %v1631_v43 = vsel %vm7787_vm2, %v1620_v26, %v1621_v25  ;;  %v7789_v62 = vsel %vm6548_vm9, 4294967295, %v7788_v62 }
  0x77   : > { %v1429_v56 = vsel %vm7786_vm12, %v7785_v53, %v1389_v22  ;;  %vm4635_vm11 = vcmp.ne.s32.totalorder %v729_v60, 0  ;;  %v422_v15 = vmul.f32 %v5552_v61, %v379_v39  ;;  %vm7790_vm5 = vmmov %vm7787_vm2  ;;  %v610_v26 = vadd.s32 264, %v5677_v11 }
  0x78   : > { %v6552_v37 = vpack.c.bf16 %v1428_v32, %v1429_v56  ;;  %5133 = vmatmul.mubr.msk.bf16.gmra.mrb[24].mxu1 %vm6529_vm4, %v6536_v30  ;;  %v1630_v50 = vsel %vm7790_vm5, %v1621_v25, %v1622_v4  ;;  %vm6560_vm12 = vmpackc.low %vm7723_vm10, %vm4635_vm11  ;;  %v6567_v60 = vpack.c.bf16 %v6211_v1, %v6206_v23  ;;  %v595_v61 = vadd.s32 144, %v5677_v11 }
  0x79   : > { %v6569_v54 = vpack.c.bf16 %v1630_v50, %v1631_v43  ;;  %v465_v39 = vadd.f32 %v5553_v2, %v422_v15  ;;  %v848_v0 = vand.u32 15, %v610_v26  ;;  %v1391_v36 = vrot.slane %v6206_v23, 7  ;;  %v7838_v26 = vld [vmem:[#allocation7_spill] sm:$0xff] }
  0x7a   : > { %4129 = vmatmul.mubr.msk.bf16.gmra.mrb[28].mxu0 %vm6560_vm12, %v6552_v37  ;;  %v1392_v21 = vrot.slane %v6211_v1, 7  ;;  %v743_v32 = vand.u32 15, %v595_v61  ;;  %v7793_v53 = vmov 0.0   ;;  %vm7794_vm11 = vcmp.lt.s32.totalorder %v5677_v11, 1 }
  0x7b   : > { %2162 = vmatprep.mubr.bf16.mxu0 %v6567_v60  ;;  %5136 = vmatprep.mubr.msk.bf16.mxu1 %vm6548_vm9, %v6569_v54  ;;  %vm501_vm7 = vcmp.ge.f32.partialorder %v465_v39, 0.0  ;;  %v537_v25 = vmul.f32 0.22916667, %v465_v39  ;;  %v6582_v56 = vrot.slane %v7793_v53, 1  ;;  %vm4659_vm2 = vcmp.ne.s32.totalorder %v848_v0, 15  ;;  %vm7795_vm5 = vmmov %vm7794_vm11 }
  0x7c   : > { %v1426_v2 = vsel %vm7794_vm11, %v1391_v36, %v1392_v21  ;;  %v1427_v43 = vsel %vm7795_vm5, %v1390_v12, %v1391_v36  ;;  %vm4636_vm4 = vcmp.ne.s32.totalorder %v743_v32, 0  ;;  %v597_v15 = vadd.s32 160, %v5677_v11 }
  0x7d   : > { %v6588_v23 = vsel %vm501_vm7, %v465_v39, %v537_v25  ;;  %v6590_v1 = vpack.c.bf16 %v1426_v2, %v1427_v43  ;;  %vm6595_vm9 = vmpackc.low %vm7723_vm10, %vm4636_vm4  ;;  %v6601_v61 = vpack.c.bf16 %v6311_v49, %v6231_v34  ;;  %v1393_v12 = vrot.slane %v6231_v34, 7 }
  0x7e   : > { %v1623_v50 = vrot.slane %v6588_v23, 1  ;;  %v1394_v39 = vrot.slane %v6311_v49, 7  ;;  %vm6606_vm7 = vmpackc.low %vm4659_vm2, %vm7723_vm10  ;;  %v7798_v0 = vmov 0  ;;  %v757_v36 = vand.u32 15, %v597_v15 }
  0x7f   : > { %v7799_v0 = vsel %vm6606_vm7, 4294967295, %v7798_v0  ;;  %vm7800_vm4 = vcmp.lt.s32.totalorder %v5677_v11, 7  ;;  %v617_v34 = vand.u32 15, %v5677_v11  ;;  %vm7802_vm2 = vmmov %vm7795_vm5  ;;  %v7654_v43 = vmov 0.0|0.0  }
  0x80   : > { %v1628_v25 = vsel %vm7800_vm4, %v1623_v50, %v6582_v56  ;;  %vm7801_vm11 = vmmov %vm7800_vm4  ;;  %v1424_v49 = vsel %vm7802_vm2, %v1393_v12, %v1394_v39  ;;  %vm4637_vm4 = vcmp.ne.s32.totalorder %v757_v36, 0  ;;  %v1396_v36 = vrot.slane %v6319_v18, 7 }
  0x81   : > { %v1629_v32 = vsel %vm7801_vm11, %v1622_v4, %v1623_v50  ;;  %vm7803_vm5 = vmmov %vm7802_vm2  ;;  %v599_v4 = vadd.s32 176, %v5677_v11  ;;  %vm4624_vm11 = vcmp.ne.s32.totalorder %v617_v34, 0  ;;  %v5517_v34 = vld [vmem:[%s7557_s3 + $0x88] sm:$0xff]   ;;  %v6705_v27 = vpack.c.bf16 %v6433_v3, %v6414_v59  ;;  %v5540_v50 = vld [vmem:[%s7557_s3 + $0x220] sm:$0xff]  }
  0x82   : > { %v6615_v53 = vpack.c.bf16 %v1628_v25, %v1629_v32  ;;  %4133 = vmatmul.mubr.msk.bf16.gmra.mrb[32].mxu0 %vm6595_vm9, %v6590_v1  ;;  %v1425_v2 = vsel %vm7803_vm5, %v1392_v21, %v1393_v12  ;;  %vm6634_vm13 = vmpackc.low %vm7723_vm10, %vm4637_vm4  ;;  %v6640_v21 = vpack.c.bf16 %v6319_v18, %v6314_v29  ;;  %v1395_v12 = vrot.slane %v6314_v29, 7 }
  0x83   : > { %2170 = vmatprep.mubr.bf16.mxu0 %v6601_v61  ;;  %v6631_v15 = vpack.c.bf16 %v1424_v49, %v1425_v2  ;;  %v4252_v25 = vpack.c.bf16 %v5707_v24, %v5707_v24  ;;  %v771_v32 = vand.u32 15, %v599_v4  ;;  %vm4251_vm2 = vmpackc.low %vm7723_vm10, %vm4624_vm11  ;;  %v601_v49 = vadd.s32 192, %v5677_v11  ;;  %v5520_v4 = vld [vmem:[%s7557_s3 + $0x90] sm:$0xff]  }
  0x84   : > { %5137 = vmatmul.mubr.msk.bf16.gmra.mrb[28].mxu1 %vm6606_vm7, %v6615_v53  ;;  %v1422_v29 = vsel %vm7803_vm5, %v1395_v12, %v1396_v36  ;;  %vm7806_vm4 = vmmov %vm7803_vm5 }
  0x85   : > { %2564 = vmatprep.mubr.bf16.mxu1 %v7654_v43  ;;  %v1423_v18 = vsel %vm7806_vm4, %v1394_v39, %v1395_v12  ;;  %vm4638_vm7 = vcmp.ne.s32.totalorder %v771_v32, 0  ;;  %v6673_v39 = vpack.c.bf16 %v6411_v10, %v6333_v13  ;;  %v785_v12 = vand.u32 15, %v601_v49  ;;  %v7841_v43 = vld [vmem:[#allocation9_spill] sm:$0xff] }
  0x86   : > { %v6661_v2 = vpack.c.bf16 %v1422_v29, %v1423_v18  ;;  %vm6667_vm11 = vmpackc.low %vm7723_vm10, %vm4638_vm7  ;;  %v5532_v29 = vld [vmem:[%s7557_s3 + $0xa0] sm:$0xff]   ;;  %v1400_v18 = vrot.slane %v6433_v3, 7  ;;  %v605_v3 = vadd.s32 224, %v5677_v11 }
  0x87   : > { %vm7809_vm7 = vmmov %vm7806_vm4  ;;  %vm4639_vm5 = vcmp.ne.s32.totalorder %v785_v12, 0 }
  0x8a   : > { %4137 = vmatmul.mubr.msk.bf16.gmra.mrb[36].mxu0 %vm6634_vm13, %v6631_v15 }
  0x8b   : > { %2178 = vmatprep.mubr.bf16.mxu0 %v6640_v21 }
  0x8c   : > { %4253 = vmatmul.mubr.msk.bf16.vlgmr.msra.gmra.mrb[32].mxu1 %vm4251_vm2, %v4252_v25  ;;  %v5523_v25 = vld [vmem:[%s7557_s3 + $0x98] sm:$0xff]   ;;  %vm7810_vm2 = vmmov %vm7806_vm4 }
  0x8d   : > { %5141 = vmatpush3.bf16.msra.mxu1 %v6218_v20  ;;  %2572 = vmatprep.mubr.bf16.mxu1 %v5813_v16  ;;  %v1397_v20 = vrot.slane %v6333_v13, 7  ;;  %v1398_v16 = vrot.slane %v6411_v10, 7  ;;  %v603_v10 = vadd.s32 208, %v5677_v11  ;;  %vm6699_vm4 = vmpackc.low %vm7723_vm10, %vm4639_vm5 }
  0x8e   : > { %5142 = vmatprep.subr.bf16.mxu1 %v5517_v34 }
  0x8f   : > { %v1420_v32 = vsel %vm7809_vm7, %v1397_v20, %v1398_v16  ;;  %v1421_v13 = vsel %vm7810_vm2, %v1396_v36, %v1397_v20  ;;  %v799_v49 = vand.u32 15, %v603_v10  ;;  %vm7814_vm7 = vmmov %vm7810_vm2  ;;  %v1402_v10 = vrot.slane %v6511_v46, 7 }
  0x91   : > { %5143 = vmatpush3.bf16.msra.mxu1 %v5517_v34  ;;  %v6693_v34 = vpack.c.bf16 %v1420_v32, %v1421_v13  ;;  %v6737_v32 = vpack.c.bf16 %v6511_v46, %v6450_v41  ;;  %v1401_v13 = vrot.slane %v6450_v41, 7  ;;  %v607_v46 = vadd.s32 240, %v5677_v11 }
  0x92   : > { %4141 = vmatmul.mubr.msk.bf16.gmra.mrb[40].mxu0 %vm6667_vm11, %v6661_v2  ;;  %5144 = vmatprep.subr.bf16.mxu1 %v5520_v4 }
  0x93   : > { %2186 = vmatprep.mubr.bf16.mxu0 %v6673_v39  ;;  %v1417_v41 = vsel %vm7814_vm7, %v1400_v18, %v1401_v13 }
  0x94   : > { %4257 = vmatmul.mubr.msk.bf16.gmra.mrb[36].mxu1 %vm5840_vm14, %v5847_v33  ;;  %v1399_v33 = vrot.slane %v6414_v59, 7  ;;  %vm7813_vm14 = vmmov %vm7810_vm2  ;;  %vm4640_vm2 = vcmp.ne.s32.totalorder %v799_v49, 0 }
  0x95   : > { %2580 = vmatprep.mubr.bf16.mxu1 %v5875_v48  ;;  %5145 = vmatpush3.bf16.msra.mxu1 %v5520_v4  ;;  %v5533_v4 = vld [vmem:[%s7557_s3 + $0xa8] sm:$0xff]   ;;  %vm6731_vm5 = vmpackc.low %vm7723_vm10, %vm4640_vm2 }
  0x96   : > { %5146 = vmatprep.subr.bf16.mxu1 %v5523_v25  ;;  %v1418_v20 = vsel %vm7813_vm14, %v1399_v33, %v1400_v18  ;;  %v1419_v59 = vsel %vm7814_vm7, %v1398_v16, %v1399_v33  ;;  %v7815_v16 = vmov 0  ;;  %v5535_v33 = vld [vmem:[%s7557_s3 + $0xb8] sm:$0xff]   ;;  %vm7817_vm14 = vmmov %vm7814_vm7  ;;  %v7818_v18 = vmov 0 }
  0x97   : > { %v6725_v12 = vpack.c.bf16 %v1418_v20, %v1419_v59  ;;  %v7816_v16 = vsel %vm6731_vm5, 4294967295, %v7815_v16  ;;  %v1416_v49 = vsel %vm7817_vm14, %v1401_v13, %v1402_v10  ;;  %v6762_v20 = vld [vmem:[%s7557_s3 + $0x200] sm:$0xff]   ;;  %v6771_v59 = vpack.c.bf16 %v6517_v51, %v6513_v19 }
  0x98   : > { %v827_v13 = vand.u32 15, %v607_v46  ;;  %v1406_v46 = vrot.slane %v6588_v23, 7 }
  0x99   : > { %5147 = vmatpush3.bf16.msra.mxu1 %v5523_v25  ;;  %v5534_v25 = vld [vmem:[%s7557_s3 + $0xb0] sm:$0xff]  }
  0x9a   : > { %4145 = vmatmul.mubr.msk.bf16.gmra.mrb[44].mxu0 %vm6699_vm4, %v6693_v34  ;;  %5148 = vmatprep.subr.bf16.mxu1 %v5532_v29 }
  0x9b   : > { %2194 = vmatprep.mubr.bf16.mxu0 %v6705_v27 }
  0x9c   : > { %4261 = vmatmul.mubr.msk.bf16.gmra.mrb[40].mxu1 %vm5932_vm6, %v5923_v7 }
  0x9d   : > { %2588 = vmatprep.mubr.bf16.mxu1 %v5939_v9  ;;  %5149 = vmatpush3.bf16.msra.mxu1 %v5532_v29  ;;  %v813_v29 = vand.u32 15, %v605_v3  ;;  %v1403_v3 = vrot.slane %v6513_v19, 7  ;;  %v609_v19 = vadd.s32 256, %v5677_v11 }
  0x9e   : > { %5150 = vmatprep.subr.bf16.mxu1 %v5533_v4 }
  0x9f   : > { %vm4641_vm2 = vcmp.ne.s32.totalorder %v813_v29, 0 }
  0xa0   : > { %vm6765_vm14 = vmpackc.low %vm7723_vm10, %vm4641_vm2 }
  0xa1   : > { %5151 = vmatpush3.bf16.msra.mxu1 %v5533_v4  ;;  %v6757_v4 = vpack.c.bf16 %v1416_v49, %v1417_v41  ;;  %v7819_v18 = vsel %vm6765_vm14, 4294967295, %v7818_v18  ;;  %vm7820_vm2 = vmmov %vm7814_vm7  ;;  %v6798_v41 = vpack.c.bf16 %v6588_v23, %v6533_v63 }
  0xa2   : > { %4149 = vmatmul.mubr.msk.bf16.gmra.mrb[48].mxu0 %vm6731_vm5, %v6725_v12  ;;  %5152 = vmatprep.subr.bf16.mxu1 %v5534_v25  ;;  %v1415_v49 = vsel %vm7820_vm2, %v1402_v10, %v1403_v3  ;;  %vm4642_vm5 = vcmp.ne.s32.totalorder %v827_v13, 0  ;;  %v1405_v10 = vrot.slane %v6533_v63, 7 }
  0xa3   : > { %2202 = vmatprep.mubr.bf16.mxu0 %v6737_v32 }
  0xa4   : > { %4265 = vmatmul.mubr.msk.bf16.gmra.mrb[44].mxu1 %vm6019_vm3, %v6023_v8 }
  0xa5   : > { %2596 = vmatprep.mubr.bf16.mxu1 %v6039_v14  ;;  %5153 = vmatpush3.bf16.msra.mxu1 %v5534_v25  ;;  %v1404_v25 = vrot.slane %v6517_v51, 7 }
  0xa6   : > { %5154 = vmatprep.subr.bf16.mxu1 %v5535_v33 }
  0xa7   : > { %v1414_v29 = vsel %vm7814_vm7, %v1403_v3, %v1404_v25  ;;  %v841_v3 = vand.u32 15, %v609_v19  ;;  %vm7824_vm7 = vmmov %vm7820_vm2  ;;  %v7845_v19 = vld [vmem:[#allocation10_spill] sm:$0xff] }
  0xa8   : > { %v6789_v51 = vpack.c.bf16 %v1414_v29, %v1415_v49  ;;  %v1413_v29 = vsel %vm7824_vm7, %v1404_v25, %v1405_v10  ;;  %v7844_v25 = vld [vmem:[#allocation11_spill] sm:$0xff] }
  0xa9   : > { %5155 = vmatpush3.bf16.msra.mxu1 %v5535_v33  ;;  %v7821_v33 = vmov 0 }
  0xaa   : > { %4153 = vmatmul.mubr.msk.bf16.gmra.mrb[52].mxu0 %vm6765_vm14, %v6757_v4  ;;  %5188 = vmatprep.subr.bf16.mxu1 %v6762_v20  ;;  %vm6792_vm14 = vmpackc.low %vm7723_vm10, %vm4642_vm5 }
  0xab   : > { %2210 = vmatprep.mubr.bf16.mxu0 %v6771_v59  ;;  %v7822_v33 = vsel %vm6792_vm14, 4294967295, %v7821_v33  ;;  %vm7823_vm5 = vmmov %vm7820_vm2  ;;  %vm4643_vm2 = vcmp.ne.s32.totalorder %v841_v3, 0  ;;  %v7848_v3 = vld [vmem:[#allocation12_spill] sm:$0xff] }
  0xac   : > { %4269 = vmatmul.mubr.msk.bf16.gmra.mrb[48].mxu1 %vm6123_vm1, %v6141_v47  ;;  %v1412_v13 = vsel %vm7823_vm5, %v1405_v10, %v1406_v46  ;;  %v7847_v10 = vld [vmem:[#allocation13_spill] sm:$0xff]  ;;  %vm7849_vm5 = vnez %v7848_v3 }
  0xad   : > { %2604 = vmatprep.mubr.bf16.mxu1 %v6152_v55  ;;  %v6816_v63 = vpack.c.bf16 %v1412_v13, %v1413_v29 }
  0xb2   : > { %4157 = vmatmul.mubr.msk.bf16.gmra.mrb[56].mxu0 %vm6792_vm14, %v6789_v51  ;;  %vm6819_vm14 = vmpackc.low %vm7723_vm10, %vm4643_vm2 }
  0xb3   : > { %2218 = vmatprep.mubr.bf16.mxu0 %v6798_v41 }
  0xb4   : > { %4273 = vmatmul.mubr.msk.bf16.gmra.mrb[52].mxu1 %vm6262_vm8, %v6269_v42 }
  0xb5   : > { %2612 = vmatprep.mubr.bf16.mxu1 %v6285_v58 }
  0xba   : > { %4161 = vmatmul.mubr.msk.bf16.gmra.mrb[60].mxu0 %vm6819_vm14, %v6816_v63 }
  0xbb   : > { %3079 = vmatprep.mubr.bf16.mxu0 %v5875_v48  ;;  %v578_v48 = vadd.s32 8, %v5677_v11 }
  0xbc   : > { %4277 = vmatmul.mubr.msk.bf16.gmra.mrb[56].mxu1 %vm6370_vm0, %v6381_v35 }
  0xbd   : > { %2620 = vmatprep.mubr.bf16.mxu1 %v6386_v38 }
  0xc2   : > { %4453 = vmatmul.mubr.msk.bf16.vlgmr.msra.gmra.mrb[64].mxu0 %vm5932_vm6, %v5923_v7  ;;  %vm7827_vm6 = vnez %v7816_v16  ;;  %v624_v7 = vand.u32 15, %v578_v48 }
  0xc3   : > { %3087 = vmatprep.mubr.bf16.mxu0 %v5939_v9 }
  0xc4   : > { %4281 = vmatmul.mubr.msk.bf16.gmra.mrb[60].mxu1 %vm6465_vm15, %v6471_v44 }
  0xc5   : > { %2628 = vmatprep.mubr.bf16.mxu1 %v6491_v17 }
  0xca   : > { %4457 = vmatmul.mubr.msk.bf16.gmra.mrb[68].mxu0 %vm6019_vm3, %v6023_v8  ;;  %vm7828_vm3 = vnez %v7819_v18  ;;  %v7854_v18 = vld [vmem:[#allocation16_spill] sm:$0xff] }
  0xcb   : > { %3095 = vmatprep.mubr.bf16.mxu0 %v6039_v14  ;;  %vm7855_vm2 = vnez %v7854_v18 }
  0xcc   : > { %4285 = vmatmul.mubr.msk.bf16.gmra.mrb[64].mxu1 %vm6560_vm12, %v6552_v37 }
  0xcd   : > { %2636 = vmatprep.mubr.bf16.mxu1 %v6567_v60 }
  0xd2   : > { %4461 = vmatmul.mubr.msk.bf16.gmra.mrb[72].mxu0 %vm6123_vm1, %v6141_v47  ;;  %vm4625_vm1 = vcmp.ne.s32.totalorder %v624_v7, 15 }
  0xd3   : > { %3103 = vmatprep.mubr.bf16.mxu0 %v6152_v55  ;;  %v5537_v55 = vld [vmem:[%s7557_s3 + $0x208] sm:$0xff]  }
  0xd4   : > { %4289 = vmatmul.mubr.msk.bf16.gmra.mrb[68].mxu1 %vm6595_vm9, %v6590_v1 }
  0xd5   : > { %2644 = vmatprep.mubr.bf16.mxu1 %v6601_v61 }
  0xda   : > { %4465 = vmatmul.mubr.msk.bf16.gmra.mrb[76].mxu0 %vm6262_vm8, %v6269_v42  ;;  %vm7830_vm8 = vcmp.lt.s32.totalorder %v5677_v11, 7  ;;  %v7832_v42 = vld [vmem:[#allocation3_spill] sm:$0xff] }
  0xdb   : > { %3111 = vmatprep.mubr.bf16.mxu0 %v6285_v58  ;;  %v1660_v9 = vsel %vm7830_vm8, %v6582_v56, %v7829_v40  ;;  %v7833_v58 = vld [vmem:[#allocation2_spill] sm:$0xff]  ;;  %v7850_v40 = vld [vmem:[#allocation15_spill] sm:$0xff]  ;;  %vm7863_vm8 = vcmp.lt.s32.totalorder %v5677_v11, 1 }
  0xdc   : > { %4293 = vmatmul.mubr.msk.bf16.gmra.mrb[72].mxu1 %vm6634_vm13, %v6631_v15  ;;  %v4316_v5 = vpack.c.bf16 %v1660_v9, %v6582_v56  ;;  %v7851_v9 = vld [vmem:[#allocation14_spill] sm:$0xff] }
  0xdd   : > { %2652 = vmatprep.mubr.bf16.mxu1 %v6640_v21  ;;  %vm7852_vm7 = vnez %v7851_v9 }
  0xe2   : > { %4469 = vmatmul.mubr.msk.bf16.gmra.mrb[80].mxu0 %vm6370_vm0, %v6381_v35  ;;  %vm4315_vm0 = vmpackc.low %vm4625_vm1, %vm7723_vm10  ;;  %v7836_v35 = vld [vmem:[#allocation4_spill] sm:$0xff] }
  0xe3   : > { %3119 = vmatprep.mubr.bf16.mxu0 %v6386_v38  ;;  %v5538_v38 = vld [vmem:[%s7557_s3 + $0x210] sm:$0xff]  }
  0xe4   : > { %4297 = vmatmul.mubr.msk.bf16.gmra.mrb[76].mxu1 %vm6667_vm11, %v6661_v2 }
  0xe5   : > { %2660 = vmatprep.mubr.bf16.mxu1 %v6673_v39 }
  0xea   : > { %4473 = vmatmul.mubr.msk.bf16.gmra.mrb[84].mxu0 %vm6465_vm15, %v6471_v44  ;;  %vm7831_vm15 = vnez %v7822_v33 }
  0xeb   : > { %3127 = vmatprep.mubr.bf16.mxu0 %v6491_v17 }
  0xec   : > { %4301 = vmatmul.mubr.msk.bf16.gmra.mrb[80].mxu1 %vm6699_vm4, %v6693_v34 }
  0xed   : > { %2668 = vmatprep.mubr.bf16.mxu1 %v6705_v27 }
  0xf2   : > { %4477 = vmatmul.mubr.msk.bf16.gmra.mrb[88].mxu0 %vm6560_vm12, %v6552_v37 }
  0xf3   : > { %3135 = vmatprep.mubr.bf16.mxu0 %v6567_v60  ;;  %v5539_v60 = vld [vmem:[%s7557_s3 + $0x218] sm:$0xff]  }
  0xf4   : > { %4305 = vmatmul.mubr.msk.bf16.gmra.mrb[84].mxu1 %vm7827_vm6, %v6725_v12 }
  0xf5   : > { %2676 = vmatprep.mubr.bf16.mxu1 %v6737_v32 }
  0xfa   : > { %4481 = vmatmul.mubr.msk.bf16.gmra.mrb[92].mxu0 %vm6595_vm9, %v6590_v1  ;;  %vm7837_vm9 = vnez %v7836_v35 }
  0xfb   : > { %3143 = vmatprep.mubr.bf16.mxu0 %v6601_v61  ;;  %v7839_v61 = vld [vmem:[#allocation6_spill] sm:$0xff] }
  0xfc   : > { %4309 = vmatmul.mubr.msk.bf16.gmra.mrb[88].mxu1 %vm7828_vm3, %v6757_v4  ;;  %vm7840_vm12 = vnez %v7839_v61 }
  0xfd   : > { %2684 = vmatprep.mubr.bf16.mxu1 %v6771_v59 }
 0x102   : > { %4485 = vmatmul.mubr.msk.bf16.gmra.mrb[96].mxu0 %vm6634_vm13, %v6631_v15  ;;  %vm7834_vm13 = vnez %v7833_v58  ;;  %v7842_v15 = vld [vmem:[#allocation8_spill] sm:$0xff] }
 0x103   : > { %3151 = vmatprep.mubr.bf16.mxu0 %v6640_v21  ;;  %v4676_v6 = vpop.f32.mrb[0].mxu0 }
 0x104   : > { %4313 = vmatmul.mubr.msk.bf16.gmra.mrb[92].mxu1 %vm7831_vm15, %v6789_v51  ;;  %v4677_v8 = vpop.f32.mrb[1].mxu0 }
 0x105   : > { %5156 = vmatprep.mubr.msk.bf16.mxu1 %vm4315_vm0, %v4316_v5  ;;  %v6910_v14 = vadd.f32 %v4677_v8, %v4676_v6  ;;  %v4679_v31 = vpop.f32.mrb[2].mxu0  ;;  %v7853_v6 = vld [vmem:[#allocation18_spill] sm:$0xff]  ;;  %v611_v8 = vadd.s32 272, %v5677_v11 }
 0x106   : > { %v4680_v47 = vpop.f32.mrb[3].mxu0 }
 0x107   : > { %v6918_v28 = vadd.f32 %v4680_v47, %v4679_v31  ;;  %v7859_v47 = vld [vmem:[#allocation22_spill] sm:$0xff]  ;;  %v855_v33 = vand.u32 15, %v611_v8 }
 0x109   : > { %vm4626_vm0 = vcmp.ne.s32.totalorder %v855_v33, 0 }
 0x10a   : > { %4489 = vmatmul.mubr.msk.bf16.gmra.mrb[100].mxu0 %vm6667_vm11, %v6661_v2  ;;  %vm7843_vm11 = vnez %v7842_v15 }
 0x10b   : > { %3159 = vmatprep.mubr.bf16.mxu0 %v6673_v39  ;;  %v4682_v52 = vpop.f32.mrb[4].mxu0 }
 0x10c   : > { %5157 = vmatmul.mubr.msk.bf16.vlgmr.msra.gmra.mrb[0].mxu1 %vm7834_vm13, %v7832_v42  ;;  %v4683_v44 = vpop.f32.mrb[5].mxu0 }
 0x10d   : > { %5189 = vmatpush3.bf16.msra.mxu1 %v6762_v20  ;;  %5160 = vmatprep.mubr.msk.bf16.mxu1 %vm7837_vm9, %v7835_v45  ;;  %v6931_v17 = vadd.f32 %v4683_v44, %v4682_v52  ;;  %v4685_v37 = vpop.f32.mrb[6].mxu0  ;;  %v7862_v44 = vmov 0.0|0.0  }
 0x10e   : > { %5190 = vmatprep.subr.bf16.mxu1 %v5537_v55  ;;  %v4686_v22 = vpop.f32.mrb[7].mxu0 }
 0x10f   : > { %v6939_v1 = vadd.f32 %v4686_v22, %v4685_v37  ;;  %v1411_v37 = vsel %vm7863_vm8, %v1406_v46, %v5707_v24  ;;  %v7864_v22 = vld [vmem:[#allocation23_spill] sm:$0xff]  ;;  %vm7873_vm8 = vnez %v7783_v57 }
 0x111   : > { %5191 = vmatpush3.bf16.msra.mxu1 %v5537_v55  ;;  %v7860_v55 = vld [vmem:[#allocation20_spill] sm:$0xff] }
 0x112   : > { %4493 = vmatmul.mubr.msk.bf16.gmra.mrb[104].mxu0 %vm6699_vm4, %v6693_v34  ;;  %5192 = vmatprep.subr.bf16.mxu1 %v5538_v38  ;;  %vm7846_vm4 = vnez %v7845_v19  ;;  %v5547_v19 = vld [vmem:[%s7560_s6 + $0x18] sm:$0xff]  }
 0x113   : > { %3167 = vmatprep.mubr.bf16.mxu0 %v6705_v27  ;;  %v4688_v21 = vpop.f32.mrb[8].mxu0  ;;  %v5541_v27 = vld [vmem:[%s7557_s3 + $0x228] sm:$0xff]  }
 0x114   : > { %5161 = vmatmul.mubr.msk.bf16.gmra.mrb[4].mxu1 %vm7840_vm12, %v7838_v26  ;;  %v4689_v2 = vpop.f32.mrb[9].mxu0 }
 0x115   : > { %5164 = vmatprep.mubr.msk.bf16.mxu1 %vm7843_vm11, %v7841_v43  ;;  %5193 = vmatpush3.bf16.msra.mxu1 %v5538_v38  ;;  %v6951_v39 = vadd.f32 %v4689_v2, %v4688_v21  ;;  %v4691_v34 = vpop.f32.mrb[10].mxu0  ;;  %v7868_v21 = vld [vmem:[#allocation24_spill] sm:$0xff] }
 0x116   : > { %5194 = vmatprep.subr.bf16.mxu1 %v5539_v60  ;;  %v4692_v36 = vpop.f32.mrb[11].mxu0 }
 0x117   : > { %v6959_v20 = vadd.f32 %v4692_v36, %v4691_v34  ;;  %v7870_v36 = vld [vmem:[#allocation27_spill] sm:$0xff] }
 0x119   : > { %5195 = vmatpush3.bf16.msra.mxu1 %v5539_v60  ;;  %v7865_v60 = vld [vmem:[#allocation21_spill] sm:$0xff] }
 0x11a   : > { %4497 = vmatmul.mubr.msk.bf16.gmra.mrb[108].mxu0 %vm7827_vm6, %v6725_v12  ;;  %5196 = vmatprep.subr.bf16.mxu1 %v5540_v50  ;;  %v5542_v12 = vld [vmem:[%s7557_s3 + $0x230] sm:$0xff]   ;;  %vm7866_vm1 = vnez %v7865_v60 }
 0x11b   : > { %3175 = vmatprep.mubr.bf16.mxu0 %v6737_v32  ;;  %v4694_v16 = vpop.f32.mrb[12].mxu0  ;;  %v5543_v32 = vld [vmem:[%s7557_s3 + $0x238] sm:$0xff]  }
 0x11c   : > { %5165 = vmatmul.mubr.msk.bf16.gmra.mrb[8].mxu1 %vm7846_vm4, %v7844_v25  ;;  %v4695_v13 = vpop.f32.mrb[13].mxu0 }
 0x11d   : > { %5168 = vmatprep.mubr.msk.bf16.mxu1 %vm7849_vm5, %v7847_v10  ;;  %5197 = vmatpush3.bf16.msra.mxu1 %v5540_v50  ;;  %v6977_v29 = vadd.f32 %v4695_v13, %v4694_v16  ;;  %v4697_v48 = vpop.f32.mrb[14].mxu0  ;;  %v7867_v50 = vld [vmem:[#allocation25_spill] sm:$0xff] }
 0x11e   : > { %5198 = vmatprep.subr.bf16.mxu1 %v5541_v27  ;;  %v4698_v7 = vpop.f32.mrb[15].mxu0 }
 0x11f   : > { %v6983_v5 = vadd.f32 %v4698_v7, %v4697_v48 }
 0x121   : > { %5199 = vmatpush3.bf16.msra.mxu1 %v5541_v27  ;;  %v7871_v27 = vld [vmem:[#allocation26_spill] sm:$0xff] }
 0x122   : > { %4501 = vmatmul.mubr.msk.bf16.gmra.mrb[112].mxu0 %vm7828_vm3, %v6757_v4  ;;  %5200 = vmatprep.subr.bf16.mxu1 %v5542_v12  ;;  %v7856_v4 = vld [vmem:[#allocation19_spill] sm:$0xff]  ;;  %vm7861_vm3 = vnez %v7860_v55  ;;  %vm7872_vm13 = vnez %v7871_v27 }
 0x123   : > { %3183 = vmatprep.mubr.bf16.mxu0 %v6771_v59  ;;  %v7857_v59 = vld [vmem:[#allocation17_spill] sm:$0xff] }
 0x124   : > { %5169 = vmatmul.mubr.msk.bf16.gmra.mrb[12].mxu1 %vm7852_vm7, %v7850_v40  ;;  %vm7858_vm6 = vnez %v7857_v59 }
 0x125   : > { %5172 = vmatprep.mubr.msk.bf16.mxu1 %vm7855_vm2, %v7853_v6  ;;  %5201 = vmatpush3.bf16.msra.mxu1 %v5542_v12 }
 0x126   : > { %5202 = vmatprep.subr.bf16.mxu1 %v5543_v32 }
 0x127   : > { %v4700_v31 = vpop.f32.mrb[16].mxu0 }
 0x128   : > { %v4701_v42 = vpop.f32.mrb[17].mxu0 }
 0x129   : > { %5203 = vmatpush3.bf16.msra.mxu1 %v5543_v32  ;;  %v6999_v58 = vadd.f32 %v4701_v42, %v4700_v31  ;;  %v4703_v38 = vpop.f32.mrb[18].mxu0 }
 0x12a   : > { %4505 = vmatmul.mubr.msk.bf16.gmra.mrb[116].mxu0 %vm7831_vm15, %v6789_v51  ;;  %v4704_v52 = vpop.f32.mrb[19].mxu0  ;;  %v5544_v51 = vld [vmem:[%s7560_s6] sm:$0xff]   ;;  %vm7869_vm15 = vnez %v7868_v21 }
 0x12b   : > { %3191 = vmatprep.mubr.bf16.mxu0 %v6798_v41  ;;  %v7004_v41 = vadd.f32 %v4704_v52, %v4703_v38  ;;  %5236 = vmatprep.subr.bf16.mxu0 %v5544_v51 }
 0x12c   : > { %5173 = vmatmul.mubr.msk.bf16.gmra.mrb[16].mxu1 %vm7858_vm6, %v7856_v4  ;;  %5237 = vmatpush3.bf16.msra.mxu0 %v5544_v51 }
 0x12d   : > { %5176 = vmatprep.mubr.msk.bf16.mxu1 %vm7861_vm3, %v7859_v47 }
 0x132   : > { %4509 = vmatmul.mubr.msk.bf16.gmra.mrb[120].mxu0 %vm6819_vm14, %v6816_v63  ;;  %v4512_v63 = vpack.c.bf16 %v5707_v24, %v1411_v37  ;;  %vm4511_vm14 = vmpackc.low %vm7723_vm10, %vm4626_vm0  ;;  %v5545_v24 = vld [vmem:[%s7560_s6 + $0x8] sm:$0xff]   ;;  %vm7874_vm0 = vnez %v7789_v62 }
 0x133   : > { %3199 = vmatprep.mubr.bf16.mxu0 %v7862_v44  ;;  %5238 = vmatprep.subr.bf16.mxu0 %v5545_v24 }
 0x134   : > { %5177 = vmatmul.mubr.msk.bf16.gmra.mrb[20].mxu1 %vm7866_vm1, %v7864_v22  ;;  %5239 = vmatpush3.bf16.msra.mxu0 %v5545_v24 }
 0x135   : > { %5180 = vmatprep.mubr.msk.bf16.mxu1 %vm7869_vm15, %v7867_v50  ;;  %v4706_v49 = vpop.f32.mrb[20].mxu0 }
 0x136   : > { %v4707_v2 = vpop.f32.mrb[21].mxu0 }
 0x137   : > { %v7023_v23 = vadd.f32 %v4707_v2, %v4706_v49  ;;  %v4709_v46 = vpop.f32.mrb[22].mxu0 }
 0x138   : > { %v4710_v34 = vpop.f32.mrb[23].mxu0 }
 0x139   : > { %v7028_v12 = vadd.f32 %v4710_v34, %v4709_v46 }
 0x13a   : > { %4513 = vmatmul.mubr.msk.bf16.gmra.mrb[124].mxu0 %vm4511_vm14, %v4512_v63 }
 0x13c   : > { %5181 = vmatmul.mubr.msk.bf16.gmra.mrb[24].mxu1 %vm7872_vm13, %v7870_v36 }
 0x13d   : > { %5184 = vmatprep.mubr.msk.bf16.mxu1 %vm7873_vm8, %v6536_v30 }
 0x140   : > { %v4712_v16 = vpop.f32.mrb[24].mxu0 }
 0x141   : > { %v4713_v13 = vpop.f32.mrb[25].mxu0 }
 0x142   : > { %v7039_v32 = vadd.f32 %v4713_v13, %v4712_v16  ;;  %v4715_v48 = vpop.f32.mrb[26].mxu0  ;;  %v5548_v13 = vld [vmem:[%s7560_s6 + $0x20] sm:$0xff]  }
 0x143   : > { %v4716_v7 = vpop.f32.mrb[27].mxu0 }
 0x144   : > { %5185 = vmatmul.mubr.msk.bf16.gmra.mrb[28].mxu1 %vm7874_vm0, %v6569_v54  ;;  %v7044_v8 = vadd.f32 %v4716_v7, %v4715_v48 }
 0x145   : > { %5204 = vmatprep.mubr.msk.bf16.mxu1 %vm7837_vm9, %v7835_v45  ;;  %v5546_v45 = vld [vmem:[%s7560_s6 + $0x10] sm:$0xff]   ;;  %vm7875_vm9 = vnez %v7799_v0 }
 0x146   : > { %5240 = vmatprep.subr.bf16.mxu0 %v5546_v45 }
 0x147   : > { %5241 = vmatpush3.bf16.msra.mxu0 %v5546_v45 }
 0x148   : > { %5242 = vmatprep.subr.bf16.mxu0 %v5547_v19 }
 0x14b   : > { %5243 = vmatpush3.bf16.msra.mxu0 %v5547_v19 }
 0x14c   : > { %5205 = vmatmul.mubr.msk.bf16.vlgmr.msra.gmra.mrb[0].mxu1 %vm7840_vm12, %v7838_v26  ;;  %5244 = vmatprep.subr.bf16.mxu0 %v5548_v13 }
 0x14d   : > { %5208 = vmatprep.mubr.msk.bf16.mxu1 %vm7843_vm11, %v7841_v43  ;;  %v4718_v31 = vpop.f32.mrb[28].mxu0 }
 0x14e   : > { %v4719_v42 = vpop.f32.mrb[29].mxu0 }
 0x14f   : > { %v7052_v38 = vadd.f32 %v4719_v42, %v4718_v31  ;;  %v4721_v52 = vpop.f32.mrb[30].mxu0  ;;  %5245 = vmatpush3.bf16.msra.mxu0 %v5548_v13 }
 0x150   : > { %v4722_v35 = vpop.f32.mrb[31].mxu0 }
 0x151   : > { %v7057_v51 = vadd.f32 %v4722_v35, %v4721_v52 }
 0x154   : > { %5209 = vmatmul.mubr.msk.bf16.gmra.mrb[4].mxu1 %vm7846_vm4, %v7844_v25 }
 0x155   : > { %5212 = vmatprep.mubr.msk.bf16.mxu1 %vm7849_vm5, %v7847_v10  ;;  %v4724_v26 = vpop.f32.mrb[32].mxu0 }
 0x156   : > { %v4725_v61 = vpop.f32.mrb[33].mxu0 }
 0x157   : > { %v7065_v43 = vadd.f32 %v4725_v61, %v4724_v26  ;;  %v4727_v15 = vpop.f32.mrb[34].mxu0 }
 0x158   : > { %v4728_v33 = vpop.f32.mrb[35].mxu0 }
 0x159   : > { %v7067_v44 = vadd.f32 %v4728_v33, %v4727_v15 }
 0x15c   : > { %5213 = vmatmul.mubr.msk.bf16.gmra.mrb[8].mxu1 %vm7852_vm7, %v7850_v40 }
 0x15d   : > { %5216 = vmatprep.mubr.msk.bf16.mxu1 %vm7855_vm2, %v7853_v6  ;;  %v4730_v25 = vpop.f32.mrb[36].mxu0 }
 0x15e   : > { %v4731_v10 = vpop.f32.mrb[37].mxu0 }
 0x15f   : > { %v4812_v3 = vpop.f32.mrb[32].mxu1  ;;  %v7078_v37 = vadd.f32 %v4731_v10, %v4730_v25  ;;  %v4733_v63 = vpop.f32.mrb[38].mxu0 }
 0x160   : > { %v4813_v49 = vpop.f32.mrb[33].mxu1  ;;  %v4734_v2 = vpop.f32.mrb[39].mxu0 }
 0x161   : > { %v4814_v9 = vadd.f32 %v4813_v49, %v4812_v3  ;;  %v4815_v40 = vpop.f32.mrb[34].mxu1  ;;  %v7080_v46 = vadd.f32 %v4734_v2, %v4733_v63  ;;  %v5549_v49 = vld [vmem:[%s7560_s6 + $0x28] sm:$0xff]  }
 0x162   : > { %v4816_v18 = vpop.f32.mrb[35].mxu1  ;;  %5246 = vmatprep.subr.bf16.mxu0 %v5549_v49 }
 0x163   : > { %v7083_v6 = vadd.f32 %v4814_v9, %v6910_v14  ;;  %v4817_v34 = vadd.f32 %v4816_v18, %v4815_v40  ;;  %5247 = vmatpush3.bf16.msra.mxu0 %v5549_v49 }
 0x164   : > { %5217 = vmatmul.mubr.msk.bf16.gmra.mrb[12].mxu1 %vm7858_vm6, %v7856_v4 }
 0x165   : > { %v7089_v24 = vadd.f32 %v4817_v34, %v6918_v28  ;;  %5220 = vmatprep.mubr.msk.bf16.mxu1 %vm7861_vm3, %v7859_v47  ;;  %v4736_v16 = vpop.f32.mrb[40].mxu0 }
 0x166   : > { %v4737_v48 = vpop.f32.mrb[41].mxu0 }
 0x167   : > { %v4818_v14 = vpop.f32.mrb[36].mxu1  ;;  %v7097_v7 = vadd.f32 %v4737_v48, %v4736_v16  ;;  %v4739_v31 = vpop.f32.mrb[42].mxu0 }
 0x168   : > { %v4819_v59 = vpop.f32.mrb[37].mxu1  ;;  %v4740_v4 = vpop.f32.mrb[43].mxu0 }
 0x169   : > { %v4820_v28 = vadd.f32 %v4819_v59, %v4818_v14  ;;  %v4821_v42 = vpop.f32.mrb[38].mxu1  ;;  %v7099_v52 = vadd.f32 %v4740_v4, %v4739_v31 }
 0x16a   : > { %v4822_v55 = vpop.f32.mrb[39].mxu1 }
 0x16b   : > { %v7102_v47 = vadd.f32 %v4820_v28, %v6931_v17  ;;  %v4823_v45 = vadd.f32 %v4822_v55, %v4821_v42  ;;  %v4576_v42 = vpack.c.bf16 %v6582_v56, %v6582_v56  ;;  %v5550_v56 = vld [vmem:[%s7560_s6 + $0x30] sm:$0xff]  }
 0x16c   : > { %5221 = vmatmul.mubr.msk.bf16.gmra.mrb[16].mxu1 %vm7866_vm1, %v7864_v22  ;;  %5248 = vmatprep.subr.bf16.mxu0 %v5550_v56 }
 0x16d   : > { %v7108_v35 = vadd.f32 %v4823_v45, %v6939_v1  ;;  %5224 = vmatprep.mubr.msk.bf16.mxu1 %vm7869_vm15, %v7867_v50  ;;  %v4742_v26 = vpop.f32.mrb[44].mxu0  ;;  %5249 = vmatpush3.bf16.msra.mxu0 %v5550_v56 }
 0x16e   : > { %v4743_v61 = vpop.f32.mrb[45].mxu0 }
 0x16f   : > { %v4824_v15 = vpop.f32.mrb[40].mxu1  ;;  %v7113_v33 = vadd.f32 %v4743_v61, %v4742_v26  ;;  %v4745_v25 = vpop.f32.mrb[46].mxu0 }
 0x170   : > { %v4825_v17 = vpop.f32.mrb[41].mxu1  ;;  %v4746_v19 = vpop.f32.mrb[47].mxu0 }
 0x171   : > { %v4826_v10 = vadd.f32 %v4825_v17, %v4824_v15  ;;  %v4827_v3 = vpop.f32.mrb[42].mxu1  ;;  %v7115_v63 = vadd.f32 %v4746_v19, %v4745_v25 }
 0x172   : > { %v4828_v22 = vpop.f32.mrb[43].mxu1 }
 0x173   : > { %v7118_v1 = vadd.f32 %v4826_v10, %v6951_v39  ;;  %v4829_v60 = vadd.f32 %v4828_v22, %v4827_v3  ;;  %v612_v39 = vadd.s32 280, %v5677_v11 }
 0x174   : > { %5225 = vmatmul.mubr.msk.bf16.gmra.mrb[20].mxu1 %vm7872_vm13, %v7870_v36 }
 0x175   : > { %v7124_v50 = vadd.f32 %v4829_v60, %v6959_v20  ;;  %5228 = vmatprep.mubr.msk.bf16.mxu1 %vm7873_vm8, %v6536_v30  ;;  %v4748_v21 = vpop.f32.mrb[48].mxu0  ;;  %v862_v16 = vand.u32 15, %v612_v39 }
 0x176   : > { %v4749_v2 = vpop.f32.mrb[49].mxu0 }
 0x177   : > { %v4830_v9 = vpop.f32.mrb[44].mxu1  ;;  %v7133_v40 = vadd.f32 %v4749_v2, %v4748_v21  ;;  %v4751_v27 = vpop.f32.mrb[50].mxu0  ;;  %vm4627_vm12 = vcmp.ne.s32.totalorder %v862_v16, 15 }
 0x178   : > { %v4831_v36 = vpop.f32.mrb[45].mxu1  ;;  %v4752_v20 = vpop.f32.mrb[51].mxu0  ;;  %vm4575_vm11 = vmpackc.low %vm4627_vm12, %vm7723_vm10 }
 0x179   : > { %v4832_v18 = vadd.f32 %v4831_v36, %v4830_v9  ;;  %v4833_v34 = vpop.f32.mrb[46].mxu1  ;;  %v7135_v57 = vadd.f32 %v4752_v20, %v4751_v27 }
 0x17a   : > { %v4834_v30 = vpop.f32.mrb[47].mxu1 }
 0x17b   : > { %v7138_v13 = vadd.f32 %v4832_v18, %v6977_v29  ;;  %v4835_v48 = vadd.f32 %v4834_v30, %v4833_v34 }
 0x17c   : > { %5229 = vmatmul.mubr.msk.bf16.gmra.mrb[24].mxu1 %vm7874_vm0, %v6569_v54 }
 0x17d   : > { %v7144_v11 = vadd.f32 %v4835_v48, %v6983_v5  ;;  %5232 = vmatprep.mubr.msk.bf16.mxu1 %vm7875_vm9, %v6615_v53  ;;  %v4754_v14 = vpop.f32.mrb[52].mxu0 }
 0x17e   : > { %v4755_v31 = vpop.f32.mrb[53].mxu0 }
 0x17f   : > { %v4836_v59 = vpop.f32.mrb[48].mxu1  ;;  %v7149_v4 = vadd.f32 %v4755_v31, %v4754_v14  ;;  %v4757_v29 = vpop.f32.mrb[54].mxu0 }
 0x180   : > { %v4837_v28 = vpop.f32.mrb[49].mxu1  ;;  %v4758_v62 = vpop.f32.mrb[55].mxu0 }
 0x181   : > { %v4838_v54 = vadd.f32 %v4837_v28, %v4836_v59  ;;  %v4839_v55 = vpop.f32.mrb[50].mxu1  ;;  %v7154_v5 = vadd.f32 %v4758_v62, %v4757_v29 }
 0x182   : > { %v4840_v0 = vpop.f32.mrb[51].mxu1 }
 0x183   : > { %v7157_v53 = vadd.f32 %v4838_v54, %v6999_v58  ;;  %v4841_v45 = vadd.f32 %v4840_v0, %v4839_v55 }
 0x184   : > { %5233 = vmatmul.mubr.msk.bf16.gmra.mrb[28].mxu1 %vm4575_vm11, %v4576_v42 }
 0x185   : > { %v7160_v26 = vadd.f32 %v4841_v45, %v7004_v41  ;;  %v4760_v61 = vpop.f32.mrb[56].mxu0 }
 0x186   : > { %v4761_v15 = vpop.f32.mrb[57].mxu0 }
 0x187   : > { %v4842_v25 = vpop.f32.mrb[52].mxu1  ;;  %v7165_v17 = vadd.f32 %v4761_v15, %v4760_v61  ;;  %v4763_v19 = vpop.f32.mrb[58].mxu0 }
 0x188   : > { %v4843_v10 = vpop.f32.mrb[53].mxu1  ;;  %v4764_v3 = vpop.f32.mrb[59].mxu0 }
 0x189   : > { %v4844_v58 = vadd.f32 %v4843_v10, %v4842_v25  ;;  %v4845_v22 = vpop.f32.mrb[54].mxu1  ;;  %v7167_v60 = vadd.f32 %v4764_v3, %v4763_v19 }
 0x18a   : > { %v4846_v41 = vpop.f32.mrb[55].mxu1 }
 0x18b   : > { %v7170_v21 = vadd.f32 %v4844_v58, %v7023_v23  ;;  %v4847_v49 = vadd.f32 %v4846_v41, %v4845_v22 }
 0x18d   : > { %v7173_v39 = vadd.f32 %v4847_v49, %v7028_v12  ;;  %v4766_v2 = vpop.f32.mrb[60].mxu0 }
 0x18e   : > { %v4767_v9 = vpop.f32.mrb[61].mxu0 }
 0x18f   : > { %v4848_v27 = vpop.f32.mrb[56].mxu1  ;;  %v7175_v36 = vadd.f32 %v4767_v9, %v4766_v2  ;;  %v4769_v20 = vpop.f32.mrb[62].mxu0 }
 0x190   : > { %v4849_v18 = vpop.f32.mrb[57].mxu1  ;;  %v4770_v34 = vpop.f32.mrb[63].mxu0 }
 0x191   : > { %v4850_v30 = vadd.f32 %v4849_v18, %v4848_v27  ;;  %v4851_v16 = vpop.f32.mrb[58].mxu1  ;;  %v7177_v48 = vadd.f32 %v4770_v34, %v4769_v20 }
 0x192   : > { %v4852_v14 = vpop.f32.mrb[59].mxu1 }
 0x193   : > { %v7180_v23 = vadd.f32 %v4850_v30, %v7039_v32  ;;  %v4853_v31 = vadd.f32 %v4852_v14, %v4851_v16 }
 0x195   : > { %v7183_v12 = vadd.f32 %v4853_v31, %v7044_v8  ;;  %v4948_v59 = vpop.f32.mrb[64].mxu0 }
 0x196   : > { %v4949_v29 = vpop.f32.mrb[65].mxu0 }
 0x197   : > { %v4854_v28 = vpop.f32.mrb[60].mxu1  ;;  %v4950_v42 = vadd.f32 %v4949_v29, %v4948_v59  ;;  %v4951_v62 = vpop.f32.mrb[66].mxu0 }
 0x198   : > { %v4855_v54 = vpop.f32.mrb[61].mxu1  ;;  %v4952_v55 = vpop.f32.mrb[67].mxu0 }
 0x199   : > { %v4856_v0 = vadd.f32 %v4855_v54, %v4854_v28  ;;  %v4857_v45 = vpop.f32.mrb[62].mxu1  ;;  %v4953_v61 = vadd.f32 %v4952_v55, %v4951_v62  ;;  %v7186_v56 = vadd.f32 %v7083_v6, %v4950_v42 }
 0x19a   : > { %v4858_v15 = vpop.f32.mrb[63].mxu1 }
 0x19b   : > { %v7189_v32 = vadd.f32 %v4856_v0, %v7052_v38  ;;  %v4859_v25 = vadd.f32 %v4858_v15, %v4857_v45  ;;  %v7192_v8 = vadd.f32 %v7089_v24, %v4953_v61 }
 0x19d   : > { %v7195_v19 = vadd.f32 %v4859_v25, %v7057_v51  ;;  %v4954_v10 = vpop.f32.mrb[68].mxu0 }
 0x19e   : > { %v4955_v3 = vpop.f32.mrb[69].mxu0 }
 0x19f   : > { %v4860_v58 = vpop.f32.mrb[64].mxu1  ;;  %v4956_v22 = vadd.f32 %v4955_v3, %v4954_v10  ;;  %v4957_v41 = vpop.f32.mrb[70].mxu0 }
 0x1a0   : > { %v4861_v49 = vpop.f32.mrb[65].mxu1  ;;  %v4958_v2 = vpop.f32.mrb[71].mxu0 }
 0x1a1   : > { %v4862_v6 = vadd.f32 %v4861_v49, %v4860_v58  ;;  %v4863_v9 = vpop.f32.mrb[66].mxu1  ;;  %v4959_v27 = vadd.f32 %v4958_v2, %v4957_v41  ;;  %v7198_v38 = vadd.f32 %v7102_v47, %v4956_v22  ;;  %v5551_v47 = vld [vmem:[%s7560_s6 + $0x38] sm:$0xff]  }
 0x1a2   : > { %v4864_v20 = vpop.f32.mrb[67].mxu1  ;;  %5250 = vmatprep.subr.bf16.mxu0 %v5551_v47 }
 0x1a3   : > { %v7201_v24 = vadd.f32 %v4862_v6, %v7065_v43  ;;  %v4865_v18 = vadd.f32 %v4864_v20, %v4863_v9  ;;  %v7204_v51 = vadd.f32 %v7108_v35, %v4959_v27  ;;  %5251 = vmatpush3.bf16.msra.mxu0 %v5551_v47 }
 0x1a5   : > { %v7207_v34 = vadd.f32 %v4865_v18, %v7067_v44  ;;  %v4960_v30 = vpop.f32.mrb[72].mxu0 }
 0x1a6   : > { %v4961_v16 = vpop.f32.mrb[73].mxu0 }
 0x1a7   : > { %v4866_v14 = vpop.f32.mrb[68].mxu1  ;;  %v4962_v31 = vadd.f32 %v4961_v16, %v4960_v30  ;;  %v4963_v59 = vpop.f32.mrb[74].mxu0 }
 0x1a8   : > { %v4867_v29 = vpop.f32.mrb[69].mxu1  ;;  %v4964_v28 = vpop.f32.mrb[75].mxu0 }
 0x1a9   : > { %v4868_v43 = vadd.f32 %v4867_v29, %v4866_v14  ;;  %v4869_v42 = vpop.f32.mrb[70].mxu1  ;;  %v4965_v62 = vadd.f32 %v4964_v28, %v4963_v59  ;;  %v7213_v35 = vadd.f32 %v7118_v1, %v4962_v31 }
 0x1aa   : > { %v4870_v54 = vpop.f32.mrb[71].mxu1 }
 0x1ab   : > { %v7216_v44 = vadd.f32 %v4868_v43, %v7078_v37  ;;  %v4871_v55 = vadd.f32 %v4870_v54, %v4869_v42  ;;  %v7219_v0 = vadd.f32 %v7124_v50, %v4965_v62 }
 0x1ad   : > { %v7222_v45 = vadd.f32 %v4871_v55, %v7080_v46  ;;  %v4966_v61 = vpop.f32.mrb[76].mxu0 }
 0x1ae   : > { %v4967_v15 = vpop.f32.mrb[77].mxu0 }
 0x1af   : > { %v4872_v25 = vpop.f32.mrb[72].mxu1  ;;  %v4968_v10 = vadd.f32 %v4967_v15, %v4966_v61  ;;  %v4969_v3 = vpop.f32.mrb[78].mxu0 }
 0x1b0   : > { %v4873_v1 = vpop.f32.mrb[73].mxu1  ;;  %v4970_v58 = vpop.f32.mrb[79].mxu0 }
 0x1b1   : > { %v4874_v22 = vadd.f32 %v4873_v1, %v4872_v25  ;;  %v4875_v41 = vpop.f32.mrb[74].mxu1  ;;  %v4971_v49 = vadd.f32 %v4970_v58, %v4969_v3  ;;  %v7225_v37 = vadd.f32 %v7138_v13, %v4968_v10 }
 0x1b2   : > { %v4876_v2 = vpop.f32.mrb[75].mxu1 }
 0x1b3   : > { %v7228_v50 = vadd.f32 %v4874_v22, %v7097_v7  ;;  %v4877_v6 = vadd.f32 %v4876_v2, %v4875_v41  ;;  %v7231_v46 = vadd.f32 %v7144_v11, %v4971_v49 }
 0x1b5   : > { %v7234_v9 = vadd.f32 %v4877_v6, %v7099_v52  ;;  %v4972_v27 = vpop.f32.mrb[80].mxu0 }
 0x1b6   : > { %v4973_v20 = vpop.f32.mrb[81].mxu0 }
 0x1b7   : > { %v4878_v18 = vpop.f32.mrb[76].mxu1  ;;  %v4974_v30 = vadd.f32 %v4973_v20, %v4972_v27  ;;  %v4975_v16 = vpop.f32.mrb[82].mxu0 }
 0x1b8   : > { %v4879_v14 = vpop.f32.mrb[77].mxu1  ;;  %v4976_v31 = vpop.f32.mrb[83].mxu0 }
 0x1b9   : > { %v4880_v13 = vadd.f32 %v4879_v14, %v4878_v18  ;;  %v4881_v59 = vpop.f32.mrb[78].mxu1  ;;  %v4977_v29 = vadd.f32 %v4976_v31, %v4975_v16  ;;  %v7237_v7 = vadd.f32 %v7157_v53, %v4974_v30 }
 0x1ba   : > { %v4882_v28 = vpop.f32.mrb[79].mxu1 }
 0x1bb   : > { %v7240_v11 = vadd.f32 %v4880_v13, %v7113_v33  ;;  %v4883_v47 = vadd.f32 %v4882_v28, %v4881_v59  ;;  %v7243_v52 = vadd.f32 %v7160_v26, %v4977_v29 }
 0x1bd   : > { %v7246_v43 = vadd.f32 %v4883_v47, %v7115_v63  ;;  %v4978_v42 = vpop.f32.mrb[84].mxu0 }
 0x1be   : > { %v4979_v62 = vpop.f32.mrb[85].mxu0 }
 0x1bf   : > { %v4884_v54 = vpop.f32.mrb[80].mxu1  ;;  %v4980_v55 = vadd.f32 %v4979_v62, %v4978_v42  ;;  %v4981_v61 = vpop.f32.mrb[86].mxu0 }
 0x1c0   : > { %v4885_v15 = vpop.f32.mrb[81].mxu1  ;;  %v4982_v25 = vpop.f32.mrb[87].mxu0 }
 0x1c1   : > { %v4886_v53 = vadd.f32 %v4885_v15, %v4884_v54  ;;  %v4887_v10 = vpop.f32.mrb[82].mxu1  ;;  %v4983_v3 = vadd.f32 %v4982_v25, %v4981_v61  ;;  %v7249_v33 = vadd.f32 %v7170_v21, %v4980_v55 }
 0x1c2   : > { %v4888_v1 = vpop.f32.mrb[83].mxu1 }
 0x1c3   : > { %v7252_v26 = vadd.f32 %v4886_v53, %v7133_v40  ;;  %v4889_v58 = vadd.f32 %v4888_v1, %v4887_v10  ;;  %v7255_v63 = vadd.f32 %v7173_v39, %v4983_v3 }
 0x1c5   : > { %v7258_v22 = vadd.f32 %v4889_v58, %v7135_v57  ;;  %v4984_v41 = vpop.f32.mrb[88].mxu0 }
 0x1c6   : > { %v4985_v49 = vpop.f32.mrb[89].mxu0 }
 0x1c7   : > { %v4890_v2 = vpop.f32.mrb[84].mxu1  ;;  %v4986_v6 = vadd.f32 %v4985_v49, %v4984_v41  ;;  %v4987_v27 = vpop.f32.mrb[90].mxu0 }
 0x1c8   : > { %v4891_v20 = vpop.f32.mrb[85].mxu1  ;;  %v4988_v18 = vpop.f32.mrb[91].mxu0 }
 0x1c9   : > { %v4892_v21 = vadd.f32 %v4891_v20, %v4890_v2  ;;  %v4893_v30 = vpop.f32.mrb[86].mxu1  ;;  %v4989_v16 = vadd.f32 %v4988_v18, %v4987_v27  ;;  %v7261_v40 = vadd.f32 %v7180_v23, %v4986_v6 }
 0x1ca   : > { %v4894_v14 = vpop.f32.mrb[87].mxu1 }
 0x1cb   : > { %v7264_v39 = vadd.f32 %v4892_v21, %v7149_v4  ;;  %v4895_v31 = vadd.f32 %v4894_v14, %v4893_v30  ;;  %v7267_v57 = vadd.f32 %v7183_v12, %v4989_v16 }
 0x1cd   : > { %v7270_v13 = vadd.f32 %v4895_v31, %v7154_v5  ;;  %v4990_v59 = vpop.f32.mrb[92].mxu0 }
 0x1ce   : > { %v4991_v29 = vpop.f32.mrb[93].mxu0 }
 0x1cf   : > { %v4896_v28 = vpop.f32.mrb[88].mxu1  ;;  %v4992_v47 = vadd.f32 %v4991_v29, %v4990_v59  ;;  %v4993_v42 = vpop.f32.mrb[94].mxu0 }
 0x1d0   : > { %v4897_v62 = vpop.f32.mrb[89].mxu1  ;;  %v4994_v54 = vpop.f32.mrb[95].mxu0 }
 0x1d1   : > { %v4898_v23 = vadd.f32 %v4897_v62, %v4896_v28  ;;  %v4899_v55 = vpop.f32.mrb[90].mxu1  ;;  %v4995_v61 = vadd.f32 %v4994_v54, %v4993_v42  ;;  %v7273_v4 = vadd.f32 %v7189_v32, %v4992_v47 }
 0x1d2   : > { %v4900_v15 = vpop.f32.mrb[91].mxu1 }
 0x1d3   : > { %v7276_v12 = vadd.f32 %v4898_v23, %v7165_v17  ;;  %v4901_v25 = vadd.f32 %v4900_v15, %v4899_v55  ;;  %v7279_v5 = vadd.f32 %v7195_v19, %v4995_v61 }
 0x1d5   : > { %v7282_v53 = vadd.f32 %v4901_v25, %v7167_v60  ;;  %v4996_v10 = vpop.f32.mrb[96].mxu0 }
 0x1d6   : > { %v4997_v3 = vpop.f32.mrb[97].mxu0 }
 0x1d7   : > { %v4902_v1 = vpop.f32.mrb[92].mxu1  ;;  %v4998_v58 = vadd.f32 %v4997_v3, %v4996_v10  ;;  %v4999_v41 = vpop.f32.mrb[98].mxu0 }
 0x1d8   : > { %v4903_v49 = vpop.f32.mrb[93].mxu1  ;;  %v5000_v2 = vpop.f32.mrb[99].mxu0 }
 0x1d9   : > { %v4904_v32 = vadd.f32 %v4903_v49, %v4902_v1  ;;  %v4905_v6 = vpop.f32.mrb[94].mxu1  ;;  %v5001_v27 = vadd.f32 %v5000_v2, %v4999_v41  ;;  %v7285_v17 = vadd.f32 %v7201_v24, %v4998_v58 }
 0x1da   : > { %v4906_v20 = vpop.f32.mrb[95].mxu1 }
 0x1db   : > { %v5368_v19 = vadd.f32 %v4904_v32, %v7175_v36  ;;  %v4907_v18 = vadd.f32 %v4906_v20, %v4905_v6  ;;  %v7289_v60 = vadd.f32 %v7207_v34, %v5001_v27 }
 0x1dd   : > { %v5374_v21 = vadd.f32 %v4907_v18, %v7177_v48  ;;  %v5002_v30 = vpop.f32.mrb[100].mxu0 }
 0x1de   : > { %v5003_v16 = vpop.f32.mrb[101].mxu0 }
 0x1df   : > { %v5004_v14 = vadd.f32 %v5003_v16, %v5002_v30  ;;  %v5005_v31 = vpop.f32.mrb[102].mxu0 }
 0x1e0   : > { %v5006_v59 = vpop.f32.mrb[103].mxu0 }
 0x1e1   : > { %v5007_v29 = vadd.f32 %v5006_v59, %v5005_v31  ;;  %v7293_v28 = vadd.f32 %v7216_v44, %v5004_v14 }
 0x1e3   : > { %v7296_v24 = vadd.f32 %v7222_v45, %v5007_v29 }
 0x1e5   : > { %v5008_v47 = vpop.f32.mrb[104].mxu0 }
 0x1e6   : > { %v5009_v36 = vpop.f32.mrb[105].mxu0 }
 0x1e7   : > { %v5010_v42 = vadd.f32 %v5009_v36, %v5008_v47  ;;  %v5011_v62 = vpop.f32.mrb[106].mxu0 }
 0x1e8   : > { %v5012_v34 = vpop.f32.mrb[107].mxu0 }
 0x1e9   : > { %v5013_v54 = vadd.f32 %v5012_v34, %v5011_v62  ;;  %v7299_v48 = vadd.f32 %v7228_v50, %v5010_v42 }
 0x1eb   : > { %v7302_v23 = vadd.f32 %v7234_v9, %v5013_v54 }
 0x1ed   : > { %v5014_v55 = vpop.f32.mrb[108].mxu0 }
 0x1ee   : > { %v5015_v61 = vpop.f32.mrb[109].mxu0 }
 0x1ef   : > { %v5016_v15 = vadd.f32 %v5015_v61, %v5014_v55  ;;  %v5017_v44 = vpop.f32.mrb[110].mxu0 }
 0x1f0   : > { %v5018_v25 = vpop.f32.mrb[111].mxu0 }
 0x1f1   : > { %v5019_v10 = vadd.f32 %v5018_v25, %v5017_v44  ;;  %v7305_v45 = vadd.f32 %v7240_v11, %v5016_v15  ;;  %v7335_v44 = vld [vmem:[%s7558_s4] ss:$0 sm:$0xff] }
 0x1f2   : > { %v7341_v25 = vld [vmem:[%s7559_s5] ss:$0 sm:$0xff] }
 0x1f3   : > { %v7308_v3 = vadd.f32 %v7246_v43, %v5019_v10 }
 0x1f5   : > { %v5020_v1 = vpop.f32.mrb[112].mxu0 }
 0x1f6   : > { %v5021_v58 = vpop.f32.mrb[113].mxu0 }
 0x1f7   : > { %v5022_v41 = vadd.f32 %v5021_v58, %v5020_v1  ;;  %v5023_v50 = vpop.f32.mrb[114].mxu0 }
 0x1f8   : > { %v5024_v49 = vpop.f32.mrb[115].mxu0 }
 0x1f9   : > { %v5025_v2 = vadd.f32 %v5024_v49, %v5023_v50  ;;  %v7311_v9 = vadd.f32 %v7252_v26, %v5022_v41 }
 0x1fb   : > { %v7314_v32 = vadd.f32 %v7258_v22, %v5025_v2 }
 0x1fd   : > { %v5026_v6 = vpop.f32.mrb[116].mxu0 }
 0x1fe   : > { %v5027_v27 = vpop.f32.mrb[117].mxu0 }
 0x1ff   : > { %v5028_v20 = vadd.f32 %v5027_v27, %v5026_v6  ;;  %v5029_v11 = vpop.f32.mrb[118].mxu0 }
 0x200   : > { %v5030_v18 = vpop.f32.mrb[119].mxu0 }
 0x201   : > { %v5031_v30 = vadd.f32 %v5030_v18, %v5029_v11  ;;  %v7317_v43 = vadd.f32 %v7264_v39, %v5028_v20 }
 0x203   : > { %v7320_v16 = vadd.f32 %v7270_v13, %v5031_v30 }
 0x205   : > { %v5032_v14 = vpop.f32.mrb[120].mxu0 }
 0x206   : > { %v5033_v31 = vpop.f32.mrb[121].mxu0 }
 0x207   : > { %v5034_v59 = vadd.f32 %v5033_v31, %v5032_v14  ;;  %v5035_v26 = vpop.f32.mrb[122].mxu0 }
 0x208   : > { %v5036_v29 = vpop.f32.mrb[123].mxu0 }
 0x209   : > { %v5037_v47 = vadd.f32 %v5036_v29, %v5035_v26  ;;  %v7323_v22 = vadd.f32 %v7276_v12, %v5034_v59 }
 0x20b   : > { %v7326_v36 = vadd.f32 %v7282_v53, %v5037_v47 }
 0x20d   : > { %v5038_v42 = vpop.f32.mrb[124].mxu0 }
 0x20e   : > { %v5039_v62 = vpop.f32.mrb[125].mxu0 }
 0x20f   : > { %v5040_v34 = vadd.f32 %v5039_v62, %v5038_v42  ;;  %v5041_v39 = vpop.f32.mrb[126].mxu0 }
 0x210   : > { %v5042_v54 = vpop.f32.mrb[127].mxu0 }
 0x211   : > { %v5043_v55 = vadd.f32 %v5042_v54, %v5041_v39  ;;  %v7328_v13 = vadd.f32 %v5368_v19, %v5040_v34 }
 0x213   : > { %v7330_v61 = vadd.f32 %v5374_v21, %v5043_v55 }
 0x21f   : > { %v5206_v15 = vpop.f32.mrb[0].mxu1 }
 0x220   : > { %v5286_v12 = vadd.f32 %v7198_v38, %v5206_v15  ;;  %v3242_v53 = vpop.f32.mrb[1].mxu1 }
 0x221   : > { %v5289_v10 = vadd.f32 %v7186_v56, %v3242_v53  ;;  %v5207_v19 = vpop.f32.mrb[2].mxu1 }
 0x222   : > { %v3410_v21 = vmul.f32 %v5286_v12, %v7335_v44  ;;  %v5292_v1 = vadd.f32 %v7204_v51, %v5207_v19  ;;  %v3245_v58 = vpop.f32.mrb[3].mxu1 }
 0x223   : > { %v3408_v41 = vmul.f32 %v5289_v10, %v7335_v44  ;;  %v5295_v50 = vadd.f32 %v7192_v8, %v3245_v58 }
 0x224   : > { %v3449_v38 = vadd.f32 %v7341_v25, %v3410_v21  ;;  %v3411_v49 = vmul.f32 %v5292_v1, %v7335_v44 }
 0x225   : > { %v3447_v2 = vadd.f32 %v7341_v25, %v3408_v41  ;;  %v3409_v6 = vmul.f32 %v5295_v50, %v7335_v44 }
 0x226   : > { %vm3481_vm10 = vcmp.ge.f32.partialorder %v3449_v38, 0.0  ;;  %v3513_v56 = vmul.f32 0.22916667, %v3449_v38  ;;  %v3450_v27 = vadd.f32 %v7341_v25, %v3411_v49 }
 0x227   : > { %v3511_v20 = vmul.f32 0.22916667, %v3447_v2  ;;  %v3448_v51 = vadd.f32 %v7341_v25, %v3409_v6  ;;  %v5210_v11 = vpop.f32.mrb[4].mxu1  ;;  %vm3479_vm4 = vcmp.ge.f32.partialorder %v3447_v2, 0.0 }
 0x228   : > { %vm3482_vm5 = vcmp.ge.f32.partialorder %v3450_v27, 0.0  ;;  %v3514_v18 = vmul.f32 0.22916667, %v3450_v27  ;;  %v5298_v8 = vadd.f32 %v7225_v37, %v5210_v11  ;;  %v3258_v30 = vpop.f32.mrb[5].mxu1  ;;  %v3545_v14 = vsel %vm3481_vm10, %v3449_v38, %v3513_v56 }
 0x229   : > { %v3512_v31 = vmul.f32 0.22916667, %v3448_v51  ;;  %v5301_v59 = vadd.f32 %v7213_v35, %v3258_v30  ;;  %v5211_v26 = vpop.f32.mrb[6].mxu1  ;;  %vm3480_vm7 = vcmp.ge.f32.partialorder %v3448_v51, 0.0  ;;  %v3543_v34 = vsel %vm3479_vm4, %v3447_v2, %v3511_v20 }
 0x22a   : > { %v3546_v29 = vsel %vm3482_vm5, %v3450_v27, %v3514_v18  ;;  %v3414_v47 = vmul.f32 %v5298_v8, %v7335_v44  ;;  %v5304_v42 = vadd.f32 %v7231_v46, %v5211_v26  ;;  %v3261_v62 = vpop.f32.mrb[7].mxu1 }
 0x22b   : > { %v3576_v39 = vpack.c.bf16 %v3546_v29, %v3545_v14  ;;  %v3412_v54 = vmul.f32 %v5301_v59, %v7335_v44  ;;  %v5307_v55 = vadd.f32 %v7219_v0, %v3261_v62  ;;  %v3544_v37 = vsel %vm3480_vm7, %v3448_v51, %v3512_v31 }
 0x22c   : > { %v3453_v15 = vadd.f32 %v7341_v25, %v3414_v47  ;;  %v3415_v12 = vmul.f32 %v5304_v42, %v7335_v44  ;;  %v3575_v35 = vpack.c.bf16 %v3544_v37, %v3543_v34 }
 0x22d   : > { %v3451_v53 = vadd.f32 %v7341_v25, %v3412_v54  ;;  %v3413_v10 = vmul.f32 %v5307_v55, %v7335_v44 }
 0x22e   : > { %v3517_v19 = vmul.f32 0.22916667, %v3453_v15  ;;  %v3454_v46 = vadd.f32 %v7341_v25, %v3415_v12  ;;  %5252 = vmatprep.mubr.bf16.mxu0 %v3575_v35  ;;  %vm3485_vm2 = vcmp.ge.f32.partialorder %v3453_v15, 0.0 }
 0x22f   : > { %v3515_v21 = vmul.f32 0.22916667, %v3451_v53  ;;  %v3452_v1 = vadd.f32 %v7341_v25, %v3413_v10  ;;  %v5214_v58 = vpop.f32.mrb[8].mxu1  ;;  %5253 = vmatmul.mubr.bf16.vlgmr.msra.gmra.mrb[128].mxu0 %v3576_v39  ;;  %vm3483_vm6 = vcmp.ge.f32.partialorder %v3451_v53, 0.0 }
 0x230   : > { %v3518_v0 = vmul.f32 0.22916667, %v3454_v46  ;;  %v5310_v41 = vadd.f32 %v7249_v33, %v5214_v58  ;;  %v3274_v50 = vpop.f32.mrb[9].mxu1  ;;  %vm3486_vm3 = vcmp.ge.f32.partialorder %v3454_v46, 0.0  ;;  %v3549_v6 = vsel %vm3485_vm2, %v3453_v15, %v3517_v19 }
 0x231   : > { %v3516_v38 = vmul.f32 0.22916667, %v3452_v1  ;;  %v5313_v49 = vadd.f32 %v7237_v7, %v3274_v50  ;;  %v5215_v2 = vpop.f32.mrb[10].mxu1  ;;  %vm3484_vm1 = vcmp.ge.f32.partialorder %v3452_v1, 0.0  ;;  %v3547_v51 = vsel %vm3483_vm6, %v3451_v53, %v3515_v21 }
 0x232   : > { %v3418_v56 = vmul.f32 %v5310_v41, %v7335_v44  ;;  %v5316_v27 = vadd.f32 %v7255_v63, %v5215_v2  ;;  %v3277_v20 = vpop.f32.mrb[11].mxu1  ;;  %v3550_v11 = vsel %vm3486_vm3, %v3454_v46, %v3518_v0 }
 0x233   : > { %v3416_v18 = vmul.f32 %v5313_v49, %v7335_v44  ;;  %v5319_v8 = vadd.f32 %v7243_v52, %v3277_v20  ;;  %v3548_v33 = vsel %vm3484_vm1, %v3452_v1, %v3516_v38  ;;  %v3578_v30 = vpack.c.bf16 %v3550_v11, %v3549_v6 }
 0x234   : > { %v3457_v14 = vadd.f32 %v7341_v25, %v3418_v56  ;;  %v3419_v7 = vmul.f32 %v5316_v27, %v7335_v44  ;;  %v3577_v31 = vpack.c.bf16 %v3548_v33, %v3547_v51 }
 0x235   : > { %v3455_v59 = vadd.f32 %v7341_v25, %v3416_v18  ;;  %v3417_v26 = vmul.f32 %v5319_v8, %v7335_v44 }
 0x236   : > { %v3521_v29 = vmul.f32 0.22916667, %v3457_v14  ;;  %v3458_v63 = vadd.f32 %v7341_v25, %v3419_v7  ;;  %5256 = vmatprep.mubr.bf16.mxu0 %v3577_v31  ;;  %vm3489_vm15 = vcmp.ge.f32.partialorder %v3457_v14, 0.0 }
 0x237   : > { %v3519_v47 = vmul.f32 0.22916667, %v3455_v59  ;;  %v3456_v42 = vadd.f32 %v7341_v25, %v3417_v26  ;;  %v5218_v52 = vpop.f32.mrb[12].mxu1  ;;  %5257 = vmatmul.mubr.bf16.gmra.mrb[132].mxu0 %v3578_v30  ;;  %vm3487_vm14 = vcmp.ge.f32.partialorder %v3455_v59, 0.0 }
 0x238   : > { %v3522_v62 = vmul.f32 0.22916667, %v3458_v63  ;;  %v5322_v34 = vadd.f32 %v7273_v4, %v5218_v52  ;;  %v3290_v39 = vpop.f32.mrb[13].mxu1  ;;  %vm3490_vm13 = vcmp.ge.f32.partialorder %v3458_v63, 0.0  ;;  %v3553_v15 = vsel %vm3489_vm15, %v3457_v14, %v3521_v29 }
 0x239   : > { %v3520_v54 = vmul.f32 0.22916667, %v3456_v42  ;;  %v5325_v55 = vadd.f32 %v7261_v40, %v3290_v39  ;;  %v5219_v37 = vpop.f32.mrb[14].mxu1  ;;  %vm3488_vm8 = vcmp.ge.f32.partialorder %v3456_v42, 0.0  ;;  %v3551_v10 = vsel %vm3487_vm14, %v3455_v59, %v3519_v47 }
 0x23a   : > { %v3422_v12 = vmul.f32 %v5322_v34, %v7335_v44  ;;  %v5328_v35 = vadd.f32 %v7279_v5, %v5219_v37  ;;  %v3293_v53 = vpop.f32.mrb[15].mxu1  ;;  %v3554_v19 = vsel %vm3490_vm13, %v3458_v63, %v3522_v62 }
 0x23b   : > { %v3420_v46 = vmul.f32 %v5325_v55, %v7335_v44  ;;  %v5331_v21 = vadd.f32 %v7267_v57, %v3293_v53  ;;  %v3552_v4 = vsel %vm3488_vm8, %v3456_v42, %v3520_v54  ;;  %v3580_v1 = vpack.c.bf16 %v3554_v19, %v3553_v15 }
 0x23c   : > { %v3461_v58 = vadd.f32 %v7341_v25, %v3422_v12  ;;  %v3423_v40 = vmul.f32 %v5328_v35, %v7335_v44  ;;  %v3579_v0 = vpack.c.bf16 %v3552_v4, %v3551_v10 }
 0x23d   : > { %v3459_v41 = vadd.f32 %v7341_v25, %v3420_v46  ;;  %v3421_v50 = vmul.f32 %v5331_v21, %v7335_v44 }
 0x23e   : > { %v3525_v38 = vmul.f32 0.22916667, %v3461_v58  ;;  %v3462_v5 = vadd.f32 %v7341_v25, %v3423_v40  ;;  %5260 = vmatprep.mubr.bf16.mxu0 %v3579_v0  ;;  %vm3493_vm0 = vcmp.ge.f32.partialorder %v3461_v58, 0.0 }
 0x23f   : > { %v3523_v49 = vmul.f32 0.22916667, %v3459_v41  ;;  %v3460_v2 = vadd.f32 %v7341_v25, %v3421_v50  ;;  %v5222_v57 = vpop.f32.mrb[16].mxu1  ;;  %5261 = vmatmul.mubr.bf16.gmra.mrb[136].mxu0 %v3580_v1  ;;  %vm3491_vm9 = vcmp.ge.f32.partialorder %v3459_v41, 0.0 }
 0x240   : > { %v3526_v6 = vmul.f32 0.22916667, %v3462_v5  ;;  %v5334_v56 = vadd.f32 %v7293_v28, %v5222_v57  ;;  %v3306_v27 = vpop.f32.mrb[17].mxu1  ;;  %vm3494_vm12 = vcmp.ge.f32.partialorder %v3462_v5, 0.0  ;;  %v3557_v18 = vsel %vm3493_vm0, %v3461_v58, %v3525_v38 }
 0x241   : > { %v3524_v20 = vmul.f32 0.22916667, %v3460_v2  ;;  %v5337_v51 = vadd.f32 %v7285_v17, %v3306_v27  ;;  %v5223_v11 = vpop.f32.mrb[18].mxu1  ;;  %vm3492_vm11 = vcmp.ge.f32.partialorder %v3460_v2, 0.0  ;;  %v3555_v14 = vsel %vm3491_vm9, %v3459_v41, %v3523_v49 }
 0x242   : > { %v3426_v8 = vmul.f32 %v5334_v56, %v7335_v44  ;;  %v5340_v33 = vadd.f32 %v7296_v24, %v5223_v11  ;;  %v3309_v30 = vpop.f32.mrb[19].mxu1  ;;  %v3558_v7 = vsel %vm3494_vm12, %v3462_v5, %v3526_v6 }
 0x243   : > { %v3424_v31 = vmul.f32 %v5337_v51, %v7335_v44  ;;  %v5343_v59 = vadd.f32 %v7289_v60, %v3309_v30  ;;  %v3556_v28 = vsel %vm3492_vm11, %v3460_v2, %v3524_v20  ;;  %v3582_v26 = vpack.c.bf16 %v3558_v7, %v3557_v18 }
 0x244   : > { %v3465_v29 = vadd.f32 %v7341_v25, %v3426_v8  ;;  %v3427_v17 = vmul.f32 %v5340_v33, %v7335_v44  ;;  %v3581_v63 = vpack.c.bf16 %v3556_v28, %v3555_v14 }
 0x245   : > { %v3463_v47 = vadd.f32 %v7341_v25, %v3424_v31  ;;  %v3425_v42 = vmul.f32 %v5343_v59, %v7335_v44 }
 0x246   : > { %v3529_v52 = vmul.f32 0.22916667, %v3465_v29  ;;  %v3466_v24 = vadd.f32 %v7341_v25, %v3427_v17  ;;  %5264 = vmatprep.mubr.bf16.mxu0 %v3581_v63  ;;  %vm3497_vm10 = vcmp.ge.f32.partialorder %v3465_v29, 0.0 }
 0x247   : > { %v3527_v62 = vmul.f32 0.22916667, %v3463_v47  ;;  %v3464_v34 = vadd.f32 %v7341_v25, %v3425_v42  ;;  %v5226_v60 = vpop.f32.mrb[20].mxu1  ;;  %5265 = vmatmul.mubr.bf16.gmra.mrb[140].mxu0 %v3582_v26  ;;  %vm3495_vm4 = vcmp.ge.f32.partialorder %v3463_v47, 0.0 }
 0x248   : > { %v3530_v39 = vmul.f32 0.22916667, %v3466_v24  ;;  %v5346_v54 = vadd.f32 %v7305_v45, %v5226_v60  ;;  %v3322_v55 = vpop.f32.mrb[21].mxu1  ;;  %vm3498_vm5 = vcmp.ge.f32.partialorder %v3466_v24, 0.0  ;;  %v3561_v35 = vsel %vm3497_vm10, %v3465_v29, %v3529_v52 }
 0x249   : > { %v3528_v37 = vmul.f32 0.22916667, %v3464_v34  ;;  %v5349_v15 = vadd.f32 %v7299_v48, %v3322_v55  ;;  %v5227_v12 = vpop.f32.mrb[22].mxu1  ;;  %vm3496_vm7 = vcmp.ge.f32.partialorder %v3464_v34, 0.0  ;;  %v3559_v46 = vsel %vm3495_vm4, %v3463_v47, %v3527_v62 }
 0x24a   : > { %v3430_v53 = vmul.f32 %v5346_v54, %v7335_v44  ;;  %v5352_v10 = vadd.f32 %v7308_v3, %v5227_v12  ;;  %v3325_v19 = vpop.f32.mrb[23].mxu1  ;;  %v3562_v21 = vsel %vm3498_vm5, %v3466_v24, %v3530_v39 }
 0x24b   : > { %v3428_v4 = vmul.f32 %v5349_v15, %v7335_v44  ;;  %v5355_v1 = vadd.f32 %v7302_v23, %v3325_v19  ;;  %v3560_v45 = vsel %vm3496_vm7, %v3464_v34, %v3528_v37  ;;  %v3584_v58 = vpack.c.bf16 %v3562_v21, %v3561_v35 }
 0x24c   : > { %v3469_v40 = vadd.f32 %v7341_v25, %v3430_v53  ;;  %v3431_v48 = vmul.f32 %v5352_v10, %v7335_v44  ;;  %v3583_v0 = vpack.c.bf16 %v3560_v45, %v3559_v46 }
 0x24d   : > { %v3467_v41 = vadd.f32 %v7341_v25, %v3428_v4  ;;  %v3429_v50 = vmul.f32 %v5355_v1, %v7335_v44 }
 0x24e   : > { %v3533_v38 = vmul.f32 0.22916667, %v3469_v40  ;;  %v3470_v3 = vadd.f32 %v7341_v25, %v3431_v48  ;;  %5268 = vmatprep.mubr.bf16.mxu0 %v3583_v0  ;;  %vm3501_vm2 = vcmp.ge.f32.partialorder %v3469_v40, 0.0 }
 0x24f   : > { %v3531_v5 = vmul.f32 0.22916667, %v3467_v41  ;;  %v3468_v49 = vadd.f32 %v7341_v25, %v3429_v50  ;;  %v5230_v23 = vpop.f32.mrb[24].mxu1  ;;  %5269 = vmatmul.mubr.bf16.gmra.mrb[144].mxu0 %v3584_v58  ;;  %vm3499_vm6 = vcmp.ge.f32.partialorder %v3467_v41, 0.0 }
 0x250   : > { %v3534_v2 = vmul.f32 0.22916667, %v3470_v3  ;;  %v5358_v57 = vadd.f32 %v7317_v43, %v5230_v23  ;;  %v3338_v6 = vpop.f32.mrb[25].mxu1  ;;  %vm3502_vm3 = vcmp.ge.f32.partialorder %v3470_v3, 0.0  ;;  %v3565_v51 = vsel %vm3501_vm2, %v3469_v40, %v3533_v38 }
 0x251   : > { %v3532_v56 = vmul.f32 0.22916667, %v3468_v49  ;;  %v5361_v27 = vadd.f32 %v7311_v9, %v3338_v6  ;;  %v5231_v20 = vpop.f32.mrb[26].mxu1  ;;  %vm3500_vm1 = vcmp.ge.f32.partialorder %v3468_v49, 0.0  ;;  %v3563_v33 = vsel %vm3499_vm6, %v3467_v41, %v3531_v5  ;;  %v4591_v5 = vld [vmem:[%s5725_s16 + $0x20] sm:$0xff] }
 0x252   : > { %v3434_v11 = vmul.f32 %v5358_v57, %v7335_v44  ;;  %v5364_v18 = vadd.f32 %v7320_v16, %v5231_v20  ;;  %v3341_v8 = vpop.f32.mrb[27].mxu1  ;;  %v3566_v30 = vsel %vm3502_vm3, %v3470_v3, %v3534_v2  ;;  %v4589_v2 = vld [vmem:[%s5725_s16 + $0x10] sm:$0xff] }
 0x253   : > { %v3432_v14 = vmul.f32 %v5361_v27, %v7335_v44  ;;  %v5367_v7 = vadd.f32 %v7314_v32, %v3341_v8  ;;  %v3564_v43 = vsel %vm3500_vm1, %v3468_v49, %v3532_v56  ;;  %v3586_v31 = vpack.c.bf16 %v3566_v30, %v3565_v51  ;;  %v4592_v56 = vld [vmem:[%s5725_s16 + $0x28] sm:$0xff] }
 0x254   : > { %v3473_v59 = vadd.f32 %v7341_v25, %v3434_v11  ;;  %v3435_v9 = vmul.f32 %v5364_v18, %v7335_v44  ;;  %v3585_v28 = vpack.c.bf16 %v3564_v43, %v3563_v33  ;;  %v4590_v11 = vld [vmem:[%s5725_s16 + $0x18] sm:$0xff] }
 0x255   : > { %v3471_v26 = vadd.f32 %v7341_v25, %v3432_v14  ;;  %v3433_v29 = vmul.f32 %v5367_v7, %v7335_v44  ;;  %v4595_v7 = vld [vmem:[%s5725_s16 + $0x40] sm:$0xff] }
 0x256   : > { %v3537_v17 = vmul.f32 0.22916667, %v3473_v59  ;;  %v3474_v16 = vadd.f32 %v7341_v25, %v3435_v9  ;;  %5272 = vmatprep.mubr.bf16.mxu0 %v3585_v28  ;;  %vm3505_vm15 = vcmp.ge.f32.partialorder %v3473_v59, 0.0 }
 0x257   : > { %v3535_v63 = vmul.f32 0.22916667, %v3471_v26  ;;  %v3472_v47 = vadd.f32 %v7341_v25, %v3433_v29  ;;  %v5234_v32 = vpop.f32.mrb[28].mxu1  ;;  %5273 = vmatmul.mubr.bf16.gmra.mrb[148].mxu0 %v3586_v31  ;;  %vm3503_vm14 = vcmp.ge.f32.partialorder %v3471_v26, 0.0 }
 0x258   : > { %v3538_v42 = vmul.f32 0.22916667, %v3474_v16  ;;  %v5370_v52 = vadd.f32 %v7328_v13, %v5234_v32  ;;  %v3354_v24 = vpop.f32.mrb[29].mxu1  ;;  %vm3506_vm13 = vcmp.ge.f32.partialorder %v3474_v16, 0.0  ;;  %v3569_v39 = vsel %vm3505_vm15, %v3473_v59, %v3537_v17  ;;  %v4593_v59 = vld [vmem:[%s5725_s16 + $0x30] sm:$0xff] }
 0x259   : > { %v3536_v62 = vmul.f32 0.22916667, %v3472_v47  ;;  %v5373_v34 = vadd.f32 %v7323_v22, %v3354_v24  ;;  %v5235_v60 = vpop.f32.mrb[30].mxu1  ;;  %vm3504_vm8 = vcmp.ge.f32.partialorder %v3472_v47, 0.0  ;;  %v3567_v15 = vsel %vm3503_vm14, %v3471_v26, %v3535_v63  ;;  %v4596_v26 = vld [vmem:[%s5725_s16 + $0x48] sm:$0xff]  ;;  %v4594_v63 = vld [vmem:[%s5725_s16 + $0x38] sm:$0xff] }
 0x25a   : > { %v3438_v54 = vmul.f32 %v5370_v52, %v7335_v44  ;;  %v5376_v55 = vadd.f32 %v7330_v61, %v5235_v60  ;;  %v3357_v37 = vpop.f32.mrb[31].mxu1  ;;  %v3570_v12 = vsel %vm3506_vm13, %v3474_v16, %v3538_v42 }
 0x25b   : > { %v3436_v35 = vmul.f32 %v5373_v34, %v7335_v44  ;;  %v5379_v53 = vadd.f32 %v7326_v36, %v3357_v37  ;;  %v3568_v13 = vsel %vm3504_vm8, %v3472_v47, %v3536_v62  ;;  %v3588_v10 = vpack.c.bf16 %v3570_v12, %v3569_v39  ;;  %v4599_v62 = vld [vmem:[%s5725_s16 + $0x60] sm:$0xff]  ;;  %v4597_v39 = vld [vmem:[%s5725_s16 + $0x50] sm:$0xff]  ;;  %v4600_v37 = vld [vmem:[%s5725_s16 + $0x68] sm:$0xff] }
 0x25c   : > { %v3477_v19 = vadd.f32 %v7341_v25, %v3438_v54  ;;  %v3439_v22 = vmul.f32 %v5376_v55, %v7335_v44  ;;  %v3587_v46 = vpack.c.bf16 %v3568_v13, %v3567_v15 }
 0x25d   : > { %v3475_v21 = vadd.f32 %v7341_v25, %v3436_v35  ;;  %v3437_v4 = vmul.f32 %v5379_v53, %v7335_v44  ;;  %v4598_v53 = vld [vmem:[%s5725_s16 + $0x58] sm:$0xff] }
 0x25e   : > { %v3541_v1 = vmul.f32 0.22916667, %v3477_v19  ;;  %v3478_v61 = vadd.f32 %v7341_v25, %v3439_v22  ;;  %5276 = vmatprep.mubr.bf16.mxu0 %v3587_v46  ;;  %vm3509_vm0 = vcmp.ge.f32.partialorder %v3477_v19, 0.0 }
 0x25f   : > { %v3539_v45 = vmul.f32 0.22916667, %v3475_v21  ;;  %v3476_v58 = vadd.f32 %v7341_v25, %v3437_v4  ;;  %5277 = vmatmul.mubr.bf16.gmra.mrb[152].mxu0 %v3588_v10  ;;  %vm3507_vm9 = vcmp.ge.f32.partialorder %v3475_v21, 0.0  ;;  %v7441_v25 = vld [vmem:[%s7561_s7] ss:$0 sm:$0xff] }
 0x260   : > { %v3542_v36 = vmul.f32 0.22916667, %v3478_v61  ;;  %vm3510_vm12 = vcmp.ge.f32.partialorder %v3478_v61, 0.0  ;;  %v3573_v48 = vsel %vm3509_vm0, %v3477_v19, %v3541_v1 }
 0x261   : > { %v3540_v40 = vmul.f32 0.22916667, %v3476_v58  ;;  %vm3508_vm11 = vcmp.ge.f32.partialorder %v3476_v58, 0.0  ;;  %v3571_v44 = vsel %vm3507_vm9, %v3475_v21, %v3539_v45  ;;  %v4603_v21 = vld [vmem:[%s5725_s16 + $0x80] sm:$0xff] }
 0x262   : > { %v3574_v0 = vsel %vm3510_vm12, %v3478_v61, %v3542_v36  ;;  %v4601_v61 = vld [vmem:[%s5725_s16 + $0x70] sm:$0xff]  ;;  %v4604_v36 = vld [vmem:[%s5725_s16 + $0x88] sm:$0xff] }
 0x263   : > { %v3572_v41 = vsel %vm3508_vm11, %v3476_v58, %v3540_v40  ;;  %v3590_v50 = vpack.c.bf16 %v3574_v0, %v3573_v48 }
 0x264   : > { %v3589_v38 = vpack.c.bf16 %v3572_v41, %v3571_v44  ;;  %v4602_v44 = vld [vmem:[%s5725_s16 + $0x78] sm:$0xff] }
 0x266   : > { %5280 = vmatprep.mubr.bf16.mxu0 %v3589_v38 }
 0x267   : > { %5281 = vmatmul.mubr.bf16.gmra.mrb[156].mxu0 %v3590_v50 }
 0x302   : > { %v5254_v3 = vpop.f32.mrb[128].mxu0 }
 0x303   : > { %v3705_v49 = vadd.f32 %v5254_v3, %v7441_v25  ;;  %v3696_v23 = vpop.f32.mrb[129].mxu0 }
 0x304   : > { %v3697_v57 = vadd.f32 %v7441_v25, %v3696_v23  ;;  %v5255_v6 = vpop.f32.mrb[130].mxu0 }
 0x305   : > { %v3858_v27 = vadd.f32 %v4591_v5, %v3705_v49  ;;  %v3708_v20 = vadd.f32 %v5255_v6, %v7441_v25  ;;  %v3699_v51 = vpop.f32.mrb[131].mxu0  ;;  %v4607_v49 = vld [vmem:[%s5725_s16 + $0xa0] sm:$0xff] }
 0x306   : > { %v3856_v18 = vadd.f32 %v4589_v2, %v3697_v57  ;;  %v3700_v8 = vadd.f32 %v7441_v25, %v3699_v51  ;;  %v4605_v57 = vld [vmem:[%s5725_s16 + $0x90] sm:$0xff] }
 0x307   : > { %3890 = vst [vmem:[%s7450_s18 + $0x10] sm:$0xff] %v3858_v27  ;;  %v3859_v33 = vadd.f32 %v4592_v56, %v3708_v20  ;;  %v4608_v27 = vld [vmem:[%s5725_s16 + $0xa8] sm:$0xff] }
 0x308   : > { %3888 = vst [vmem:[%s7450_s18] sm:$0xff] %v3856_v18  ;;  %v3857_v30 = vadd.f32 %v4590_v11, %v3700_v8  ;;  %v4606_v18 = vld [vmem:[%s5725_s16 + $0x98] sm:$0xff] }
 0x309   : > { %3891 = vst [vmem:[%s7450_s18 + $0x18] sm:$0xff] %v3859_v33 }
 0x30a   : > { %3889 = vst [vmem:[%s7450_s18 + $0x8] sm:$0xff] %v3857_v30  ;;  %v5258_v14 = vpop.f32.mrb[132].mxu0 }
 0x30b   : > { %v3721_v43 = vadd.f32 %v5258_v14, %v7441_v25  ;;  %v3712_v31 = vpop.f32.mrb[133].mxu0 }
 0x30c   : > { %v3713_v9 = vadd.f32 %v7441_v25, %v3712_v31  ;;  %v5259_v28 = vpop.f32.mrb[134].mxu0 }
 0x30d   : > { %v3862_v29 = vadd.f32 %v4595_v7, %v3721_v43  ;;  %v3724_v17 = vadd.f32 %v5259_v28, %v7441_v25  ;;  %v3715_v16 = vpop.f32.mrb[135].mxu0  ;;  %v4611_v43 = vld [vmem:[%s5725_s16 + $0xc0] sm:$0xff] }
 0x30e   : > { %v3860_v47 = vadd.f32 %v4593_v59, %v3713_v9  ;;  %v3716_v32 = vadd.f32 %v7441_v25, %v3715_v16  ;;  %v4609_v9 = vld [vmem:[%s5725_s16 + $0xb0] sm:$0xff] }
 0x30f   : > { %3894 = vst [vmem:[%s7450_s18 + $0x30] sm:$0xff] %v3862_v29  ;;  %v3863_v42 = vadd.f32 %v4596_v26, %v3724_v17  ;;  %v4612_v29 = vld [vmem:[%s5725_s16 + $0xc8] sm:$0xff] }
 0x310   : > { %3892 = vst [vmem:[%s7450_s18 + $0x20] sm:$0xff] %v3860_v47  ;;  %v3861_v52 = vadd.f32 %v4594_v63, %v3716_v32  ;;  %v4610_v47 = vld [vmem:[%s5725_s16 + $0xb8] sm:$0xff] }
 0x311   : > { %3895 = vst [vmem:[%s7450_s18 + $0x38] sm:$0xff] %v3863_v42 }
 0x312   : > { %3893 = vst [vmem:[%s7450_s18 + $0x28] sm:$0xff] %v3861_v52  ;;  %v5262_v24 = vpop.f32.mrb[136].mxu0 }
 0x313   : > { %v3737_v34 = vadd.f32 %v5262_v24, %v7441_v25  ;;  %v3728_v60 = vpop.f32.mrb[137].mxu0 }
 0x314   : > { %v3729_v54 = vadd.f32 %v7441_v25, %v3728_v60  ;;  %v5263_v55 = vpop.f32.mrb[138].mxu0 }
 0x315   : > { %v3866_v15 = vadd.f32 %v4599_v62, %v3737_v34  ;;  %v3740_v12 = vadd.f32 %v5263_v55, %v7441_v25  ;;  %v3731_v35 = vpop.f32.mrb[139].mxu0  ;;  %v4615_v34 = vld [vmem:[%s5725_s16 + $0xe0] sm:$0xff] }
 0x316   : > { %v3864_v13 = vadd.f32 %v4597_v39, %v3729_v54  ;;  %v3732_v10 = vadd.f32 %v7441_v25, %v3731_v35  ;;  %v4613_v54 = vld [vmem:[%s5725_s16 + $0xd0] sm:$0xff] }
 0x317   : > { %3898 = vst [vmem:[%s7450_s18 + $0x50] sm:$0xff] %v3866_v15  ;;  %v3867_v19 = vadd.f32 %v4600_v37, %v3740_v12  ;;  %v4616_v15 = vld [vmem:[%s5725_s16 + $0xe8] sm:$0xff] }
 0x318   : > { %3896 = vst [vmem:[%s7450_s18 + $0x40] sm:$0xff] %v3864_v13  ;;  %v3865_v22 = vadd.f32 %v4598_v53, %v3732_v10  ;;  %v4614_v13 = vld [vmem:[%s5725_s16 + $0xd8] sm:$0xff] }
 0x319   : > { %3899 = vst [vmem:[%s7450_s18 + $0x58] sm:$0xff] %v3867_v19 }
 0x31a   : > { %3897 = vst [vmem:[%s7450_s18 + $0x48] sm:$0xff] %v3865_v22  ;;  %v5266_v46 = vpop.f32.mrb[140].mxu0 }
 0x31b   : > { %v3753_v4 = vadd.f32 %v5266_v46, %v7441_v25  ;;  %v3744_v1 = vpop.f32.mrb[141].mxu0 }
 0x31c   : > { %v3745_v45 = vadd.f32 %v7441_v25, %v3744_v1  ;;  %v5267_v58 = vpop.f32.mrb[142].mxu0 }
 0x31d   : > { %v3870_v40 = vadd.f32 %v4603_v21, %v3753_v4  ;;  %v3756_v48 = vadd.f32 %v5267_v58, %v7441_v25  ;;  %v3747_v0 = vpop.f32.mrb[143].mxu0  ;;  %v4619_v4 = vld [vmem:[%s5725_s16 + $0x100] sm:$0xff] }
 0x31e   : > { %v3868_v41 = vadd.f32 %v4601_v61, %v3745_v45  ;;  %v3748_v50 = vadd.f32 %v7441_v25, %v3747_v0  ;;  %v4617_v45 = vld [vmem:[%s5725_s16 + $0xf0] sm:$0xff] }
 0x31f   : > { %3902 = vst [vmem:[%s7450_s18 + $0x70] sm:$0xff] %v3870_v40  ;;  %v3871_v38 = vadd.f32 %v4604_v36, %v3756_v48  ;;  %v4620_v40 = vld [vmem:[%s5725_s16 + $0x108] sm:$0xff] }
 0x320   : > { %3900 = vst [vmem:[%s7450_s18 + $0x60] sm:$0xff] %v3868_v41  ;;  %v3869_v3 = vadd.f32 %v4602_v44, %v3748_v50  ;;  %v4618_v41 = vld [vmem:[%s5725_s16 + $0xf8] sm:$0xff] }
 0x321   : > { %3903 = vst [vmem:[%s7450_s18 + $0x78] sm:$0xff] %v3871_v38 }
 0x322   : > { %3901 = vst [vmem:[%s7450_s18 + $0x68] sm:$0xff] %v3869_v3  ;;  %v5270_v5 = vpop.f32.mrb[144].mxu0 }
 0x323   : > { %v3769_v23 = vadd.f32 %v5270_v5, %v7441_v25  ;;  %v3760_v2 = vpop.f32.mrb[145].mxu0 }
 0x324   : > { %v3761_v6 = vadd.f32 %v7441_v25, %v3760_v2  ;;  %v5271_v56 = vpop.f32.mrb[146].mxu0 }
 0x325   : > { %v3874_v20 = vadd.f32 %v4607_v49, %v3769_v23  ;;  %v3772_v51 = vadd.f32 %v5271_v56, %v7441_v25  ;;  %v3763_v11 = vpop.f32.mrb[147].mxu0 }
 0x326   : > { %v3872_v8 = vadd.f32 %v4605_v57, %v3761_v6  ;;  %v3764_v33 = vadd.f32 %v7441_v25, %v3763_v11 }
 0x327   : > { %3906 = vst [vmem:[%s7450_s18 + $0x90] sm:$0xff] %v3874_v20  ;;  %v3875_v30 = vadd.f32 %v4608_v27, %v3772_v51 }
 0x328   : > { %3904 = vst [vmem:[%s7450_s18 + $0x80] sm:$0xff] %v3872_v8  ;;  %v3873_v14 = vadd.f32 %v4606_v18, %v3764_v33 }
 0x329   : > { %3907 = vst [vmem:[%s7450_s18 + $0x98] sm:$0xff] %v3875_v30 }
 0x32a   : > { %3905 = vst [vmem:[%s7450_s18 + $0x88] sm:$0xff] %v3873_v14  ;;  %v5274_v7 = vpop.f32.mrb[148].mxu0 }
 0x32b   : > { %v3785_v31 = vadd.f32 %v5274_v7, %v7441_v25  ;;  %v3776_v59 = vpop.f32.mrb[149].mxu0 }
 0x32c   : > { %v3777_v28 = vadd.f32 %v7441_v25, %v3776_v59  ;;  %v5275_v26 = vpop.f32.mrb[150].mxu0 }
 0x32d   : > { %v3878_v17 = vadd.f32 %v4611_v43, %v3785_v31  ;;  %v3788_v16 = vadd.f32 %v5275_v26, %v7441_v25  ;;  %v3779_v63 = vpop.f32.mrb[151].mxu0 }
 0x32e   : > { %v3876_v32 = vadd.f32 %v4609_v9, %v3777_v28  ;;  %v3780_v42 = vadd.f32 %v7441_v25, %v3779_v63 }
 0x32f   : > { %3910 = vst [vmem:[%s7450_s18 + $0xb0] sm:$0xff] %v3878_v17  ;;  %v3879_v52 = vadd.f32 %v4612_v29, %v3788_v16 }
 0x330   : > { %3908 = vst [vmem:[%s7450_s18 + $0xa0] sm:$0xff] %v3876_v32  ;;  %v3877_v24 = vadd.f32 %v4610_v47, %v3780_v42 }
 0x331   : > { %3911 = vst [vmem:[%s7450_s18 + $0xb8] sm:$0xff] %v3879_v52 }
 0x332   : > { %3909 = vst [vmem:[%s7450_s18 + $0xa8] sm:$0xff] %v3877_v24  ;;  %v5278_v62 = vpop.f32.mrb[152].mxu0 }
 0x333   : > { %v3801_v60 = vadd.f32 %v5278_v62, %v7441_v25  ;;  %v3792_v39 = vpop.f32.mrb[153].mxu0 }
 0x334   : > { %v3793_v55 = vadd.f32 %v7441_v25, %v3792_v39  ;;  %v5279_v37 = vpop.f32.mrb[154].mxu0 }
 0x335   : > { %v3882_v12 = vadd.f32 %v4615_v34, %v3801_v60  ;;  %v3804_v35 = vadd.f32 %v5279_v37, %v7441_v25  ;;  %v3795_v53 = vpop.f32.mrb[155].mxu0 }
 0x336   : > { %v3880_v10 = vadd.f32 %v4613_v54, %v3793_v55  ;;  %v3796_v19 = vadd.f32 %v7441_v25, %v3795_v53 }
 0x337   : > { %3914 = vst [vmem:[%s7450_s18 + $0xd0] sm:$0xff] %v3882_v12  ;;  %v3883_v22 = vadd.f32 %v4616_v15, %v3804_v35 }
 0x338   : > { %3912 = vst [vmem:[%s7450_s18 + $0xc0] sm:$0xff] %v3880_v10  ;;  %v3881_v46 = vadd.f32 %v4614_v13, %v3796_v19 }
 0x339   : > { %3915 = vst [vmem:[%s7450_s18 + $0xd8] sm:$0xff] %v3883_v22 }
 0x33a   : > { %3913 = vst [vmem:[%s7450_s18 + $0xc8] sm:$0xff] %v3881_v46  ;;  %v5282_v21 = vpop.f32.mrb[156].mxu0 }
 0x33b   : > { %v3817_v1 = vadd.f32 %v5282_v21, %v7441_v25  ;;  %v3808_v61 = vpop.f32.mrb[157].mxu0 }
 0x33c   : > { %v3809_v58 = vadd.f32 %v7441_v25, %v3808_v61  ;;  %v5283_v36 = vpop.f32.mrb[158].mxu0 }
 0x33d   : > { %v3886_v48 = vadd.f32 %v4619_v4, %v3817_v1  ;;  %v3820_v0 = vadd.f32 %v5283_v36, %v7441_v25  ;;  %v3811_v44 = vpop.f32.mrb[159].mxu0 }
 0x33e   : > { %v3884_v50 = vadd.f32 %v4617_v45, %v3809_v58  ;;  %v3812_v38 = vadd.f32 %v7441_v25, %v3811_v44 }
 0x33f   : > { %3918 = vst [vmem:[%s7450_s18 + $0xf0] sm:$0xff] %v3886_v48  ;;  %v3887_v3 = vadd.f32 %v4620_v40, %v3820_v0 }
 0x340   : > { %3916 = vst [vmem:[%s7450_s18 + $0xe0] sm:$0xff] %v3884_v50  ;;  %v3885_v5 = vadd.f32 %v4618_v41, %v3812_v38 }
 0x341   : > { %3919 = vst [vmem:[%s7450_s18 + $0xf8] sm:$0xff] %v3887_v3 }
 0x342   : > { %3917 = vst [vmem:[%s7450_s18 + $0xe8] sm:$0xff] %v3885_v5 }
 0x343 PF: > { %s18_s29 = sadd.s32 1, %s5576_s29   ;;  %s7876_s27 = smov %s5572_s28 }
 0x344   : > { %p15_p5 = scmp.ge.s32.totalorder %s18_s29, 4   ;;  %s7877_s28 = smov %s7879_s30 }
 0x346   :  { %17 = sbr.rel (!%p15_p5) target bundleno = 2 (0x2), region = 85 }

</bundles_post_ra>
